<compile_context>
chip_gen: v5e
topology: v5e:2x2
jax: 0.10.0
libtpu: 0.0.40
codegen_flags: <defaults>
</compile_context>

<pallas_src>
import math

import jax
import jax.numpy as jnp
import numpy as np
from jax import lax
from jax.experimental import pallas as pl
from jax.experimental.pallas import tpu as pltpu


def _se_block_kernel(x_ref, w1_ref, b1_ref, w2_ref, b2_ref, o_ref,
                     xpad_ref, ampad_ref):
    """Processes a block of Bb batch elements per grid step.

    x_ref     : (Bb, H, W, C)      unpadded NHWC input tile
    w1_ref    : (9*C, C)   VMEM    dilated-conv weights, row = (kh*3+kw)*C + ci
    b1_ref    : (1, C)     VMEM    dilated-conv bias
    w2_ref    : (49, 2)    VMEM    7x7 spatial-attn weights, row = kh*7+kw,
                                   col 0 = avg-channel weight, col 1 = max
    b2_ref    : (1,)       SMEM    spatial-attn bias
    o_ref     : (Bb, H*W, C)       output tile
    scratch (VMEM):
    xpad_ref  : (Bb, H+4, W+4, C)  zero-padded input (pad=2)
    ampad_ref : (Bb, H+6, W+6, 2)  zero-padded [avg, max] map (pad=3)
    """
    Bb, H, W, C = x_ref.shape
    HW = H * W

    # ---- in-kernel zero padding (pad=2): zero only the 2-wide halo strips,
    #      the interior is fully overwritten every grid step ----
    zrow = jnp.zeros((Bb, 2, W + 4, C), xpad_ref.dtype)
    zcol = jnp.zeros((Bb, H, 2, C), xpad_ref.dtype)
    xpad_ref[:, 0:2, :, :] = zrow
    xpad_ref[:, H + 2:H + 4, :, :] = zrow
    xpad_ref[:, 2:2 + H, 0:2, :] = zcol
    xpad_ref[:, 2:2 + H, W + 2:W + 4, :] = zcol
    xpad_ref[:, 2:2 + H, 2:2 + W, :] = x_ref[...]

    # ---- dilated 3x3 conv (dilation=2) as 9 per-tap MXU dots accumulated in an
    #      f32 accumulator: no persistent (Bb*HW, 9*C) im2col slab.
    # TODO(synk): on v6e/v7x with C=128 taps could be fused in pairs/triples
    # (K = 2C/3C) to fill the 256-deep MXU; kept per-tap to avoid re-introducing
    # a concatenation slab.
    acc = jnp.zeros((Bb * HW, C), jnp.float32)
    for kh in range(3):
        for kw in range(3):
            t = kh * 3 + kw
            tap = xpad_ref[:, 2 * kh:2 * kh + H, 2 * kw:2 * kw + W, :].reshape(
                Bb * HW, C)
            acc = acc + jnp.dot(tap, w1_ref[t * C:(t + 1) * C, :],
                                preferred_element_type=jnp.float32)
    acc = acc + b1_ref[...]                                    # (Bb*HW, C)

    # ---- spatial attention: channel mean + max both on the XLU reduce path
    #      (the MXU stays dedicated to the conv) ----
    avg = jnp.sum(acc, axis=-1, keepdims=True) * (1.0 / C)     # (Bb*HW, 1)
    mx = jnp.max(acc, axis=-1, keepdims=True)                  # (Bb*HW, 1)
    col = lax.broadcasted_iota(jnp.int32, (1, 2), 1)
    am = jnp.where(col == 0, avg, mx).reshape(Bb, H, W, 2)     # [avg, max] map

    # zero-pad (pad=3) the attention map: halo strips only
    zrow2 = jnp.zeros((Bb, 3, W + 6, 2), jnp.float32)
    zcol2 = jnp.zeros((Bb, H, 3, 2), jnp.float32)
    ampad_ref[:, 0:3, :, :] = zrow2
    ampad_ref[:, H + 3:H + 6, :, :] = zrow2
    ampad_ref[:, 3:3 + H, 0:3, :] = zcol2
    ampad_ref[:, 3:3 + H, W + 3:W + 6, :] = zcol2
    ampad_ref[:, 3:3 + H, 3:3 + W, :] = am

    # 7x7 conv (2 -> 1, pad=3) as 49 weighted VPU FMAs over shifted windows of
    # the padded map: no im2col scratch, no masked 2-lane stores, no N=1 MXU
    # matmul.  Per-channel weighted sums accumulate in the [avg, max] lane pair
    # and are collapsed by one final 2-lane reduce.
    w2 = w2_ref[...]                                           # (49, 2)
    logit2 = jnp.zeros((Bb * HW, 2), jnp.float32)
    for kh in range(7):
        for kw in range(7):
            t = kh * 7 + kw
            win = ampad_ref[:, kh:kh + H, kw:kw + W, :].reshape(Bb * HW, 2)
            logit2 = logit2 + win * w2[t:t + 1, :]
    logit = jnp.sum(logit2, axis=-1, keepdims=True) + b2_ref[0]   # (Bb*HW, 1)
    attn = jax.nn.sigmoid(logit)

    out = acc * attn                                            # (Bb*HW, C)
    o_ref[...] = out.reshape(Bb, HW, C).astype(o_ref.dtype)


def _vmem_budget_bytes():
    """~75% of the per-generation VMEM capacity (v5e/v6e: 128 MiB, v7x: 64 MiB)."""
    cap = 64 * 1024 * 1024           # conservative fallback = v7x physical VMEM
    try:
        cap = int(getattr(pltpu.get_tpu_info(), "vmem_capacity_bytes", cap))
    except Exception:
        pass
    return (cap * 3) // 4


def _vmem_bytes_estimate(bb, H, W, C, itemsize):
    """Rough per-grid-step VMEM footprint (lane-padded) for a batch block bb."""
    hw = H * W
    cpad = -(-C // 128) * 128                       # lane padding of the C axis
    io = 2 * 2 * bb * hw * cpad * itemsize          # double-buffered in + out blocks
    wts = 2 * (9 * C * cpad + cpad + 56 * 128) * 4  # conv weights / biases
    xpad = bb * (H + 4) * (W + 4) * cpad * itemsize
    ampad = bb * (H + 6) * (-((W + 6) // -8)) * 8 * 128 * 4
    live = 3 * bb * hw * cpad * 4                   # acc / out / tap f32 temporaries
    return io + wts + xpad + ampad + live


def _pick_batch_block(batch, H, W, C, itemsize, vmem_budget,
                      min_grid=4, rows_target=1024):
    """Batch elements fused per grid step.

    Fills the MXU row dimension (~rows_target rows) subject to this TPU
    generation's actual VMEM budget, while keeping >= min_grid grid steps so
    both v7x TensorCores get >= 2 pipelined steps each (harmless on v5e/v6e).
    """
    hw = H * W
    divisors = [d for d in range(1, batch + 1) if batch % d == 0]
    fits = [d for d in divisors
            if _vmem_bytes_estimate(d, H, W, C, itemsize) <= vmem_budget]
    cands = fits if fits else [1]
    grid_ok = [d for d in cands if batch // d >= min(min_grid, batch)]
    if grid_ok:
        cands = grid_ok
    rows_ok = [d for d in cands if d * hw <= max(rows_target, hw)]
    if rows_ok:
        cands = rows_ok
    return max(cands)


def se_block_forward(x, w1_oihw, b1, w2_oihw, b2, batch_block=None):
    """x: (B, N, C) token sequence, N = H*W.  Returns (B, N, C)."""
    B, N, C = x.shape
    H = math.isqrt(N)                       # exact integer sqrt
    assert H * H == N, "token count N must be a perfect square"
    W = H
    HW = H * W

    budget = _vmem_budget_bytes()
    Bb = (_pick_batch_block(B, H, W, C, jnp.dtype(x.dtype).itemsize, budget)
          if batch_block is None else batch_block)
    assert B % Bb == 0

    # (B, N, C) -> NHWC: PyTorch's permute(0,2,1).view(B,C,H,W) is the NCHW view
    # of the same data, so NHWC is a pure reshape (no data movement).
    feat = x.reshape(B, H, W, C)

    # dilated-conv weight (OIHW) -> im2col matrix (9*C, C), row = (kh*3+kw)*C+ci
    w1_mat = jnp.transpose(w1_oihw, (2, 3, 1, 0)).reshape(9 * C, C)
    b1_2d = b1.reshape(1, C)
    # spatial-attention weight (1,2,7,7) -> (49, 2) table, row = kh*7+kw,
    # col 0 = avg-channel weight, col 1 = max-channel weight
    w2_tab = jnp.transpose(w2_oihw[0], (1, 2, 0)).reshape(49, 2)
    b2_1d = b2.reshape(1)

    out = pl.pallas_call(
        _se_block_kernel,
        out_shape=jax.ShapeDtypeStruct((B, HW, C), x.dtype),
        grid=(B // Bb,),
        in_specs=[
            pl.BlockSpec((Bb, H, W, C), lambda g: (g, 0, 0, 0)),
            pl.BlockSpec((9 * C, C), lambda g: (0, 0)),
            pl.BlockSpec((1, C), lambda g: (0, 0)),
            pl.BlockSpec((49, 2), lambda g: (0, 0)),
            pl.BlockSpec(memory_space=pltpu.MemorySpace.SMEM),
        ],
        out_specs=pl.BlockSpec((Bb, HW, C), lambda g: (g, 0, 0)),
        scratch_shapes=[
            pltpu.VMEM((Bb, H + 4, W + 4, C), x.dtype),
            pltpu.VMEM((Bb, H + 6, W + 6, 2), jnp.float32),
        ],
        compiler_params=pltpu.CompilerParams(
            dimension_semantics=("parallel",),
            vmem_limit_bytes=int(budget)),
    )(feat, w1_mat, b1_2d, w2_tab, b2_1d)

    return out.reshape(B, N, C)


def se_block_reference(x, w1_oihw, b1, w2_oihw, b2):
    """Pure-JAX reference matching the PyTorch forward (block treated as identity)."""
    B, N, C = x.shape
    H = W = math.isqrt(N)
    feat = jnp.transpose(x, (0, 2, 1)).reshape(B, C, H, W)
    feat = lax.conv_general_dilated(
        feat, w1_oihw, window_strides=(1, 1), padding=((2, 2), (2, 2)),
        rhs_dilation=(2, 2), dimension_numbers=("NCHW", "OIHW", "NCHW"),
        precision=lax.Precision.HIGHEST) + b1.reshape(1, C, 1, 1)
    avg = feat.mean(axis=1, keepdims=True)
    mx = feat.max(axis=1, keepdims=True)
    cat = jnp.concatenate([avg, mx], axis=1)
    logit = lax.conv_general_dilated(
        cat, w2_oihw, window_strides=(1, 1), padding=((3, 3), (3, 3)),
        dimension_numbers=("NCHW", "OIHW", "NCHW"),
        precision=lax.Precision.HIGHEST) + b2.reshape(1, 1, 1, 1)
    feat = feat * jax.nn.sigmoid(logit)
    return jnp.transpose(feat.reshape(B, C, N), (0, 2, 1))


if __name__ == "__main__":
    B, H, W, C = 4, 8, 8, 8
    N = H * W

    key = jax.random.PRNGKey(0)
    k1, k2, k3, k4, k5 = jax.random.split(key, 5)
    # Deterministic synthetic parameters (shapes from the nn.Conv2d definitions).
    w1 = jax.random.normal(k1, (C, C, 3, 3), jnp.float32) * 0.1   # dilated_conv weight (OIHW)
    b1 = jax.random.normal(k2, (C,), jnp.float32) * 0.1           # dilated_conv bias
    w2 = jax.random.normal(k3, (1, 2, 7, 7), jnp.float32) * 0.1   # spatial_attn conv weight
    b2 = jax.random.normal(k4, (1,), jnp.float32) * 0.1           # spatial_attn conv bias
    x = jax.random.normal(k5, (B, N, C), jnp.float32)

    out = jax.block_until_ready(se_block_forward(x, w1, b1, w2, b2))
    ref = jax.block_until_ready(se_block_reference(x, w1, b1, w2, b2))
    # Kernel uses the native (single-pass bf16) MXU path, not Precision.HIGHEST,
    # so the comparison against the HIGHEST-precision reference is loosened.
    np.testing.assert_allclose(np.asarray(out), np.asarray(ref),
                               rtol=5e-2, atol=5e-2)
    print("KERNEL_OK")
</pallas_src>

<mosaic_0001>
module attributes {stable_mosaic.version = 11 : i64} {
  func.func @_se_block_kernel(%arg0: i32, %arg1: memref<1x8x8x8xf32, #tpu.memory_space<vmem>>, %arg2: memref<72x8xf32, #tpu.memory_space<vmem>>, %arg3: memref<1x8xf32, #tpu.memory_space<vmem>>, %arg4: memref<49x2xf32, #tpu.memory_space<vmem>>, %arg5: memref<1xf32, #tpu.memory_space<smem>>, %arg6: memref<1x64x8xf32, #tpu.memory_space<vmem>>, %arg7: memref<1x12x12x8xf32, #tpu.memory_space<vmem>>, %arg8: memref<1x14x14x2xf32, #tpu.memory_space<vmem>>) attributes {dimension_semantics = [#tpu.dimension_semantics<parallel>], iteration_bounds = array<i64: 4>, scalar_prefetch = 0 : i64, scratch_operands = 2 : i64, tpu.core_type = #tpu.core_type<tc>, window_params = [{transform_indices = @transform_0, window_bounds = array<i64: 1, 8, 8, 8>}, {pipeline_mode = #tpu.pipeline_mode<synchronous>, transform_indices = @transform_1, window_bounds = array<i64: 72, 8>}, {pipeline_mode = #tpu.pipeline_mode<synchronous>, transform_indices = @transform_2, window_bounds = array<i64: 1, 8>}, {pipeline_mode = #tpu.pipeline_mode<synchronous>, transform_indices = @transform_3, window_bounds = array<i64: 49, 2>}, {transform_indices = @transform_4, window_bounds = array<i64: 1>}, {transform_indices = @transform_5, window_bounds = array<i64: 1, 64, 8>}]} {
    %cst = arith.constant 0.000000e+00 : f32
    %0 = vector.broadcast %cst : f32 to vector<1x2x12x8xf32>
    %cst_0 = arith.constant 0.000000e+00 : f32
    %1 = vector.broadcast %cst_0 : f32 to vector<1x8x2x8xf32>
    %c0 = arith.constant 0 : index
    %c0_1 = arith.constant 0 : index
    %c0_2 = arith.constant 0 : index
    %c0_3 = arith.constant 0 : index
    %2 = vector.load %arg7[%c0, %c0_1, %c0_2, %c0_3] : memref<1x12x12x8xf32, #tpu.memory_space<vmem>>, vector<1x2x12x8xf32>
    tpu.vector_store %arg7[%c0, %c0_1, %c0_2, %c0_3], %0 {strides = array<i32>} : memref<1x12x12x8xf32, #tpu.memory_space<vmem>>, vector<1x2x12x8xf32>,
    %c0_4 = arith.constant 0 : index
    %c10 = arith.constant 10 : index
    %c0_5 = arith.constant 0 : index
    %c0_6 = arith.constant 0 : index
    %3 = vector.load %arg7[%c0_4, %c10, %c0_5, %c0_6] : memref<1x12x12x8xf32, #tpu.memory_space<vmem>>, vector<1x2x12x8xf32>
    tpu.vector_store %arg7[%c0_4, %c10, %c0_5, %c0_6], %0 {strides = array<i32>} : memref<1x12x12x8xf32, #tpu.memory_space<vmem>>, vector<1x2x12x8xf32>,
    %c0_7 = arith.constant 0 : index
    %c2 = arith.constant 2 : index
    %c0_8 = arith.constant 0 : index
    %c0_9 = arith.constant 0 : index
    %4 = vector.load %arg7[%c0_7, %c2, %c0_8, %c0_9] : memref<1x12x12x8xf32, #tpu.memory_space<vmem>>, vector<1x8x2x8xf32>
    tpu.vector_store %arg7[%c0_7, %c2, %c0_8, %c0_9], %1 {strides = array<i32>} : memref<1x12x12x8xf32, #tpu.memory_space<vmem>>, vector<1x8x2x8xf32>,
    %c0_10 = arith.constant 0 : index
    %c2_11 = arith.constant 2 : index
    %c10_12 = arith.constant 10 : index
    %c0_13 = arith.constant 0 : index
    %5 = vector.load %arg7[%c0_10, %c2_11, %c10_12, %c0_13] : memref<1x12x12x8xf32, #tpu.memory_space<vmem>>, vector<1x8x2x8xf32>
    tpu.vector_store %arg7[%c0_10, %c2_11, %c10_12, %c0_13], %1 {strides = array<i32>} : memref<1x12x12x8xf32, #tpu.memory_space<vmem>>, vector<1x8x2x8xf32>,
    %c0_14 = arith.constant 0 : index
    %c0_15 = arith.constant 0 : index
    %c0_16 = arith.constant 0 : index
    %c0_17 = arith.constant 0 : index
    %6 = vector.load %arg1[%c0_14, %c0_15, %c0_16, %c0_17] : memref<1x8x8x8xf32, #tpu.memory_space<vmem>>, vector<1x8x8x8xf32>
    %c0_18 = arith.constant 0 : index
    %c2_19 = arith.constant 2 : index
    %c2_20 = arith.constant 2 : index
    %c0_21 = arith.constant 0 : index
    %7 = vector.load %arg7[%c0_18, %c2_19, %c2_20, %c0_21] : memref<1x12x12x8xf32, #tpu.memory_space<vmem>>, vector<1x8x8x8xf32>
    tpu.vector_store %arg7[%c0_18, %c2_19, %c2_20, %c0_21], %6 {strides = array<i32>} : memref<1x12x12x8xf32, #tpu.memory_space<vmem>>, vector<1x8x8x8xf32>,
    %cst_22 = arith.constant 0.000000e+00 : f32
    %8 = vector.broadcast %cst_22 : f32 to vector<64x8xf32>
    %c0_23 = arith.constant 0 : index
    %c0_24 = arith.constant 0 : index
    %c0_25 = arith.constant 0 : index
    %c0_26 = arith.constant 0 : index
    %9 = vector.load %arg7[%c0_23, %c0_24, %c0_25, %c0_26] : memref<1x12x12x8xf32, #tpu.memory_space<vmem>>, vector<1x8x8x8xf32>
    %10 = vector.shape_cast %9 : vector<1x8x8x8xf32> to vector<64x8xf32>
    %c0_27 = arith.constant 0 : index
    %c0_28 = arith.constant 0 : index
    %11 = vector.load %arg2[%c0_27, %c0_28] : memref<72x8xf32, #tpu.memory_space<vmem>>, vector<8x8xf32>
    %cst_29 = arith.constant dense<0.000000e+00> : vector<64x8xf32>
    %12 = tpu.matmul %10, %11, %cst_29 {dimension_numbers = #tpu.dot_dimension_numbers<[1], [0], [0], [1], [0, 0, 1, 1], [], []>} : vector<64x8xf32>, vector<8x8xf32>, vector<64x8xf32> -> vector<64x8xf32>
    %13 = arith.addf %8, %12 : vector<64x8xf32>
    %c0_30 = arith.constant 0 : index
    %c0_31 = arith.constant 0 : index
    %c2_32 = arith.constant 2 : index
    %c0_33 = arith.constant 0 : index
    %14 = vector.load %arg7[%c0_30, %c0_31, %c2_32, %c0_33] : memref<1x12x12x8xf32, #tpu.memory_space<vmem>>, vector<1x8x8x8xf32>
    %15 = vector.shape_cast %14 : vector<1x8x8x8xf32> to vector<64x8xf32>
    %c8 = arith.constant 8 : index
    %c0_34 = arith.constant 0 : index
    %16 = vector.load %arg2[%c8, %c0_34] : memref<72x8xf32, #tpu.memory_space<vmem>>, vector<8x8xf32>
    %cst_35 = arith.constant dense<0.000000e+00> : vector<64x8xf32>
    %17 = tpu.matmul %15, %16, %cst_35 {dimension_numbers = #tpu.dot_dimension_numbers<[1], [0], [0], [1], [0, 0, 1, 1], [], []>} : vector<64x8xf32>, vector<8x8xf32>, vector<64x8xf32> -> vector<64x8xf32>
    %18 = arith.addf %13, %17 : vector<64x8xf32>
    %c0_36 = arith.constant 0 : index
    %c0_37 = arith.constant 0 : index
    %c4 = arith.constant 4 : index
    %c0_38 = arith.constant 0 : index
    %19 = vector.load %arg7[%c0_36, %c0_37, %c4, %c0_38] : memref<1x12x12x8xf32, #tpu.memory_space<vmem>>, vector<1x8x8x8xf32>
    %20 = vector.shape_cast %19 : vector<1x8x8x8xf32> to vector<64x8xf32>
    %c16 = arith.constant 16 : index
    %c0_39 = arith.constant 0 : index
    %21 = vector.load %arg2[%c16, %c0_39] : memref<72x8xf32, #tpu.memory_space<vmem>>, vector<8x8xf32>
    %cst_40 = arith.constant dense<0.000000e+00> : vector<64x8xf32>
    %22 = tpu.matmul %20, %21, %cst_40 {dimension_numbers = #tpu.dot_dimension_numbers<[1], [0], [0], [1], [0, 0, 1, 1], [], []>} : vector<64x8xf32>, vector<8x8xf32>, vector<64x8xf32> -> vector<64x8xf32>
    %23 = arith.addf %18, %22 : vector<64x8xf32>
    %c0_41 = arith.constant 0 : index
    %c2_42 = arith.constant 2 : index
    %c0_43 = arith.constant 0 : index
    %c0_44 = arith.constant 0 : index
    %24 = vector.load %arg7[%c0_41, %c2_42, %c0_43, %c0_44] : memref<1x12x12x8xf32, #tpu.memory_space<vmem>>, vector<1x8x8x8xf32>
    %25 = vector.shape_cast %24 : vector<1x8x8x8xf32> to vector<64x8xf32>
    %c24 = arith.constant 24 : index
    %c0_45 = arith.constant 0 : index
    %26 = vector.load %arg2[%c24, %c0_45] : memref<72x8xf32, #tpu.memory_space<vmem>>, vector<8x8xf32>
    %cst_46 = arith.constant dense<0.000000e+00> : vector<64x8xf32>
    %27 = tpu.matmul %25, %26, %cst_46 {dimension_numbers = #tpu.dot_dimension_numbers<[1], [0], [0], [1], [0, 0, 1, 1], [], []>} : vector<64x8xf32>, vector<8x8xf32>, vector<64x8xf32> -> vector<64x8xf32>
    %28 = arith.addf %23, %27 : vector<64x8xf32>
    %c0_47 = arith.constant 0 : index
    %c2_48 = arith.constant 2 : index
    %c2_49 = arith.constant 2 : index
    %c0_50 = arith.constant 0 : index
    %29 = vector.load %arg7[%c0_47, %c2_48, %c2_49, %c0_50] : memref<1x12x12x8xf32, #tpu.memory_space<vmem>>, vector<1x8x8x8xf32>
    %30 = vector.shape_cast %29 : vector<1x8x8x8xf32> to vector<64x8xf32>
    %c32 = arith.constant 32 : index
    %c0_51 = arith.constant 0 : index
    %31 = vector.load %arg2[%c32, %c0_51] : memref<72x8xf32, #tpu.memory_space<vmem>>, vector<8x8xf32>
    %cst_52 = arith.constant dense<0.000000e+00> : vector<64x8xf32>
    %32 = tpu.matmul %30, %31, %cst_52 {dimension_numbers = #tpu.dot_dimension_numbers<[1], [0], [0], [1], [0, 0, 1, 1], [], []>} : vector<64x8xf32>, vector<8x8xf32>, vector<64x8xf32> -> vector<64x8xf32>
    %33 = arith.addf %28, %32 : vector<64x8xf32>
    %c0_53 = arith.constant 0 : index
    %c2_54 = arith.constant 2 : index
    %c4_55 = arith.constant 4 : index
    %c0_56 = arith.constant 0 : index
    %34 = vector.load %arg7[%c0_53, %c2_54, %c4_55, %c0_56] : memref<1x12x12x8xf32, #tpu.memory_space<vmem>>, vector<1x8x8x8xf32>
    %35 = vector.shape_cast %34 : vector<1x8x8x8xf32> to vector<64x8xf32>
    %c40 = arith.constant 40 : index
    %c0_57 = arith.constant 0 : index
    %36 = vector.load %arg2[%c40, %c0_57] : memref<72x8xf32, #tpu.memory_space<vmem>>, vector<8x8xf32>
    %cst_58 = arith.constant dense<0.000000e+00> : vector<64x8xf32>
    %37 = tpu.matmul %35, %36, %cst_58 {dimension_numbers = #tpu.dot_dimension_numbers<[1], [0], [0], [1], [0, 0, 1, 1], [], []>} : vector<64x8xf32>, vector<8x8xf32>, vector<64x8xf32> -> vector<64x8xf32>
    %38 = arith.addf %33, %37 : vector<64x8xf32>
    %c0_59 = arith.constant 0 : index
    %c4_60 = arith.constant 4 : index
    %c0_61 = arith.constant 0 : index
    %c0_62 = arith.constant 0 : index
    %39 = vector.load %arg7[%c0_59, %c4_60, %c0_61, %c0_62] : memref<1x12x12x8xf32, #tpu.memory_space<vmem>>, vector<1x8x8x8xf32>
    %40 = vector.shape_cast %39 : vector<1x8x8x8xf32> to vector<64x8xf32>
    %c48 = arith.constant 48 : index
    %c0_63 = arith.constant 0 : index
    %41 = vector.load %arg2[%c48, %c0_63] : memref<72x8xf32, #tpu.memory_space<vmem>>, vector<8x8xf32>
    %cst_64 = arith.constant dense<0.000000e+00> : vector<64x8xf32>
    %42 = tpu.matmul %40, %41, %cst_64 {dimension_numbers = #tpu.dot_dimension_numbers<[1], [0], [0], [1], [0, 0, 1, 1], [], []>} : vector<64x8xf32>, vector<8x8xf32>, vector<64x8xf32> -> vector<64x8xf32>
    %43 = arith.addf %38, %42 : vector<64x8xf32>
    %c0_65 = arith.constant 0 : index
    %c4_66 = arith.constant 4 : index
    %c2_67 = arith.constant 2 : index
    %c0_68 = arith.constant 0 : index
    %44 = vector.load %arg7[%c0_65, %c4_66, %c2_67, %c0_68] : memref<1x12x12x8xf32, #tpu.memory_space<vmem>>, vector<1x8x8x8xf32>
    %45 = vector.shape_cast %44 : vector<1x8x8x8xf32> to vector<64x8xf32>
    %c56 = arith.constant 56 : index
    %c0_69 = arith.constant 0 : index
    %46 = vector.load %arg2[%c56, %c0_69] : memref<72x8xf32, #tpu.memory_space<vmem>>, vector<8x8xf32>
    %cst_70 = arith.constant dense<0.000000e+00> : vector<64x8xf32>
    %47 = tpu.matmul %45, %46, %cst_70 {dimension_numbers = #tpu.dot_dimension_numbers<[1], [0], [0], [1], [0, 0, 1, 1], [], []>} : vector<64x8xf32>, vector<8x8xf32>, vector<64x8xf32> -> vector<64x8xf32>
    %48 = arith.addf %43, %47 : vector<64x8xf32>
    %c0_71 = arith.constant 0 : index
    %c4_72 = arith.constant 4 : index
    %c4_73 = arith.constant 4 : index
    %c0_74 = arith.constant 0 : index
    %49 = vector.load %arg7[%c0_71, %c4_72, %c4_73, %c0_74] : memref<1x12x12x8xf32, #tpu.memory_space<vmem>>, vector<1x8x8x8xf32>
    %50 = vector.shape_cast %49 : vector<1x8x8x8xf32> to vector<64x8xf32>
    %c64 = arith.constant 64 : index
    %c0_75 = arith.constant 0 : index
    %51 = vector.load %arg2[%c64, %c0_75] : memref<72x8xf32, #tpu.memory_space<vmem>>, vector<8x8xf32>
    %cst_76 = arith.constant dense<0.000000e+00> : vector<64x8xf32>
    %52 = tpu.matmul %50, %51, %cst_76 {dimension_numbers = #tpu.dot_dimension_numbers<[1], [0], [0], [1], [0, 0, 1, 1], [], []>} : vector<64x8xf32>, vector<8x8xf32>, vector<64x8xf32> -> vector<64x8xf32>
    %53 = arith.addf %48, %52 : vector<64x8xf32>
    %c0_77 = arith.constant 0 : index
    %c0_78 = arith.constant 0 : index
    %54 = vector.load %arg3[%c0_77, %c0_78] : memref<1x8xf32, #tpu.memory_space<vmem>>, vector<1x8xf32>
    %55 = vector.broadcast %54 : vector<1x8xf32> to vector<64x8xf32>
    %56 = arith.addf %53, %55 : vector<64x8xf32>
    %cst_79 = arith.constant dense<0.000000e+00> : vector<64xf32>
    %57 = vector.multi_reduction <add>, %56, %cst_79 [1] : vector<64x8xf32> to vector<64xf32>
    %58 = vector.shape_cast %57 : vector<64xf32> to vector<64x1xf32>
    %cst_80 = arith.constant 1.250000e-01 : f32
    %59 = vector.broadcast %cst_80 : f32 to vector<64x1xf32>
    %60 = arith.mulf %58, %59 : vector<64x1xf32>
    %cst_81 = arith.constant dense<0xFF800000> : vector<64xf32>
    %61 = vector.multi_reduction <maximumf>, %56, %cst_81 [1] : vector<64x8xf32> to vector<64xf32>
    %62 = vector.shape_cast %61 : vector<64xf32> to vector<64x1xf32>
    %63 = tpu.iota {dimensions = array<i32: 1>} : vector<1x2xi32>
    %c0_i32 = arith.constant 0 : i32
    %64 = vector.broadcast %c0_i32 : i32 to vector<1x2xi32>
    %65 = arith.cmpi eq, %63, %64 : vector<1x2xi32>
    %66 = vector.shape_cast %65 : vector<1x2xi1> to vector<1x2xi1>
    %67 = vector.broadcast %66 : vector<1x2xi1> to vector<64x2xi1>
    %68 = vector.shape_cast %60 : vector<64x1xf32> to vector<64x1xf32>
    %69 = vector.broadcast %68 : vector<64x1xf32> to vector<64x2xf32>
    %70 = vector.shape_cast %62 : vector<64x1xf32> to vector<64x1xf32>
    %71 = vector.broadcast %70 : vector<64x1xf32> to vector<64x2xf32>
    %72 = arith.select %67, %69, %71 : vector<64x2xi1>, vector<64x2xf32>
    %73 = vector.shape_cast %72 : vector<64x2xf32> to vector<1x8x8x2xf32>
    %cst_82 = arith.constant 0.000000e+00 : f32
    %74 = vector.broadcast %cst_82 : f32 to vector<1x3x14x2xf32>
    %cst_83 = arith.constant 0.000000e+00 : f32
    %75 = vector.broadcast %cst_83 : f32 to vector<1x8x3x2xf32>
    %c0_84 = arith.constant 0 : index
    %c0_85 = arith.constant 0 : index
    %c0_86 = arith.constant 0 : index
    %c0_87 = arith.constant 0 : index
    %76 = vector.load %arg8[%c0_84, %c0_85, %c0_86, %c0_87] : memref<1x14x14x2xf32, #tpu.memory_space<vmem>>, vector<1x3x14x2xf32>
    tpu.vector_store %arg8[%c0_84, %c0_85, %c0_86, %c0_87], %74 {strides = array<i32>} : memref<1x14x14x2xf32, #tpu.memory_space<vmem>>, vector<1x3x14x2xf32>,
    %c0_88 = arith.constant 0 : index
    %c11 = arith.constant 11 : index
    %c0_89 = arith.constant 0 : index
    %c0_90 = arith.constant 0 : index
    %77 = vector.load %arg8[%c0_88, %c11, %c0_89, %c0_90] : memref<1x14x14x2xf32, #tpu.memory_space<vmem>>, vector<1x3x14x2xf32>
    tpu.vector_store %arg8[%c0_88, %c11, %c0_89, %c0_90], %74 {strides = array<i32>} : memref<1x14x14x2xf32, #tpu.memory_space<vmem>>, vector<1x3x14x2xf32>,
    %c0_91 = arith.constant 0 : index
    %c3 = arith.constant 3 : index
    %c0_92 = arith.constant 0 : index
    %c0_93 = arith.constant 0 : index
    %78 = vector.load %arg8[%c0_91, %c3, %c0_92, %c0_93] : memref<1x14x14x2xf32, #tpu.memory_space<vmem>>, vector<1x8x3x2xf32>
    tpu.vector_store %arg8[%c0_91, %c3, %c0_92, %c0_93], %75 {strides = array<i32>} : memref<1x14x14x2xf32, #tpu.memory_space<vmem>>, vector<1x8x3x2xf32>,
    %c0_94 = arith.constant 0 : index
    %c3_95 = arith.constant 3 : index
    %c11_96 = arith.constant 11 : index
    %c0_97 = arith.constant 0 : index
    %79 = vector.load %arg8[%c0_94, %c3_95, %c11_96, %c0_97] : memref<1x14x14x2xf32, #tpu.memory_space<vmem>>, vector<1x8x3x2xf32>
    tpu.vector_store %arg8[%c0_94, %c3_95, %c11_96, %c0_97], %75 {strides = array<i32>} : memref<1x14x14x2xf32, #tpu.memory_space<vmem>>, vector<1x8x3x2xf32>,
    %c0_98 = arith.constant 0 : index
    %c3_99 = arith.constant 3 : index
    %c3_100 = arith.constant 3 : index
    %c0_101 = arith.constant 0 : index
    %80 = vector.load %arg8[%c0_98, %c3_99, %c3_100, %c0_101] : memref<1x14x14x2xf32, #tpu.memory_space<vmem>>, vector<1x8x8x2xf32>
    tpu.vector_store %arg8[%c0_98, %c3_99, %c3_100, %c0_101], %73 {strides = array<i32>} : memref<1x14x14x2xf32, #tpu.memory_space<vmem>>, vector<1x8x8x2xf32>,
    %c0_102 = arith.constant 0 : index
    %c0_103 = arith.constant 0 : index
    %81 = vector.load %arg4[%c0_102, %c0_103] : memref<49x2xf32, #tpu.memory_space<vmem>>, vector<49x2xf32>
    %cst_104 = arith.constant 0.000000e+00 : f32
    %82 = vector.broadcast %cst_104 : f32 to vector<64x2xf32>
    %c0_105 = arith.constant 0 : index
    %c0_106 = arith.constant 0 : index
    %c0_107 = arith.constant 0 : index
    %c0_108 = arith.constant 0 : index
    %83 = vector.load %arg8[%c0_105, %c0_106, %c0_107, %c0_108] : memref<1x14x14x2xf32, #tpu.memory_space<vmem>>, vector<1x8x8x2xf32>
    %84 = vector.shape_cast %83 : vector<1x8x8x2xf32> to vector<64x2xf32>
    %85 = vector.extract_strided_slice %81 {offsets = [0, 0], sizes = [1, 2], strides = [1, 1]} : vector<49x2xf32> to vector<1x2xf32>
    %86 = vector.broadcast %85 : vector<1x2xf32> to vector<64x2xf32>
    %87 = arith.mulf %84, %86 : vector<64x2xf32>
    %88 = arith.addf %82, %87 : vector<64x2xf32>
    %c0_109 = arith.constant 0 : index
    %c0_110 = arith.constant 0 : index
    %c1 = arith.constant 1 : index
    %c0_111 = arith.constant 0 : index
    %89 = vector.load %arg8[%c0_109, %c0_110, %c1, %c0_111] : memref<1x14x14x2xf32, #tpu.memory_space<vmem>>, vector<1x8x8x2xf32>
    %90 = vector.shape_cast %89 : vector<1x8x8x2xf32> to vector<64x2xf32>
    %91 = vector.extract_strided_slice %81 {offsets = [1, 0], sizes = [1, 2], strides = [1, 1]} : vector<49x2xf32> to vector<1x2xf32>
    %92 = vector.broadcast %91 : vector<1x2xf32> to vector<64x2xf32>
    %93 = arith.mulf %90, %92 : vector<64x2xf32>
    %94 = arith.addf %88, %93 : vector<64x2xf32>
    %c0_112 = arith.constant 0 : index
    %c0_113 = arith.constant 0 : index
    %c2_114 = arith.constant 2 : index
    %c0_115 = arith.constant 0 : index
    %95 = vector.load %arg8[%c0_112, %c0_113, %c2_114, %c0_115] : memref<1x14x14x2xf32, #tpu.memory_space<vmem>>, vector<1x8x8x2xf32>
    %96 = vector.shape_cast %95 : vector<1x8x8x2xf32> to vector<64x2xf32>
    %97 = vector.extract_strided_slice %81 {offsets = [2, 0], sizes = [1, 2], strides = [1, 1]} : vector<49x2xf32> to vector<1x2xf32>
    %98 = vector.broadcast %97 : vector<1x2xf32> to vector<64x2xf32>
    %99 = arith.mulf %96, %98 : vector<64x2xf32>
    %100 = arith.addf %94, %99 : vector<64x2xf32>
    %c0_116 = arith.constant 0 : index
    %c0_117 = arith.constant 0 : index
    %c3_118 = arith.constant 3 : index
    %c0_119 = arith.constant 0 : index
    %101 = vector.load %arg8[%c0_116, %c0_117, %c3_118, %c0_119] : memref<1x14x14x2xf32, #tpu.memory_space<vmem>>, vector<1x8x8x2xf32>
    %102 = vector.shape_cast %101 : vector<1x8x8x2xf32> to vector<64x2xf32>
    %103 = vector.extract_strided_slice %81 {offsets = [3, 0], sizes = [1, 2], strides = [1, 1]} : vector<49x2xf32> to vector<1x2xf32>
    %104 = vector.broadcast %103 : vector<1x2xf32> to vector<64x2xf32>
    %105 = arith.mulf %102, %104 : vector<64x2xf32>
    %106 = arith.addf %100, %105 : vector<64x2xf32>
    %c0_120 = arith.constant 0 : index
    %c0_121 = arith.constant 0 : index
    %c4_122 = arith.constant 4 : index
    %c0_123 = arith.constant 0 : index
    %107 = vector.load %arg8[%c0_120, %c0_121, %c4_122, %c0_123] : memref<1x14x14x2xf32, #tpu.memory_space<vmem>>, vector<1x8x8x2xf32>
    %108 = vector.shape_cast %107 : vector<1x8x8x2xf32> to vector<64x2xf32>
    %109 = vector.extract_strided_slice %81 {offsets = [4, 0], sizes = [1, 2], strides = [1, 1]} : vector<49x2xf32> to vector<1x2xf32>
    %110 = vector.broadcast %109 : vector<1x2xf32> to vector<64x2xf32>
    %111 = arith.mulf %108, %110 : vector<64x2xf32>
    %112 = arith.addf %106, %111 : vector<64x2xf32>
    %c0_124 = arith.constant 0 : index
    %c0_125 = arith.constant 0 : index
    %c5 = arith.constant 5 : index
    %c0_126 = arith.constant 0 : index
    %113 = vector.load %arg8[%c0_124, %c0_125, %c5, %c0_126] : memref<1x14x14x2xf32, #tpu.memory_space<vmem>>, vector<1x8x8x2xf32>
    %114 = vector.shape_cast %113 : vector<1x8x8x2xf32> to vector<64x2xf32>
    %115 = vector.extract_strided_slice %81 {offsets = [5, 0], sizes = [1, 2], strides = [1, 1]} : vector<49x2xf32> to vector<1x2xf32>
    %116 = vector.broadcast %115 : vector<1x2xf32> to vector<64x2xf32>
    %117 = arith.mulf %114, %116 : vector<64x2xf32>
    %118 = arith.addf %112, %117 : vector<64x2xf32>
    %c0_127 = arith.constant 0 : index
    %c0_128 = arith.constant 0 : index
    %c6 = arith.constant 6 : index
    %c0_129 = arith.constant 0 : index
    %119 = vector.load %arg8[%c0_127, %c0_128, %c6, %c0_129] : memref<1x14x14x2xf32, #tpu.memory_space<vmem>>, vector<1x8x8x2xf32>
    %120 = vector.shape_cast %119 : vector<1x8x8x2xf32> to vector<64x2xf32>
    %121 = vector.extract_strided_slice %81 {offsets = [6, 0], sizes = [1, 2], strides = [1, 1]} : vector<49x2xf32> to vector<1x2xf32>
    %122 = vector.broadcast %121 : vector<1x2xf32> to vector<64x2xf32>
    %123 = arith.mulf %120, %122 : vector<64x2xf32>
    %124 = arith.addf %118, %123 : vector<64x2xf32>
    %c0_130 = arith.constant 0 : index
    %c1_131 = arith.constant 1 : index
    %c0_132 = arith.constant 0 : index
    %c0_133 = arith.constant 0 : index
    %125 = vector.load %arg8[%c0_130, %c1_131, %c0_132, %c0_133] : memref<1x14x14x2xf32, #tpu.memory_space<vmem>>, vector<1x8x8x2xf32>
    %126 = vector.shape_cast %125 : vector<1x8x8x2xf32> to vector<64x2xf32>
    %127 = vector.extract_strided_slice %81 {offsets = [7, 0], sizes = [1, 2], strides = [1, 1]} : vector<49x2xf32> to vector<1x2xf32>
    %128 = vector.broadcast %127 : vector<1x2xf32> to vector<64x2xf32>
    %129 = arith.mulf %126, %128 : vector<64x2xf32>
    %130 = arith.addf %124, %129 : vector<64x2xf32>
    %c0_134 = arith.constant 0 : index
    %c1_135 = arith.constant 1 : index
    %c1_136 = arith.constant 1 : index
    %c0_137 = arith.constant 0 : index
    %131 = vector.load %arg8[%c0_134, %c1_135, %c1_136, %c0_137] : memref<1x14x14x2xf32, #tpu.memory_space<vmem>>, vector<1x8x8x2xf32>
    %132 = vector.shape_cast %131 : vector<1x8x8x2xf32> to vector<64x2xf32>
    %133 = vector.extract_strided_slice %81 {offsets = [8, 0], sizes = [1, 2], strides = [1, 1]} : vector<49x2xf32> to vector<1x2xf32>
    %134 = vector.broadcast %133 : vector<1x2xf32> to vector<64x2xf32>
    %135 = arith.mulf %132, %134 : vector<64x2xf32>
    %136 = arith.addf %130, %135 : vector<64x2xf32>
    %c0_138 = arith.constant 0 : index
    %c1_139 = arith.constant 1 : index
    %c2_140 = arith.constant 2 : index
    %c0_141 = arith.constant 0 : index
    %137 = vector.load %arg8[%c0_138, %c1_139, %c2_140, %c0_141] : memref<1x14x14x2xf32, #tpu.memory_space<vmem>>, vector<1x8x8x2xf32>
    %138 = vector.shape_cast %137 : vector<1x8x8x2xf32> to vector<64x2xf32>
    %139 = vector.extract_strided_slice %81 {offsets = [9, 0], sizes = [1, 2], strides = [1, 1]} : vector<49x2xf32> to vector<1x2xf32>
    %140 = vector.broadcast %139 : vector<1x2xf32> to vector<64x2xf32>
    %141 = arith.mulf %138, %140 : vector<64x2xf32>
    %142 = arith.addf %136, %141 : vector<64x2xf32>
    %c0_142 = arith.constant 0 : index
    %c1_143 = arith.constant 1 : index
    %c3_144 = arith.constant 3 : index
    %c0_145 = arith.constant 0 : index
    %143 = vector.load %arg8[%c0_142, %c1_143, %c3_144, %c0_145] : memref<1x14x14x2xf32, #tpu.memory_space<vmem>>, vector<1x8x8x2xf32>
    %144 = vector.shape_cast %143 : vector<1x8x8x2xf32> to vector<64x2xf32>
    %145 = vector.extract_strided_slice %81 {offsets = [10, 0], sizes = [1, 2], strides = [1, 1]} : vector<49x2xf32> to vector<1x2xf32>
    %146 = vector.broadcast %145 : vector<1x2xf32> to vector<64x2xf32>
    %147 = arith.mulf %144, %146 : vector<64x2xf32>
    %148 = arith.addf %142, %147 : vector<64x2xf32>
    %c0_146 = arith.constant 0 : index
    %c1_147 = arith.constant 1 : index
    %c4_148 = arith.constant 4 : index
    %c0_149 = arith.constant 0 : index
    %149 = vector.load %arg8[%c0_146, %c1_147, %c4_148, %c0_149] : memref<1x14x14x2xf32, #tpu.memory_space<vmem>>, vector<1x8x8x2xf32>
    %150 = vector.shape_cast %149 : vector<1x8x8x2xf32> to vector<64x2xf32>
    %151 = vector.extract_strided_slice %81 {offsets = [11, 0], sizes = [1, 2], strides = [1, 1]} : vector<49x2xf32> to vector<1x2xf32>
    %152 = vector.broadcast %151 : vector<1x2xf32> to vector<64x2xf32>
    %153 = arith.mulf %150, %152 : vector<64x2xf32>
    %154 = arith.addf %148, %153 : vector<64x2xf32>
    %c0_150 = arith.constant 0 : index
    %c1_151 = arith.constant 1 : index
    %c5_152 = arith.constant 5 : index
    %c0_153 = arith.constant 0 : index
    %155 = vector.load %arg8[%c0_150, %c1_151, %c5_152, %c0_153] : memref<1x14x14x2xf32, #tpu.memory_space<vmem>>, vector<1x8x8x2xf32>
    %156 = vector.shape_cast %155 : vector<1x8x8x2xf32> to vector<64x2xf32>
    %157 = vector.extract_strided_slice %81 {offsets = [12, 0], sizes = [1, 2], strides = [1, 1]} : vector<49x2xf32> to vector<1x2xf32>
    %158 = vector.broadcast %157 : vector<1x2xf32> to vector<64x2xf32>
    %159 = arith.mulf %156, %158 : vector<64x2xf32>
    %160 = arith.addf %154, %159 : vector<64x2xf32>
    %c0_154 = arith.constant 0 : index
    %c1_155 = arith.constant 1 : index
    %c6_156 = arith.constant 6 : index
    %c0_157 = arith.constant 0 : index
    %161 = vector.load %arg8[%c0_154, %c1_155, %c6_156, %c0_157] : memref<1x14x14x2xf32, #tpu.memory_space<vmem>>, vector<1x8x8x2xf32>
    %162 = vector.shape_cast %161 : vector<1x8x8x2xf32> to vector<64x2xf32>
    %163 = vector.extract_strided_slice %81 {offsets = [13, 0], sizes = [1, 2], strides = [1, 1]} : vector<49x2xf32> to vector<1x2xf32>
    %164 = vector.broadcast %163 : vector<1x2xf32> to vector<64x2xf32>
    %165 = arith.mulf %162, %164 : vector<64x2xf32>
    %166 = arith.addf %160, %165 : vector<64x2xf32>
    %c0_158 = arith.constant 0 : index
    %c2_159 = arith.constant 2 : index
    %c0_160 = arith.constant 0 : index
    %c0_161 = arith.constant 0 : index
    %167 = vector.load %arg8[%c0_158, %c2_159, %c0_160, %c0_161] : memref<1x14x14x2xf32, #tpu.memory_space<vmem>>, vector<1x8x8x2xf32>
    %168 = vector.shape_cast %167 : vector<1x8x8x2xf32> to vector<64x2xf32>
    %169 = vector.extract_strided_slice %81 {offsets = [14, 0], sizes = [1, 2], strides = [1, 1]} : vector<49x2xf32> to vector<1x2xf32>
    %170 = vector.broadcast %169 : vector<1x2xf32> to vector<64x2xf32>
    %171 = arith.mulf %168, %170 : vector<64x2xf32>
    %172 = arith.addf %166, %171 : vector<64x2xf32>
    %c0_162 = arith.constant 0 : index
    %c2_163 = arith.constant 2 : index
    %c1_164 = arith.constant 1 : index
    %c0_165 = arith.constant 0 : index
    %173 = vector.load %arg8[%c0_162, %c2_163, %c1_164, %c0_165] : memref<1x14x14x2xf32, #tpu.memory_space<vmem>>, vector<1x8x8x2xf32>
    %174 = vector.shape_cast %173 : vector<1x8x8x2xf32> to vector<64x2xf32>
    %175 = vector.extract_strided_slice %81 {offsets = [15, 0], sizes = [1, 2], strides = [1, 1]} : vector<49x2xf32> to vector<1x2xf32>
    %176 = vector.broadcast %175 : vector<1x2xf32> to vector<64x2xf32>
    %177 = arith.mulf %174, %176 : vector<64x2xf32>
    %178 = arith.addf %172, %177 : vector<64x2xf32>
    %c0_166 = arith.constant 0 : index
    %c2_167 = arith.constant 2 : index
    %c2_168 = arith.constant 2 : index
    %c0_169 = arith.constant 0 : index
    %179 = vector.load %arg8[%c0_166, %c2_167, %c2_168, %c0_169] : memref<1x14x14x2xf32, #tpu.memory_space<vmem>>, vector<1x8x8x2xf32>
    %180 = vector.shape_cast %179 : vector<1x8x8x2xf32> to vector<64x2xf32>
    %181 = vector.extract_strided_slice %81 {offsets = [16, 0], sizes = [1, 2], strides = [1, 1]} : vector<49x2xf32> to vector<1x2xf32>
    %182 = vector.broadcast %181 : vector<1x2xf32> to vector<64x2xf32>
    %183 = arith.mulf %180, %182 : vector<64x2xf32>
    %184 = arith.addf %178, %183 : vector<64x2xf32>
    %c0_170 = arith.constant 0 : index
    %c2_171 = arith.constant 2 : index
    %c3_172 = arith.constant 3 : index
    %c0_173 = arith.constant 0 : index
    %185 = vector.load %arg8[%c0_170, %c2_171, %c3_172, %c0_173] : memref<1x14x14x2xf32, #tpu.memory_space<vmem>>, vector<1x8x8x2xf32>
    %186 = vector.shape_cast %185 : vector<1x8x8x2xf32> to vector<64x2xf32>
    %187 = vector.extract_strided_slice %81 {offsets = [17, 0], sizes = [1, 2], strides = [1, 1]} : vector<49x2xf32> to vector<1x2xf32>
    %188 = vector.broadcast %187 : vector<1x2xf32> to vector<64x2xf32>
    %189 = arith.mulf %186, %188 : vector<64x2xf32>
    %190 = arith.addf %184, %189 : vector<64x2xf32>
    %c0_174 = arith.constant 0 : index
    %c2_175 = arith.constant 2 : index
    %c4_176 = arith.constant 4 : index
    %c0_177 = arith.constant 0 : index
    %191 = vector.load %arg8[%c0_174, %c2_175, %c4_176, %c0_177] : memref<1x14x14x2xf32, #tpu.memory_space<vmem>>, vector<1x8x8x2xf32>
    %192 = vector.shape_cast %191 : vector<1x8x8x2xf32> to vector<64x2xf32>
    %193 = vector.extract_strided_slice %81 {offsets = [18, 0], sizes = [1, 2], strides = [1, 1]} : vector<49x2xf32> to vector<1x2xf32>
    %194 = vector.broadcast %193 : vector<1x2xf32> to vector<64x2xf32>
    %195 = arith.mulf %192, %194 : vector<64x2xf32>
    %196 = arith.addf %190, %195 : vector<64x2xf32>
    %c0_178 = arith.constant 0 : index
    %c2_179 = arith.constant 2 : index
    %c5_180 = arith.constant 5 : index
    %c0_181 = arith.constant 0 : index
    %197 = vector.load %arg8[%c0_178, %c2_179, %c5_180, %c0_181] : memref<1x14x14x2xf32, #tpu.memory_space<vmem>>, vector<1x8x8x2xf32>
    %198 = vector.shape_cast %197 : vector<1x8x8x2xf32> to vector<64x2xf32>
    %199 = vector.extract_strided_slice %81 {offsets = [19, 0], sizes = [1, 2], strides = [1, 1]} : vector<49x2xf32> to vector<1x2xf32>
    %200 = vector.broadcast %199 : vector<1x2xf32> to vector<64x2xf32>
    %201 = arith.mulf %198, %200 : vector<64x2xf32>
    %202 = arith.addf %196, %201 : vector<64x2xf32>
    %c0_182 = arith.constant 0 : index
    %c2_183 = arith.constant 2 : index
    %c6_184 = arith.constant 6 : index
    %c0_185 = arith.constant 0 : index
    %203 = vector.load %arg8[%c0_182, %c2_183, %c6_184, %c0_185] : memref<1x14x14x2xf32, #tpu.memory_space<vmem>>, vector<1x8x8x2xf32>
    %204 = vector.shape_cast %203 : vector<1x8x8x2xf32> to vector<64x2xf32>
    %205 = vector.extract_strided_slice %81 {offsets = [20, 0], sizes = [1, 2], strides = [1, 1]} : vector<49x2xf32> to vector<1x2xf32>
    %206 = vector.broadcast %205 : vector<1x2xf32> to vector<64x2xf32>
    %207 = arith.mulf %204, %206 : vector<64x2xf32>
    %208 = arith.addf %202, %207 : vector<64x2xf32>
    %c0_186 = arith.constant 0 : index
    %c3_187 = arith.constant 3 : index
    %c0_188 = arith.constant 0 : index
    %c0_189 = arith.constant 0 : index
    %209 = vector.load %arg8[%c0_186, %c3_187, %c0_188, %c0_189] : memref<1x14x14x2xf32, #tpu.memory_space<vmem>>, vector<1x8x8x2xf32>
    %210 = vector.shape_cast %209 : vector<1x8x8x2xf32> to vector<64x2xf32>
    %211 = vector.extract_strided_slice %81 {offsets = [21, 0], sizes = [1, 2], strides = [1, 1]} : vector<49x2xf32> to vector<1x2xf32>
    %212 = vector.broadcast %211 : vector<1x2xf32> to vector<64x2xf32>
    %213 = arith.mulf %210, %212 : vector<64x2xf32>
    %214 = arith.addf %208, %213 : vector<64x2xf32>
    %c0_190 = arith.constant 0 : index
    %c3_191 = arith.constant 3 : index
    %c1_192 = arith.constant 1 : index
    %c0_193 = arith.constant 0 : index
    %215 = vector.load %arg8[%c0_190, %c3_191, %c1_192, %c0_193] : memref<1x14x14x2xf32, #tpu.memory_space<vmem>>, vector<1x8x8x2xf32>
    %216 = vector.shape_cast %215 : vector<1x8x8x2xf32> to vector<64x2xf32>
    %217 = vector.extract_strided_slice %81 {offsets = [22, 0], sizes = [1, 2], strides = [1, 1]} : vector<49x2xf32> to vector<1x2xf32>
    %218 = vector.broadcast %217 : vector<1x2xf32> to vector<64x2xf32>
    %219 = arith.mulf %216, %218 : vector<64x2xf32>
    %220 = arith.addf %214, %219 : vector<64x2xf32>
    %c0_194 = arith.constant 0 : index
    %c3_195 = arith.constant 3 : index
    %c2_196 = arith.constant 2 : index
    %c0_197 = arith.constant 0 : index
    %221 = vector.load %arg8[%c0_194, %c3_195, %c2_196, %c0_197] : memref<1x14x14x2xf32, #tpu.memory_space<vmem>>, vector<1x8x8x2xf32>
    %222 = vector.shape_cast %221 : vector<1x8x8x2xf32> to vector<64x2xf32>
    %223 = vector.extract_strided_slice %81 {offsets = [23, 0], sizes = [1, 2], strides = [1, 1]} : vector<49x2xf32> to vector<1x2xf32>
    %224 = vector.broadcast %223 : vector<1x2xf32> to vector<64x2xf32>
    %225 = arith.mulf %222, %224 : vector<64x2xf32>
    %226 = arith.addf %220, %225 : vector<64x2xf32>
    %c0_198 = arith.constant 0 : index
    %c3_199 = arith.constant 3 : index
    %c3_200 = arith.constant 3 : index
    %c0_201 = arith.constant 0 : index
    %227 = vector.load %arg8[%c0_198, %c3_199, %c3_200, %c0_201] : memref<1x14x14x2xf32, #tpu.memory_space<vmem>>, vector<1x8x8x2xf32>
    %228 = vector.shape_cast %227 : vector<1x8x8x2xf32> to vector<64x2xf32>
    %229 = vector.extract_strided_slice %81 {offsets = [24, 0], sizes = [1, 2], strides = [1, 1]} : vector<49x2xf32> to vector<1x2xf32>
    %230 = vector.broadcast %229 : vector<1x2xf32> to vector<64x2xf32>
    %231 = arith.mulf %228, %230 : vector<64x2xf32>
    %232 = arith.addf %226, %231 : vector<64x2xf32>
    %c0_202 = arith.constant 0 : index
    %c3_203 = arith.constant 3 : index
    %c4_204 = arith.constant 4 : index
    %c0_205 = arith.constant 0 : index
    %233 = vector.load %arg8[%c0_202, %c3_203, %c4_204, %c0_205] : memref<1x14x14x2xf32, #tpu.memory_space<vmem>>, vector<1x8x8x2xf32>
    %234 = vector.shape_cast %233 : vector<1x8x8x2xf32> to vector<64x2xf32>
    %235 = vector.extract_strided_slice %81 {offsets = [25, 0], sizes = [1, 2], strides = [1, 1]} : vector<49x2xf32> to vector<1x2xf32>
    %236 = vector.broadcast %235 : vector<1x2xf32> to vector<64x2xf32>
    %237 = arith.mulf %234, %236 : vector<64x2xf32>
    %238 = arith.addf %232, %237 : vector<64x2xf32>
    %c0_206 = arith.constant 0 : index
    %c3_207 = arith.constant 3 : index
    %c5_208 = arith.constant 5 : index
    %c0_209 = arith.constant 0 : index
    %239 = vector.load %arg8[%c0_206, %c3_207, %c5_208, %c0_209] : memref<1x14x14x2xf32, #tpu.memory_space<vmem>>, vector<1x8x8x2xf32>
    %240 = vector.shape_cast %239 : vector<1x8x8x2xf32> to vector<64x2xf32>
    %241 = vector.extract_strided_slice %81 {offsets = [26, 0], sizes = [1, 2], strides = [1, 1]} : vector<49x2xf32> to vector<1x2xf32>
    %242 = vector.broadcast %241 : vector<1x2xf32> to vector<64x2xf32>
    %243 = arith.mulf %240, %242 : vector<64x2xf32>
    %244 = arith.addf %238, %243 : vector<64x2xf32>
    %c0_210 = arith.constant 0 : index
    %c3_211 = arith.constant 3 : index
    %c6_212 = arith.constant 6 : index
    %c0_213 = arith.constant 0 : index
    %245 = vector.load %arg8[%c0_210, %c3_211, %c6_212, %c0_213] : memref<1x14x14x2xf32, #tpu.memory_space<vmem>>, vector<1x8x8x2xf32>
    %246 = vector.shape_cast %245 : vector<1x8x8x2xf32> to vector<64x2xf32>
    %247 = vector.extract_strided_slice %81 {offsets = [27, 0], sizes = [1, 2], strides = [1, 1]} : vector<49x2xf32> to vector<1x2xf32>
    %248 = vector.broadcast %247 : vector<1x2xf32> to vector<64x2xf32>
    %249 = arith.mulf %246, %248 : vector<64x2xf32>
    %250 = arith.addf %244, %249 : vector<64x2xf32>
    %c0_214 = arith.constant 0 : index
    %c4_215 = arith.constant 4 : index
    %c0_216 = arith.constant 0 : index
    %c0_217 = arith.constant 0 : index
    %251 = vector.load %arg8[%c0_214, %c4_215, %c0_216, %c0_217] : memref<1x14x14x2xf32, #tpu.memory_space<vmem>>, vector<1x8x8x2xf32>
    %252 = vector.shape_cast %251 : vector<1x8x8x2xf32> to vector<64x2xf32>
    %253 = vector.extract_strided_slice %81 {offsets = [28, 0], sizes = [1, 2], strides = [1, 1]} : vector<49x2xf32> to vector<1x2xf32>
    %254 = vector.broadcast %253 : vector<1x2xf32> to vector<64x2xf32>
    %255 = arith.mulf %252, %254 : vector<64x2xf32>
    %256 = arith.addf %250, %255 : vector<64x2xf32>
    %c0_218 = arith.constant 0 : index
    %c4_219 = arith.constant 4 : index
    %c1_220 = arith.constant 1 : index
    %c0_221 = arith.constant 0 : index
    %257 = vector.load %arg8[%c0_218, %c4_219, %c1_220, %c0_221] : memref<1x14x14x2xf32, #tpu.memory_space<vmem>>, vector<1x8x8x2xf32>
    %258 = vector.shape_cast %257 : vector<1x8x8x2xf32> to vector<64x2xf32>
    %259 = vector.extract_strided_slice %81 {offsets = [29, 0], sizes = [1, 2], strides = [1, 1]} : vector<49x2xf32> to vector<1x2xf32>
    %260 = vector.broadcast %259 : vector<1x2xf32> to vector<64x2xf32>
    %261 = arith.mulf %258, %260 : vector<64x2xf32>
    %262 = arith.addf %256, %261 : vector<64x2xf32>
    %c0_222 = arith.constant 0 : index
    %c4_223 = arith.constant 4 : index
    %c2_224 = arith.constant 2 : index
    %c0_225 = arith.constant 0 : index
    %263 = vector.load %arg8[%c0_222, %c4_223, %c2_224, %c0_225] : memref<1x14x14x2xf32, #tpu.memory_space<vmem>>, vector<1x8x8x2xf32>
    %264 = vector.shape_cast %263 : vector<1x8x8x2xf32> to vector<64x2xf32>
    %265 = vector.extract_strided_slice %81 {offsets = [30, 0], sizes = [1, 2], strides = [1, 1]} : vector<49x2xf32> to vector<1x2xf32>
    %266 = vector.broadcast %265 : vector<1x2xf32> to vector<64x2xf32>
    %267 = arith.mulf %264, %266 : vector<64x2xf32>
    %268 = arith.addf %262, %267 : vector<64x2xf32>
    %c0_226 = arith.constant 0 : index
    %c4_227 = arith.constant 4 : index
    %c3_228 = arith.constant 3 : index
    %c0_229 = arith.constant 0 : index
    %269 = vector.load %arg8[%c0_226, %c4_227, %c3_228, %c0_229] : memref<1x14x14x2xf32, #tpu.memory_space<vmem>>, vector<1x8x8x2xf32>
    %270 = vector.shape_cast %269 : vector<1x8x8x2xf32> to vector<64x2xf32>
    %271 = vector.extract_strided_slice %81 {offsets = [31, 0], sizes = [1, 2], strides = [1, 1]} : vector<49x2xf32> to vector<1x2xf32>
    %272 = vector.broadcast %271 : vector<1x2xf32> to vector<64x2xf32>
    %273 = arith.mulf %270, %272 : vector<64x2xf32>
    %274 = arith.addf %268, %273 : vector<64x2xf32>
    %c0_230 = arith.constant 0 : index
    %c4_231 = arith.constant 4 : index
    %c4_232 = arith.constant 4 : index
    %c0_233 = arith.constant 0 : index
    %275 = vector.load %arg8[%c0_230, %c4_231, %c4_232, %c0_233] : memref<1x14x14x2xf32, #tpu.memory_space<vmem>>, vector<1x8x8x2xf32>
    %276 = vector.shape_cast %275 : vector<1x8x8x2xf32> to vector<64x2xf32>
    %277 = vector.extract_strided_slice %81 {offsets = [32, 0], sizes = [1, 2], strides = [1, 1]} : vector<49x2xf32> to vector<1x2xf32>
    %278 = vector.broadcast %277 : vector<1x2xf32> to vector<64x2xf32>
    %279 = arith.mulf %276, %278 : vector<64x2xf32>
    %280 = arith.addf %274, %279 : vector<64x2xf32>
    %c0_234 = arith.constant 0 : index
    %c4_235 = arith.constant 4 : index
    %c5_236 = arith.constant 5 : index
    %c0_237 = arith.constant 0 : index
    %281 = vector.load %arg8[%c0_234, %c4_235, %c5_236, %c0_237] : memref<1x14x14x2xf32, #tpu.memory_space<vmem>>, vector<1x8x8x2xf32>
    %282 = vector.shape_cast %281 : vector<1x8x8x2xf32> to vector<64x2xf32>
    %283 = vector.extract_strided_slice %81 {offsets = [33, 0], sizes = [1, 2], strides = [1, 1]} : vector<49x2xf32> to vector<1x2xf32>
    %284 = vector.broadcast %283 : vector<1x2xf32> to vector<64x2xf32>
    %285 = arith.mulf %282, %284 : vector<64x2xf32>
    %286 = arith.addf %280, %285 : vector<64x2xf32>
    %c0_238 = arith.constant 0 : index
    %c4_239 = arith.constant 4 : index
    %c6_240 = arith.constant 6 : index
    %c0_241 = arith.constant 0 : index
    %287 = vector.load %arg8[%c0_238, %c4_239, %c6_240, %c0_241] : memref<1x14x14x2xf32, #tpu.memory_space<vmem>>, vector<1x8x8x2xf32>
    %288 = vector.shape_cast %287 : vector<1x8x8x2xf32> to vector<64x2xf32>
    %289 = vector.extract_strided_slice %81 {offsets = [34, 0], sizes = [1, 2], strides = [1, 1]} : vector<49x2xf32> to vector<1x2xf32>
    %290 = vector.broadcast %289 : vector<1x2xf32> to vector<64x2xf32>
    %291 = arith.mulf %288, %290 : vector<64x2xf32>
    %292 = arith.addf %286, %291 : vector<64x2xf32>
    %c0_242 = arith.constant 0 : index
    %c5_243 = arith.constant 5 : index
    %c0_244 = arith.constant 0 : index
    %c0_245 = arith.constant 0 : index
    %293 = vector.load %arg8[%c0_242, %c5_243, %c0_244, %c0_245] : memref<1x14x14x2xf32, #tpu.memory_space<vmem>>, vector<1x8x8x2xf32>
    %294 = vector.shape_cast %293 : vector<1x8x8x2xf32> to vector<64x2xf32>
    %295 = vector.extract_strided_slice %81 {offsets = [35, 0], sizes = [1, 2], strides = [1, 1]} : vector<49x2xf32> to vector<1x2xf32>
    %296 = vector.broadcast %295 : vector<1x2xf32> to vector<64x2xf32>
    %297 = arith.mulf %294, %296 : vector<64x2xf32>
    %298 = arith.addf %292, %297 : vector<64x2xf32>
    %c0_246 = arith.constant 0 : index
    %c5_247 = arith.constant 5 : index
    %c1_248 = arith.constant 1 : index
    %c0_249 = arith.constant 0 : index
    %299 = vector.load %arg8[%c0_246, %c5_247, %c1_248, %c0_249] : memref<1x14x14x2xf32, #tpu.memory_space<vmem>>, vector<1x8x8x2xf32>
    %300 = vector.shape_cast %299 : vector<1x8x8x2xf32> to vector<64x2xf32>
    %301 = vector.extract_strided_slice %81 {offsets = [36, 0], sizes = [1, 2], strides = [1, 1]} : vector<49x2xf32> to vector<1x2xf32>
    %302 = vector.broadcast %301 : vector<1x2xf32> to vector<64x2xf32>
    %303 = arith.mulf %300, %302 : vector<64x2xf32>
    %304 = arith.addf %298, %303 : vector<64x2xf32>
    %c0_250 = arith.constant 0 : index
    %c5_251 = arith.constant 5 : index
    %c2_252 = arith.constant 2 : index
    %c0_253 = arith.constant 0 : index
    %305 = vector.load %arg8[%c0_250, %c5_251, %c2_252, %c0_253] : memref<1x14x14x2xf32, #tpu.memory_space<vmem>>, vector<1x8x8x2xf32>
    %306 = vector.shape_cast %305 : vector<1x8x8x2xf32> to vector<64x2xf32>
    %307 = vector.extract_strided_slice %81 {offsets = [37, 0], sizes = [1, 2], strides = [1, 1]} : vector<49x2xf32> to vector<1x2xf32>
    %308 = vector.broadcast %307 : vector<1x2xf32> to vector<64x2xf32>
    %309 = arith.mulf %306, %308 : vector<64x2xf32>
    %310 = arith.addf %304, %309 : vector<64x2xf32>
    %c0_254 = arith.constant 0 : index
    %c5_255 = arith.constant 5 : index
    %c3_256 = arith.constant 3 : index
    %c0_257 = arith.constant 0 : index
    %311 = vector.load %arg8[%c0_254, %c5_255, %c3_256, %c0_257] : memref<1x14x14x2xf32, #tpu.memory_space<vmem>>, vector<1x8x8x2xf32>
    %312 = vector.shape_cast %311 : vector<1x8x8x2xf32> to vector<64x2xf32>
    %313 = vector.extract_strided_slice %81 {offsets = [38, 0], sizes = [1, 2], strides = [1, 1]} : vector<49x2xf32> to vector<1x2xf32>
    %314 = vector.broadcast %313 : vector<1x2xf32> to vector<64x2xf32>
    %315 = arith.mulf %312, %314 : vector<64x2xf32>
    %316 = arith.addf %310, %315 : vector<64x2xf32>
    %c0_258 = arith.constant 0 : index
    %c5_259 = arith.constant 5 : index
    %c4_260 = arith.constant 4 : index
    %c0_261 = arith.constant 0 : index
    %317 = vector.load %arg8[%c0_258, %c5_259, %c4_260, %c0_261] : memref<1x14x14x2xf32, #tpu.memory_space<vmem>>, vector<1x8x8x2xf32>
    %318 = vector.shape_cast %317 : vector<1x8x8x2xf32> to vector<64x2xf32>
    %319 = vector.extract_strided_slice %81 {offsets = [39, 0], sizes = [1, 2], strides = [1, 1]} : vector<49x2xf32> to vector<1x2xf32>
    %320 = vector.broadcast %319 : vector<1x2xf32> to vector<64x2xf32>
    %321 = arith.mulf %318, %320 : vector<64x2xf32>
    %322 = arith.addf %316, %321 : vector<64x2xf32>
    %c0_262 = arith.constant 0 : index
    %c5_263 = arith.constant 5 : index
    %c5_264 = arith.constant 5 : index
    %c0_265 = arith.constant 0 : index
    %323 = vector.load %arg8[%c0_262, %c5_263, %c5_264, %c0_265] : memref<1x14x14x2xf32, #tpu.memory_space<vmem>>, vector<1x8x8x2xf32>
    %324 = vector.shape_cast %323 : vector<1x8x8x2xf32> to vector<64x2xf32>
    %325 = vector.extract_strided_slice %81 {offsets = [40, 0], sizes = [1, 2], strides = [1, 1]} : vector<49x2xf32> to vector<1x2xf32>
    %326 = vector.broadcast %325 : vector<1x2xf32> to vector<64x2xf32>
    %327 = arith.mulf %324, %326 : vector<64x2xf32>
    %328 = arith.addf %322, %327 : vector<64x2xf32>
    %c0_266 = arith.constant 0 : index
    %c5_267 = arith.constant 5 : index
    %c6_268 = arith.constant 6 : index
    %c0_269 = arith.constant 0 : index
    %329 = vector.load %arg8[%c0_266, %c5_267, %c6_268, %c0_269] : memref<1x14x14x2xf32, #tpu.memory_space<vmem>>, vector<1x8x8x2xf32>
    %330 = vector.shape_cast %329 : vector<1x8x8x2xf32> to vector<64x2xf32>
    %331 = vector.extract_strided_slice %81 {offsets = [41, 0], sizes = [1, 2], strides = [1, 1]} : vector<49x2xf32> to vector<1x2xf32>
    %332 = vector.broadcast %331 : vector<1x2xf32> to vector<64x2xf32>
    %333 = arith.mulf %330, %332 : vector<64x2xf32>
    %334 = arith.addf %328, %333 : vector<64x2xf32>
    %c0_270 = arith.constant 0 : index
    %c6_271 = arith.constant 6 : index
    %c0_272 = arith.constant 0 : index
    %c0_273 = arith.constant 0 : index
    %335 = vector.load %arg8[%c0_270, %c6_271, %c0_272, %c0_273] : memref<1x14x14x2xf32, #tpu.memory_space<vmem>>, vector<1x8x8x2xf32>
    %336 = vector.shape_cast %335 : vector<1x8x8x2xf32> to vector<64x2xf32>
    %337 = vector.extract_strided_slice %81 {offsets = [42, 0], sizes = [1, 2], strides = [1, 1]} : vector<49x2xf32> to vector<1x2xf32>
    %338 = vector.broadcast %337 : vector<1x2xf32> to vector<64x2xf32>
    %339 = arith.mulf %336, %338 : vector<64x2xf32>
    %340 = arith.addf %334, %339 : vector<64x2xf32>
    %c0_274 = arith.constant 0 : index
    %c6_275 = arith.constant 6 : index
    %c1_276 = arith.constant 1 : index
    %c0_277 = arith.constant 0 : index
    %341 = vector.load %arg8[%c0_274, %c6_275, %c1_276, %c0_277] : memref<1x14x14x2xf32, #tpu.memory_space<vmem>>, vector<1x8x8x2xf32>
    %342 = vector.shape_cast %341 : vector<1x8x8x2xf32> to vector<64x2xf32>
    %343 = vector.extract_strided_slice %81 {offsets = [43, 0], sizes = [1, 2], strides = [1, 1]} : vector<49x2xf32> to vector<1x2xf32>
    %344 = vector.broadcast %343 : vector<1x2xf32> to vector<64x2xf32>
    %345 = arith.mulf %342, %344 : vector<64x2xf32>
    %346 = arith.addf %340, %345 : vector<64x2xf32>
    %c0_278 = arith.constant 0 : index
    %c6_279 = arith.constant 6 : index
    %c2_280 = arith.constant 2 : index
    %c0_281 = arith.constant 0 : index
    %347 = vector.load %arg8[%c0_278, %c6_279, %c2_280, %c0_281] : memref<1x14x14x2xf32, #tpu.memory_space<vmem>>, vector<1x8x8x2xf32>
    %348 = vector.shape_cast %347 : vector<1x8x8x2xf32> to vector<64x2xf32>
    %349 = vector.extract_strided_slice %81 {offsets = [44, 0], sizes = [1, 2], strides = [1, 1]} : vector<49x2xf32> to vector<1x2xf32>
    %350 = vector.broadcast %349 : vector<1x2xf32> to vector<64x2xf32>
    %351 = arith.mulf %348, %350 : vector<64x2xf32>
    %352 = arith.addf %346, %351 : vector<64x2xf32>
    %c0_282 = arith.constant 0 : index
    %c6_283 = arith.constant 6 : index
    %c3_284 = arith.constant 3 : index
    %c0_285 = arith.constant 0 : index
    %353 = vector.load %arg8[%c0_282, %c6_283, %c3_284, %c0_285] : memref<1x14x14x2xf32, #tpu.memory_space<vmem>>, vector<1x8x8x2xf32>
    %354 = vector.shape_cast %353 : vector<1x8x8x2xf32> to vector<64x2xf32>
    %355 = vector.extract_strided_slice %81 {offsets = [45, 0], sizes = [1, 2], strides = [1, 1]} : vector<49x2xf32> to vector<1x2xf32>
    %356 = vector.broadcast %355 : vector<1x2xf32> to vector<64x2xf32>
    %357 = arith.mulf %354, %356 : vector<64x2xf32>
    %358 = arith.addf %352, %357 : vector<64x2xf32>
    %c0_286 = arith.constant 0 : index
    %c6_287 = arith.constant 6 : index
    %c4_288 = arith.constant 4 : index
    %c0_289 = arith.constant 0 : index
    %359 = vector.load %arg8[%c0_286, %c6_287, %c4_288, %c0_289] : memref<1x14x14x2xf32, #tpu.memory_space<vmem>>, vector<1x8x8x2xf32>
    %360 = vector.shape_cast %359 : vector<1x8x8x2xf32> to vector<64x2xf32>
    %361 = vector.extract_strided_slice %81 {offsets = [46, 0], sizes = [1, 2], strides = [1, 1]} : vector<49x2xf32> to vector<1x2xf32>
    %362 = vector.broadcast %361 : vector<1x2xf32> to vector<64x2xf32>
    %363 = arith.mulf %360, %362 : vector<64x2xf32>
    %364 = arith.addf %358, %363 : vector<64x2xf32>
    %c0_290 = arith.constant 0 : index
    %c6_291 = arith.constant 6 : index
    %c5_292 = arith.constant 5 : index
    %c0_293 = arith.constant 0 : index
    %365 = vector.load %arg8[%c0_290, %c6_291, %c5_292, %c0_293] : memref<1x14x14x2xf32, #tpu.memory_space<vmem>>, vector<1x8x8x2xf32>
    %366 = vector.shape_cast %365 : vector<1x8x8x2xf32> to vector<64x2xf32>
    %367 = vector.extract_strided_slice %81 {offsets = [47, 0], sizes = [1, 2], strides = [1, 1]} : vector<49x2xf32> to vector<1x2xf32>
    %368 = vector.broadcast %367 : vector<1x2xf32> to vector<64x2xf32>
    %369 = arith.mulf %366, %368 : vector<64x2xf32>
    %370 = arith.addf %364, %369 : vector<64x2xf32>
    %c0_294 = arith.constant 0 : index
    %c6_295 = arith.constant 6 : index
    %c6_296 = arith.constant 6 : index
    %c0_297 = arith.constant 0 : index
    %371 = vector.load %arg8[%c0_294, %c6_295, %c6_296, %c0_297] : memref<1x14x14x2xf32, #tpu.memory_space<vmem>>, vector<1x8x8x2xf32>
    %372 = vector.shape_cast %371 : vector<1x8x8x2xf32> to vector<64x2xf32>
    %373 = vector.extract_strided_slice %81 {offsets = [48, 0], sizes = [1, 2], strides = [1, 1]} : vector<49x2xf32> to vector<1x2xf32>
    %374 = vector.broadcast %373 : vector<1x2xf32> to vector<64x2xf32>
    %375 = arith.mulf %372, %374 : vector<64x2xf32>
    %376 = arith.addf %370, %375 : vector<64x2xf32>
    %cst_298 = arith.constant dense<0.000000e+00> : vector<64xf32>
    %377 = vector.multi_reduction <add>, %376, %cst_298 [1] : vector<64x2xf32> to vector<64xf32>
    %378 = vector.shape_cast %377 : vector<64xf32> to vector<64x1xf32>
    %c0_299 = arith.constant 0 : index
    %379 = memref.load %arg5[%c0_299] : memref<1xf32, #tpu.memory_space<smem>>
    %380 = vector.broadcast %379 : f32 to vector<64x1xf32>
    %381 = arith.addf %378, %380 : vector<64x1xf32>
    %382 = arith.negf %381 : vector<64x1xf32>
    %383 = math.exp %382 : vector<64x1xf32>
    %cst_300 = arith.constant 1.000000e+00 : f32
    %384 = vector.broadcast %cst_300 : f32 to vector<64x1xf32>
    %385 = arith.addf %384, %383 : vector<64x1xf32>
    %386 = arith.divf %384, %385 : vector<64x1xf32>
    %387 = vector.broadcast %386 : vector<64x1xf32> to vector<64x8xf32>
    %388 = arith.mulf %56, %387 : vector<64x8xf32>
    %389 = vector.shape_cast %388 : vector<64x8xf32> to vector<1x64x8xf32>
    %c0_301 = arith.constant 0 : index
    %c0_302 = arith.constant 0 : index
    %c0_303 = arith.constant 0 : index
    %390 = vector.load %arg6[%c0_301, %c0_302, %c0_303] : memref<1x64x8xf32, #tpu.memory_space<vmem>>, vector<1x64x8xf32>
    tpu.vector_store %arg6[%c0_301, %c0_302, %c0_303], %389 {strides = array<i32>} : memref<1x64x8xf32, #tpu.memory_space<vmem>>, vector<1x64x8xf32>,
    return
  }
  func.func @transform_0(%arg0: i32) -> (i32, i32, i32, i32) {
    %c0_i32 = arith.constant 0 : i32
    %c0_i32_0 = arith.constant 0 : i32
    %c0_i32_1 = arith.constant 0 : i32
    %c0_i32_2 = arith.constant 0 : i32
    return %arg0, %c0_i32, %c0_i32_0, %c0_i32_1 : i32, i32, i32, i32
  }
  func.func @transform_1(%arg0: i32) -> (i32, i32) {
    %c0_i32 = arith.constant 0 : i32
    %c0_i32_0 = arith.constant 0 : i32
    %c0_i32_1 = arith.constant 0 : i32
    return %c0_i32, %c0_i32_0 : i32, i32
  }
  func.func @transform_2(%arg0: i32) -> (i32, i32) {
    %c0_i32 = arith.constant 0 : i32
    %c0_i32_0 = arith.constant 0 : i32
    %c0_i32_1 = arith.constant 0 : i32
    return %c0_i32, %c0_i32_0 : i32, i32
  }
  func.func @transform_3(%arg0: i32) -> (i32, i32) {
    %c0_i32 = arith.constant 0 : i32
    %c0_i32_0 = arith.constant 0 : i32
    %c0_i32_1 = arith.constant 0 : i32
    return %c0_i32, %c0_i32_0 : i32, i32
  }
  func.func @transform_4(%arg0: i32) -> i32 {
    %c0_i32 = arith.constant 0 : i32
    %c0_i32_0 = arith.constant 0 : i32
    return %c0_i32 : i32
  }
  func.func @transform_5(%arg0: i32) -> (i32, i32, i32) {
    %c0_i32 = arith.constant 0 : i32
    %c0_i32_0 = arith.constant 0 : i32
    %c0_i32_1 = arith.constant 0 : i32
    return %arg0, %c0_i32, %c0_i32_0 : i32, i32, i32
  }
}

</mosaic_0001>

<bundles_post_ra>
// kernel: tpu_custom_call.1
= control target key start
LH: loop header
LB: loop body
LE: loop exit
PB: predicated region body
PF: predicated region fallthrough
CT: control target
= control target key end

     0   :  { %s4471_s0 = inlined_call_operand.hbm [shape: f32[4,8,8,8], index: 0, kind: input, shape index: {}]   ;;  %s4472_s1 = inlined_call_operand.vmem [shape: f32[72,8], index: 1, kind: input, shape index: {}]   ;;  %s4473_s2 = inlined_call_operand.vmem [shape: f32[1,8], index: 2, kind: input, shape index: {}]   ;;  %s4474_s3 = inlined_call_operand.vmem [shape: f32[49,2], index: 3, kind: input, shape index: {}]   ;;  %s4475_s4 = inlined_call_operand.<no memory space> [shape: f32[1], index: 4, kind: input, shape index: {}]   ;;  %s4476_s5 = inlined_call_operand.vmem [shape: f32[4,64,8], index: 5, kind: output, shape index: {}]  }
   0x1   :  { %10 = sst [smem:[#allocation4]] %s4475_s4 }
   0x2   :  { %11 = vsyncpa [#allocation6], 0 }
   0x3   :  { %13 = vsyncpa [#allocation6 + $0x1], 0  ;;  %s2920_s20 = smov 0   ;;  %s2922_s21 = smov 0  }
   0x4   :  { %s2924_s22 = smov 0   ;;  %s2926_s23 = smov 0  }
   0x5 LB: > { %s2939_s4 = sadd.s32 4294967295, %s2882_s23   ;;  %s2942_s24 = sadd.s32 1, %s2882_s23   ;;  %s2882_s23 = sphi %s2926_s23, %s4815_s23   ;;  %s2878_s22 = sphi %s2924_s22, %s4814_s22   ;;  %s2874_s21 = sphi %s2922_s21, %s4813_s21   ;;  %s2870_s20 = sphi %s2920_s20, %s4812_s20  }
   0x6   : > { %s23_s25 = ssub.s32 %s2882_s23, %s2942_s24  ;;  %s26_s26 = sadd.s32 1, %s2878_s22 }
   0x7   : > { %p24_p0 = scmp.eq.s32.totalorder %s23_s25, 0  ;;  %p33_p1 = scmp.ne.s32.totalorder %s2878_s22, %s2874_s21 }
   0x8   : > { %p34_p2 = scmp.eq.s32.totalorder %s2882_s23, 0  ;;  %p39_p3 = scmp.ne.s32.totalorder %s2874_s21, %s2870_s20 }
   0x9   : > { %s2952_s27 = scalar_select %p24_p0, %s2878_s22, %s26_s26  }
   0xa   : > { %p2954_p4 = por %p34_p2, %p33_p1  ;;  %p40_p5 = scmp.eq.s32.totalorder %s2939_s4, 0 }
   0xb   : > { %p2747_p6 = scmp.lt.s32.totalorder %s2882_s23, 4  ;;  %s185_s30 = sand.u32 1, %s2878_s22  }
   0xc   : > { %p2960_p7 = por %p40_p5, %p39_p3  ;;  %s2647_s6 = sshll.u32 %s185_s30, 6 }
   0xd   : > { %s2736_s7 = sshll.u32 %s2882_s23, 6  ;;  %s189_s11 = scalar_lea.vmem [#allocation5], %s2647_s6 }
   0xe   : > { %s194_s10 = scalar_lea.hbm %s4471_s0, %s2736_s7  ;;  %s197_s12 = sshll.u32 %s189_s11, 4  ;;  %s198_s12 = int_to_ptr.vmem [resolvable:$true] %s197_s12 }
   0xf   : > { %s195_s13 = sshll.u32 %s194_s10, 4  ;;  %p2971_p8 = pnand %p2747_p6, %p2954_p4  ;;  %s196_s13 = int_to_ptr.hbm [resolvable:$true] %s195_s13 }
  0x10   : > { %p2650_p9 = scmp.ge.s32.totalorder %s2882_s23, 1  ;;  %s186_s15 = scalar_lea.sflag [#allocation6], %s185_s30 }
  0x11   : > { %s2818_s16 = sshra.s32 %s196_s13, 4  ;;  %p2822_p11 = pneg %p2971_p8  ;;  %s2819_s16 = int_to_ptr.hbm [resolvable:$true] %s2818_s16 }
  0x12   : > { %s2820_s17 = scalar_lea.hbm %s2819_s16, 64  ;;  %s2825_s20 = scalar_lea.hbm %s4471_s0, 256 }
  0x13   : > { %p2821_p10 = scmp.ne.s32.totalorder %s2819_s16, %s2820_s17  ;;  %p2826_p0 = scmp.lt.s32.totalorder %s2819_s16, %s4471_s0 }
  0x14   : > { %p2827_p1 = scmp.lt.s32.totalorder %s2825_s20, %s2820_s17 }
  0x15   : > { %p2823_p12 = pnand %p2822_p11, %p2821_p10 }
  0x16   : > { %p2828_p2 = por %p2827_p1, %p2826_p0 }
  0x17   : > { %p2824_p13 = pneg %p2823_p12 }
  0x19   : > { %p2829_p3 = pnand %p2828_p2, %p2824_p13 }
  0x1b   : > { %2832 = shalt.err (!%p2829_p3)
}
  0x1c   : > { %s2884_s28 = smov 128   ;;  %s2885_s30 = smov 8  }
  0x1d   : > { %2746 = dma.hbm_to_vmem [thread:$0]  (!%p2971_p8), %s196_s13, 1024, %s198_s12, %s186_s15, %s2884_s28, %s2884_s28, %s2885_s30  }
  0x1e   : > { %p205_p4 = scmp.lt.s32.totalorder %s2882_s23, 5 }
  0x20   : > { %p206_p5 = pnand %p2650_p9, %p205_p4 }
  0x22   : > { %209 = sbr.rel (%p206_p5) target bundleno = 766 (0x2fe), region = 40 }
  0x27   : > { %s211_s6 = sand.u32 1, %s2874_s21  }
  0x28   : > { %s2651_s7 = sshll.u32 %s211_s6, 6  ;;  %s212_s8 = scalar_lea.sflag [#allocation6], %s211_s6 }
  0x29   : > { %s2990_s9 = scalar_lea.vmem [#allocation5], %s2651_s7 }
  0x2a   : > { %2865 = dma.done.wait (%p2960_p7), %s212_s8, 1024  }
  0x2b   : > { %2867 = vsyncadd (%p2960_p7), %s212_s8, 4294966272  ;;  %vm248_vm0 = vcmask 64512   ;;  %vm250_vm1 = vcmask 60416   ;;  %v2886_v0 = vmov 0.0   ;;  %v310_v1 = vld [vmem:[%s4472_s1 + $0x8] sm:$0xff]  ;;  %v277_v2 = vld [vmem:[%s2990_s9] sm:$0xff] }
  0x2c   : > { %249 = vst.msk [vmem:[#allocation2] sm:$0xff] %vm248_vm0, %v2886_v0  ;;  %v279_v3 = vld [vmem:[%s2990_s9 + $0x10] sm:$0xff]  ;;  %2738 = vmatpush.msra.mxu1 %v310_v1  ;;  %2739 = vmatpush.msra.mxu2 %v310_v1  ;;  %v281_v5 = vld [vmem:[%s2990_s9 + $0x20] sm:$0xff]  ;;  %v531_v6 = vld [vmem:[%s4472_s1 + $0x18] sm:$0xff]  ;;  %vm260_vm2 = vcmask 58368   ;;  %vm1097_vm3 = vcmask 15360  }
  0x2d   : > { %251 = vst.msk [vmem:[#allocation2 + $0x8] sm:$0xf] %vm250_vm1, %v2886_v0  ;;  %v449_v4 = vld [vmem:[%s4472_s1 + $0x10] sm:$0xff]  ;;  %2740 = vmatpush.msra.mxu3 %v310_v1  ;;  %v301_v7 = vld [vmem:[%s4472_s1] sm:$0xff]  ;;  %v278_v8 = vld [vmem:[%s2990_s9 + $0x8] sm:$0xff]  ;;  %350 = vmatpush.msra.mxu0 %v310_v1  ;;  %vm1099_vm4 = vcmask 13312  }
  0x2e   : > { %252 = vst.msk [vmem:[#allocation2 + $0x10] sm:$0xff] %vm248_vm0, %v2886_v0  ;;  %489 = vmatpush.msrb.mxu2 %v449_v4  ;;  %v280_v9 = vld [vmem:[%s2990_s9 + $0x18] sm:$0xff]  ;;  %415 = vmatpush.msrb.mxu1 %v301_v7  ;;  %v613_v11 = vld [vmem:[%s4472_s1 + $0x20] sm:$0xff]  ;;  %v282_v12 = vld [vmem:[%s2990_s9 + $0x28] sm:$0xff]  ;;  %vm1113_vm5 = vcmask 10240   ;;  %s4375_s28 = sld [smem:[#allocation4]] }
  0x2f   : > { %253 = vst.msk [vmem:[#allocation2 + $0x18] sm:$0xf] %vm250_vm1, %v2886_v0  ;;  %571 = vmatpush.msrb.mxu3 %v531_v6  ;;  %653 = vmatpush.msrb.mxu0 %v613_v11  ;;  %v942_v13 = vld [vmem:[%s4472_s1 + $0x40] sm:$0xff]  ;;  %v695_v14 = vld [vmem:[%s4472_s1 + $0x28] sm:$0xff]  ;;  %v778_v16 = vld [vmem:[%s4472_s1 + $0x30] sm:$0xff]  ;;  %p243_p6 = scmp.lt.s32.totalorder %s2939_s4, 3 }
  0x30   : > { %255 = vst.msk [vmem:[#allocation2 + $0xa0] sm:$0xff] %vm248_vm0, %v2886_v0  ;;  %v860_v18 = vld [vmem:[%s4472_s1 + $0x38] sm:$0xff]  ;;  %v283_v30 = vld [vmem:[%s2990_s9 + $0x30] sm:$0xff] }
  0x31   : > { %256 = vst.msk [vmem:[#allocation2 + $0xa8] sm:$0xf] %vm250_vm1, %v2886_v0  ;;  %v284_v33 = vld [vmem:[%s2990_s9 + $0x38] sm:$0xff]  ;;  %s4817_s4 = smov (!%p243_p6, %s2939_s4), 3 }
  0x32   : > { %257 = vst.msk [vmem:[#allocation2 + $0xb0] sm:$0xff] %vm248_vm0, %v2886_v0  ;;  %s2737_s30 = sshll.u32 %s4817_s4, 6 }
  0x33   : > { %285 = vst.msk [vmem:[#allocation2 + $0x22] sm:$0xff] %vm248_vm0, %v277_v2  ;;  %v293_v24 = vld [vmem:[#allocation2] sm:$0xff]  ;;  %s4426_s8 = scalar_lea.vmem %s4476_s5, %s2737_s30 }
  0x34   : > { %287 = vst.msk [vmem:[#allocation2 + $0x42] sm:$0xff] %vm248_vm0, %v279_v3  ;;  %v302_v10 = vld [vmem:[#allocation2 + $0x2] sm:$0xff] }
  0x35   : > { %289 = vst.msk [vmem:[#allocation2 + $0x62] sm:$0xff] %vm248_vm0, %v281_v5  ;;  %2654 = vmatmul.msk.f32.vlgmr.msra.gmra.mxu0 %vm248_vm0, %v302_v10  ;;  %v441_v25 = vld [vmem:[#allocation2 + $0x4] sm:$0xff]  ;;  %v294_v27 = vld [vmem:[#allocation2 + $0x10] sm:$0xff] }
  0x36   : > { %286 = vst.msk [vmem:[#allocation2 + $0x32] sm:$0xff] %vm248_vm0, %v278_v8  ;;  %982 = vmatpush.msra.mxu0 %v942_v13  ;;  %v303_v20 = vld [vmem:[#allocation2 + $0x12] sm:$0xff] }
  0x37   : > { %288 = vst.msk [vmem:[#allocation2 + $0x52] sm:$0xff] %vm248_vm0, %v280_v9  ;;  %v442_v28 = vld [vmem:[#allocation2 + $0x14] sm:$0xff]  ;;  %v776_v51 = vld [vmem:[#allocation2 + $0xa0] sm:$0xff] }
  0x38   : > { %258 = vst.msk [vmem:[#allocation2 + $0xb8] sm:$0xf] %vm250_vm1, %v2886_v0  ;;  %v940_v49 = vld [vmem:[#allocation2 + $0xa4] sm:$0xff] }
  0x39   : > { %290 = vst.msk [vmem:[#allocation2 + $0x72] sm:$0xff] %vm248_vm0, %v282_v12  ;;  %v858_v52 = vld [vmem:[#allocation2 + $0xa2] sm:$0xff]  ;;  %v777_v58 = vld [vmem:[#allocation2 + $0xb0] sm:$0xff] }
  0x3a   : > { %v304_v15 = vld [vmem:[#allocation2 + $0x22] sm:$0xff]  ;;  %261 = vst.msk [vmem:[#allocation2 + $0x20] sm:$0x3] %vm260_vm2, %v2886_v0 }
  0x3b   : > { %2656 = vmatmul.msk.f32.vlgmr.msra.gmra.mxu1 %vm248_vm0, %v304_v15  ;;  %v3052_v17 = vld [vmem:[#allocation2 + $0x42] sm:$0xff]  ;;  %262 = vst.msk [vmem:[#allocation2 + $0x30] sm:$0x3] %vm260_vm2, %v2886_v0 }
  0x3c   : > { %2658 = vmatmul.msk.f32.vlgmr.msra.gmra.mxu2 %vm248_vm0, %v3052_v17  ;;  %v3061_v19 = vld [vmem:[#allocation2 + $0x62] sm:$0xff]  ;;  %263 = vst.msk [vmem:[#allocation2 + $0x40] sm:$0x3] %vm260_vm2, %v2886_v0  ;;  %735 = vmatpush.msra.mxu1 %v695_v14 }
  0x3d   : > { %2660 = vmatmul.msk.f32.vlgmr.msra.gmra.mxu3 %vm248_vm0, %v3061_v19  ;;  %818 = vmatpush.msra.mxu2 %v778_v16  ;;  %264 = vst.msk [vmem:[#allocation2 + $0x50] sm:$0x3] %vm260_vm2, %v2886_v0  ;;  %v305_v21 = vld [vmem:[#allocation2 + $0x32] sm:$0xff] }
  0x3e   : > { %265 = vst.msk [vmem:[#allocation2 + $0x60] sm:$0x3] %vm260_vm2, %v2886_v0  ;;  %900 = vmatpush.msra.mxu3 %v860_v18  ;;  %2655 = vmatmul.msk.f32.gmra.mxu0 %vm248_vm0, %v303_v20  ;;  %v3076_v22 = vld [vmem:[#allocation2 + $0x52] sm:$0xff] }
  0x3f   : > { %266 = vst.msk [vmem:[#allocation2 + $0x70] sm:$0x3] %vm260_vm2, %v2886_v0  ;;  %v941_v54 = vld [vmem:[#allocation2 + $0xb4] sm:$0xff] }
  0x40   : > { %267 = vst.msk [vmem:[#allocation2 + $0x80] sm:$0x3] %vm260_vm2, %v2886_v0  ;;  %v3080_v23 = vld [vmem:[#allocation2 + $0x72] sm:$0xff] }
  0x41   : > { %268 = vst.msk [vmem:[#allocation2 + $0x90] sm:$0x3] %vm260_vm2, %v2886_v0  ;;  %v523_v26 = vld [vmem:[#allocation2 + $0x20] sm:$0xff]  ;;  %v859_v59 = vld [vmem:[#allocation2 + $0xb2] sm:$0xff] }
  0x42   : > { %269 = vst.msk [vmem:[#allocation2 + $0x2a] sm:$0x3] %vm260_vm2, %v2886_v0  ;;  %v524_v29 = vld [vmem:[#allocation2 + $0x30] sm:$0xff] }
  0x43   : > { %2657 = vmatmul.msk.f32.gmra.mxu1 %vm248_vm0, %v305_v21  ;;  %270 = vst.msk [vmem:[#allocation2 + $0x3a] sm:$0x3] %vm260_vm2, %v2886_v0  ;;  %v525_v32 = vld [vmem:[#allocation2 + $0x40] sm:$0xff] }
  0x44   : > { %2659 = vmatmul.msk.f32.gmra.mxu2 %vm248_vm0, %v3076_v22  ;;  %271 = vst.msk [vmem:[#allocation2 + $0x4a] sm:$0x3] %vm260_vm2, %v2886_v0  ;;  %v526_v35 = vld [vmem:[#allocation2 + $0x50] sm:$0xff] }
  0x45   : > { %2661 = vmatmul.msk.f32.gmra.mxu3 %vm248_vm0, %v3080_v23  ;;  %272 = vst.msk [vmem:[#allocation2 + $0x5a] sm:$0x3] %vm260_vm2, %v2886_v0  ;;  %v527_v37 = vld [vmem:[#allocation2 + $0x60] sm:$0xff] }
  0x46   : > { %273 = vst.msk [vmem:[#allocation2 + $0x6a] sm:$0x3] %vm260_vm2, %v2886_v0  ;;  %2686 = vmatmul.msk.f32.vlgmr.msrb.gmra.mxu0 %vm248_vm0, %v304_v15  ;;  %v528_v39 = vld [vmem:[#allocation2 + $0x70] sm:$0xff] }
  0x47   : > { %274 = vst.msk [vmem:[#allocation2 + $0x7a] sm:$0x3] %vm260_vm2, %v2886_v0 }
  0x48   : > { %275 = vst.msk [vmem:[#allocation2 + $0x8a] sm:$0x3] %vm260_vm2, %v2886_v0 }
  0x49   : > { %276 = vst.msk [vmem:[#allocation2 + $0x9a] sm:$0x3] %vm260_vm2, %v2886_v0  ;;  %v443_v31 = vld [vmem:[#allocation2 + $0x24] sm:$0xff] }
  0x4a   : > { %291 = vst.msk [vmem:[#allocation2 + $0x82] sm:$0xff] %vm248_vm0, %v283_v30  ;;  %v444_v34 = vld [vmem:[#allocation2 + $0x34] sm:$0xff] }
  0x4b   : > { %2662 = vmatmul.msk.f32.vlgmr.msrb.gmra.mxu1 %vm248_vm0, %v293_v24  ;;  %292 = vst.msk [vmem:[#allocation2 + $0x92] sm:$0xff] %vm248_vm0, %v284_v33  ;;  %v445_v36 = vld [vmem:[#allocation2 + $0x44] sm:$0xff] }
  0x4c   : > { %2670 = vmatmul.msk.f32.vlgmr.msrb.gmra.mxu2 %vm248_vm0, %v441_v25  ;;  %v446_v38 = vld [vmem:[#allocation2 + $0x54] sm:$0xff]  ;;  %1098 = vst.msk [vmem:[#allocation3] sm:$0xff] %vm1097_vm3, %v2886_v0 }
  0x4d   : > { %2678 = vmatmul.msk.f32.vlgmr.msrb.gmra.mxu3 %vm248_vm0, %v523_v26  ;;  %v447_v41 = vld [vmem:[#allocation2 + $0x64] sm:$0xff]  ;;  %1100 = vst.msk [vmem:[#allocation3 + $0x8] sm:$0x3f] %vm1099_vm4, %v2886_v0 }
  0x4e   : > { %2687 = vmatmul.msk.f32.gmra.mxu0 %vm248_vm0, %v305_v21  ;;  %v448_v44 = vld [vmem:[#allocation2 + $0x74] sm:$0xff]  ;;  %1101 = vst.msk [vmem:[#allocation3 + $0x10] sm:$0xff] %vm1097_vm3, %v2886_v0 }
  0x4f   : > { %1102 = vst.msk [vmem:[#allocation3 + $0x18] sm:$0x3f] %vm1099_vm4, %v2886_v0 }
  0x50   : > { %1103 = vst.msk [vmem:[#allocation3 + $0x20] sm:$0xff] %vm1097_vm3, %v2886_v0 }
  0x51   : > { %v611_v40 = vld [vmem:[#allocation2 + $0x82] sm:$0xff]  ;;  %1104 = vst.msk [vmem:[#allocation3 + $0x28] sm:$0x3f] %vm1099_vm4, %v2886_v0 }
  0x52   : > { %v529_v42 = vld [vmem:[#allocation2 + $0x80] sm:$0xff]  ;;  %v612_v43 = vld [vmem:[#allocation2 + $0x92] sm:$0xff]  ;;  %1106 = vst.msk [vmem:[#allocation3 + $0xb0] sm:$0xff] %vm1097_vm3, %v2886_v0 }
  0x53   : > { %2663 = vmatmul.msk.f32.gmra.mxu1 %vm248_vm0, %v294_v27  ;;  %v530_v45 = vld [vmem:[#allocation2 + $0x90] sm:$0xff]  ;;  %v938_v46 = vld [vmem:[#allocation2 + $0x84] sm:$0xff]  ;;  %1107 = vst.msk [vmem:[#allocation3 + $0xb8] sm:$0x3f] %vm1099_vm4, %v2886_v0 }
  0x54   : > { %2671 = vmatmul.msk.f32.gmra.mxu2 %vm248_vm0, %v442_v28  ;;  %v939_v47 = vld [vmem:[#allocation2 + $0x94] sm:$0xff]  ;;  %1108 = vst.msk [vmem:[#allocation3 + $0xc0] sm:$0xff] %vm1097_vm3, %v2886_v0 }
  0x55   : > { %2679 = vmatmul.msk.f32.gmra.mxu3 %vm248_vm0, %v524_v29  ;;  %1109 = vst.msk [vmem:[#allocation3 + $0xc8] sm:$0x3f] %vm1099_vm4, %v2886_v0 }
  0x56   : > { %2688 = vmatmul.msk.f32.gmra.mxu0 %vm248_vm0, %v3052_v17  ;;  %1110 = vst.msk [vmem:[#allocation3 + $0xd0] sm:$0xff] %vm1097_vm3, %v2886_v0 }
  0x57   : > { %1111 = vst.msk [vmem:[#allocation3 + $0xd8] sm:$0x3f] %vm1099_vm4, %v2886_v0 }
  0x58   : > { %1114 = vst.msk [vmem:[#allocation3 + $0x30] sm:$0x7] %vm1113_vm5, %v2886_v0 }
  0x59   : > { %1115 = vst.msk [vmem:[#allocation3 + $0x40] sm:$0x7] %vm1113_vm5, %v2886_v0 }
  0x5a   : > { %1116 = vst.msk [vmem:[#allocation3 + $0x50] sm:$0x7] %vm1113_vm5, %v2886_v0 }
  0x5b   : > { %2664 = vmatmul.msk.f32.gmra.mxu1 %vm248_vm0, %v523_v26  ;;  %1122 = vst.msk [vmem:[#allocation3 + $0x3b] sm:$0x7] %vm1113_vm5, %v2886_v0 }
  0x5c   : > { %2672 = vmatmul.msk.f32.gmra.mxu2 %vm248_vm0, %v443_v31  ;;  %1123 = vst.msk [vmem:[#allocation3 + $0x4b] sm:$0x7] %vm1113_vm5, %v2886_v0 }
  0x5d   : > { %2680 = vmatmul.msk.f32.gmra.mxu3 %vm248_vm0, %v525_v32  ;;  %1117 = vst.msk [vmem:[#allocation3 + $0x60] sm:$0x7] %vm1113_vm5, %v2886_v0 }
  0x5e   : > { %2689 = vmatmul.msk.f32.gmra.mxu0 %vm248_vm0, %v3076_v22  ;;  %1118 = vst.msk [vmem:[#allocation3 + $0x70] sm:$0x7] %vm1113_vm5, %v2886_v0 }
  0x5f   : > { %1119 = vst.msk [vmem:[#allocation3 + $0x80] sm:$0x7] %vm1113_vm5, %v2886_v0 }
  0x60   : > { %1120 = vst.msk [vmem:[#allocation3 + $0x90] sm:$0x7] %vm1113_vm5, %v2886_v0 }
  0x61   : > { %1121 = vst.msk [vmem:[#allocation3 + $0xa0] sm:$0x7] %vm1113_vm5, %v2886_v0 }
  0x62   : > { %1124 = vst.msk [vmem:[#allocation3 + $0x5b] sm:$0x7] %vm1113_vm5, %v2886_v0 }
  0x63   : > { %2665 = vmatmul.msk.f32.gmra.mxu1 %vm248_vm0, %v524_v29  ;;  %1125 = vst.msk [vmem:[#allocation3 + $0x6b] sm:$0x7] %vm1113_vm5, %v2886_v0 }
  0x64   : > { %2673 = vmatmul.msk.f32.gmra.mxu2 %vm248_vm0, %v444_v34  ;;  %1126 = vst.msk [vmem:[#allocation3 + $0x7b] sm:$0x7] %vm1113_vm5, %v2886_v0 }
  0x65   : > { %2681 = vmatmul.msk.f32.gmra.mxu3 %vm248_vm0, %v526_v35  ;;  %1127 = vst.msk [vmem:[#allocation3 + $0x8b] sm:$0x7] %vm1113_vm5, %v2886_v0 }
  0x66   : > { %2690 = vmatmul.msk.f32.gmra.mxu0 %vm248_vm0, %v3061_v19  ;;  %1128 = vst.msk [vmem:[#allocation3 + $0x9b] sm:$0x7] %vm1113_vm5, %v2886_v0 }
  0x67   : > { %1129 = vst.msk [vmem:[#allocation3 + $0xab] sm:$0x7] %vm1113_vm5, %v2886_v0  ;;  %v3439_v0 = vld [vmem:[%s4474_s3 + $0x10] sm:$0xff] }
  0x6b   : > { %2666 = vmatmul.msk.f32.gmra.mxu1 %vm248_vm0, %v525_v32 }
  0x6c   : > { %2674 = vmatmul.msk.f32.gmra.mxu2 %vm248_vm0, %v445_v36 }
  0x6d   : > { %2682 = vmatmul.msk.f32.gmra.mxu3 %vm248_vm0, %v527_v37 }
  0x6e   : > { %2691 = vmatmul.msk.f32.gmra.mxu0 %vm248_vm0, %v3080_v23 }
  0x73   : > { %2667 = vmatmul.msk.f32.gmra.mxu1 %vm248_vm0, %v526_v35 }
  0x74   : > { %2675 = vmatmul.msk.f32.gmra.mxu2 %vm248_vm0, %v446_v38 }
  0x75   : > { %2683 = vmatmul.msk.f32.gmra.mxu3 %vm248_vm0, %v528_v39 }
  0x76   : > { %2692 = vmatmul.msk.f32.gmra.mxu0 %vm248_vm0, %v611_v40 }
  0x7b   : > { %2668 = vmatmul.msk.f32.gmra.mxu1 %vm248_vm0, %v527_v37 }
  0x7c   : > { %2676 = vmatmul.msk.f32.gmra.mxu2 %vm248_vm0, %v447_v41 }
  0x7d   : > { %2684 = vmatmul.msk.f32.gmra.mxu3 %vm248_vm0, %v529_v42 }
  0x7e   : > { %2693 = vmatmul.msk.f32.gmra.mxu0 %vm248_vm0, %v612_v43 }
  0x83   : > { %2669 = vmatmul.msk.f32.gmra.mxu1 %vm248_vm0, %v528_v39 }
  0x84   : > { %2677 = vmatmul.msk.f32.gmra.mxu2 %vm248_vm0, %v448_v44 }
  0x85   : > { %2685 = vmatmul.msk.f32.gmra.mxu3 %vm248_vm0, %v530_v45 }
  0x86   : > { %2718 = vmatmul.msk.f32.vlgmr.msra.gmra.mxu0 %vm248_vm0, %v445_v36 }
  0x8b   : > { %2694 = vmatmul.msk.f32.vlgmr.msra.gmra.mxu1 %vm248_vm0, %v443_v31 }
  0x8c   : > { %2702 = vmatmul.msk.f32.vlgmr.msra.gmra.mxu2 %vm248_vm0, %v525_v32 }
  0x8d   : > { %2710 = vmatmul.msk.f32.vlgmr.msra.gmra.mxu3 %vm248_vm0, %v3052_v17 }
  0x8e   : > { %2719 = vmatmul.msk.f32.gmra.mxu0 %vm248_vm0, %v446_v38 }
  0x93   : > { %2695 = vmatmul.msk.f32.gmra.mxu1 %vm248_vm0, %v444_v34 }
  0x94   : > { %2703 = vmatmul.msk.f32.gmra.mxu2 %vm248_vm0, %v526_v35 }
  0x95   : > { %2711 = vmatmul.msk.f32.gmra.mxu3 %vm248_vm0, %v3076_v22 }
  0x96   : > { %2720 = vmatmul.msk.f32.gmra.mxu0 %vm248_vm0, %v447_v41 }
  0x9b   : > { %2696 = vmatmul.msk.f32.gmra.mxu1 %vm248_vm0, %v445_v36 }
  0x9c   : > { %2704 = vmatmul.msk.f32.gmra.mxu2 %vm248_vm0, %v527_v37 }
  0x9d   : > { %2712 = vmatmul.msk.f32.gmra.mxu3 %vm248_vm0, %v3061_v19 }
  0x9e   : > { %2721 = vmatmul.msk.f32.gmra.mxu0 %vm248_vm0, %v448_v44 }
  0xa3   : > { %2697 = vmatmul.msk.f32.gmra.mxu1 %vm248_vm0, %v446_v38 }
  0xa4   : > { %2705 = vmatmul.msk.f32.gmra.mxu2 %vm248_vm0, %v528_v39 }
  0xa5   : > { %2713 = vmatmul.msk.f32.gmra.mxu3 %vm248_vm0, %v3080_v23 }
  0xa6   : > { %2722 = vmatmul.msk.f32.gmra.mxu0 %vm248_vm0, %v938_v46 }
  0xab   : > { %2698 = vmatmul.msk.f32.gmra.mxu1 %vm248_vm0, %v447_v41 }
  0xac   : > { %2706 = vmatmul.msk.f32.gmra.mxu2 %vm248_vm0, %v529_v42 }
  0xad   : > { %2714 = vmatmul.msk.f32.gmra.mxu3 %vm248_vm0, %v611_v40 }
  0xae   : > { %2723 = vmatmul.msk.f32.gmra.mxu0 %vm248_vm0, %v939_v47 }
  0xb2   : > { %v352_v48 = vpop.f32.mrf.mxu0 }
  0xb3   : > { %2699 = vmatmul.msk.f32.gmra.mxu1 %vm248_vm0, %v448_v44 }
  0xb4   : > { %2707 = vmatmul.msk.f32.gmra.mxu2 %vm248_vm0, %v530_v45 }
  0xb5   : > { %2715 = vmatmul.msk.f32.gmra.mxu3 %vm248_vm0, %v612_v43 }
  0xb6   : > { %2724 = vmatmul.msk.f32.gmra.mxu0 %vm248_vm0, %v940_v49 }
  0xb8   : > { %v3172_v50 = vpop.f32.mrf.mxu1 }
  0xbb   : > { %2700 = vmatmul.msk.f32.gmra.mxu1 %vm248_vm0, %v938_v46  ;;  %v355_v53 = vpop.f32.mrf.mxu0 }
  0xbc   : > { %2708 = vmatmul.msk.f32.gmra.mxu2 %vm248_vm0, %v776_v51 }
  0xbd   : > { %2716 = vmatmul.msk.f32.gmra.mxu3 %vm248_vm0, %v858_v52 }
  0xbe   : > { %2725 = vmatmul.msk.f32.gmra.mxu0 %vm248_vm0, %v941_v54 }
  0xbf   : > { %v3177_v55 = vpop.f32.mrf.mxu2 }
  0xc0   : > { %v3180_v56 = vpop.f32.mrf.mxu1  ;;  %v3182_v57 = vpop.f32.mrf.mxu3 }
  0xc3   : > { %2701 = vmatmul.msk.f32.gmra.mxu1 %vm248_vm0, %v939_v47  ;;  %v655_v60 = vpop.f32.mrf.mxu0 }
  0xc4   : > { %2709 = vmatmul.msk.f32.gmra.mxu2 %vm248_vm0, %v777_v58 }
  0xc5   : > { %2717 = vmatmul.msk.f32.gmra.mxu3 %vm248_vm0, %v859_v59 }
  0xc7   : > { %v3187_v61 = vpop.f32.mrf.mxu2 }
  0xc8   : > { %v3189_v62 = vpop.f32.mrf.mxu3  ;;  %v417_v63 = vpop.f32.mrf.mxu1 }
  0xc9   : > { %v418_v29 = vadd.f32 %v417_v63, %v352_v48  ;;  %v3229_v48 = vld [vmem:[%s4473_s2] ss:$0 sm:$0xff] }
  0xcb   : > { %v658_v1 = vpop.f32.mrf.mxu0 }
  0xcf   : > { %v491_v2 = vpop.f32.mrf.mxu2 }
  0xd0   : > { %v420_v3 = vpop.f32.mrf.mxu1  ;;  %v573_v4 = vpop.f32.mrf.mxu3  ;;  %v515_v30 = vadd.f32 %v491_v2, %v418_v29 }
  0xd1   : > { %v421_v36 = vadd.f32 %v420_v3, %v355_v53 }
  0xd2   : > { %v597_v33 = vadd.f32 %v573_v4, %v515_v30 }
  0xd3   : > { %v661_v5 = vpop.f32.mrf.mxu0 }
  0xd4   : > { %v679_v37 = vadd.f32 %v655_v60, %v597_v33 }
  0xd7   : > { %v494_v6 = vpop.f32.mrf.mxu2 }
  0xd8   : > { %v423_v7 = vpop.f32.mrf.mxu1  ;;  %v576_v8 = vpop.f32.mrf.mxu3  ;;  %v516_v38 = vadd.f32 %v494_v6, %v421_v36 }
  0xd9   : > { %v424_v46 = vadd.f32 %v423_v7, %v3172_v50 }
  0xda   : > { %v598_v42 = vadd.f32 %v576_v8, %v516_v38 }
  0xdb   : > { %v3191_v9 = vpop.f32.mrf.mxu0 }
  0xdc   : > { %v680_v49 = vadd.f32 %v658_v1, %v598_v42 }
  0xdf   : > { %v497_v10 = vpop.f32.mrf.mxu2 }
  0xe0   : > { %v426_v11 = vpop.f32.mrf.mxu1  ;;  %v579_v12 = vpop.f32.mrf.mxu3  ;;  %v517_v51 = vadd.f32 %v497_v10, %v424_v46 }
  0xe1   : > { %v427_v1 = vadd.f32 %v426_v11, %v3180_v56 }
  0xe2   : > { %v599_v60 = vadd.f32 %v579_v12, %v517_v51 }
  0xe3   : > { %v3193_v13 = vpop.f32.mrf.mxu0 }
  0xe4   : > { %v681_v7 = vadd.f32 %v661_v5, %v599_v60 }
  0xe7   : > { %v500_v14 = vpop.f32.mrf.mxu2 }
  0xe8   : > { %v3195_v15 = vpop.f32.mrf.mxu1  ;;  %v582_v16 = vpop.f32.mrf.mxu3  ;;  %v518_v8 = vadd.f32 %v500_v14, %v427_v1 }
  0xe9   : > { %v430_v56 = vadd.f32 %v3195_v15, %v3177_v55 }
  0xeb   : > { %v3197_v17 = vpop.f32.mrf.mxu0 }
  0xef   : > { %v3199_v18 = vpop.f32.mrf.mxu2 }
  0xf0   : > { %v3201_v19 = vpop.f32.mrf.mxu1  ;;  %v3203_v20 = vpop.f32.mrf.mxu3  ;;  %v519_v14 = vadd.f32 %v3199_v18, %v430_v56 }
  0xf2   : > { %v601_v42 = vadd.f32 %v3203_v20, %v519_v14 }
  0xf3   : > { %v3205_v21 = vpop.f32.mrf.mxu0 }
  0xf7   : > { %v3207_v22 = vpop.f32.mrf.mxu2 }
  0xf8   : > { %v3209_v23 = vpop.f32.mrf.mxu1  ;;  %v3211_v24 = vpop.f32.mrf.mxu3 }
  0xfb   : > { %v3213_v25 = vpop.f32.mrf.mxu0 }
  0xff   : > { %v3215_v26 = vpop.f32.mrf.mxu2 }
 0x100   : > { %v3217_v27 = vpop.f32.mrf.mxu1  ;;  %v3219_v28 = vpop.f32.mrf.mxu3 }
 0x103   : > { %v984_v31 = vpop.f32.mrf.mxu0 }
 0x107   : > { %v3221_v32 = vpop.f32.mrf.mxu2 }
 0x108   : > { %v3223_v34 = vpop.f32.mrf.mxu3  ;;  %v737_v35 = vpop.f32.mrf.mxu1 }
 0x109   : > { %v761_v40 = vadd.f32 %v737_v35, %v679_v37 }
 0x10b   : > { %v987_v39 = vpop.f32.mrf.mxu0 }
 0x10f   : > { %v820_v41 = vpop.f32.mrf.mxu2 }
 0x110   : > { %v844_v43 = vadd.f32 %v820_v41, %v761_v40  ;;  %v740_v44 = vpop.f32.mrf.mxu1  ;;  %v902_v45 = vpop.f32.mrf.mxu3 }
 0x111   : > { %v762_v53 = vadd.f32 %v740_v44, %v680_v49 }
 0x112   : > { %v926_v47 = vadd.f32 %v902_v45, %v844_v43 }
 0x113   : > { %v990_v59 = vpop.f32.mrf.mxu0 }
 0x114   : > { %v1008_v52 = vadd.f32 %v984_v31, %v926_v47  ;;  %v600_v31 = vadd.f32 %v582_v16, %v518_v8  ;;  %v683_v47 = vadd.f32 %v3193_v13, %v601_v42 }
 0x116   : > { %v3232_v54 = vadd.f32 %v3229_v48, %v1008_v52  ;;  %v682_v11 = vadd.f32 %v3191_v9, %v600_v31  ;;  %v433_v9 = vadd.f32 %v3201_v19, %v3187_v61  ;;  %v436_v19 = vadd.f32 %v3209_v23, %v3182_v57 }
 0x117   : > { %v823_v58 = vpop.f32.mrf.mxu2 }
 0x118   : > { %4620 = vst [vmem:[#allocation8_spill] sm:$0xff] %v3232_v54  ;;  %v845_v63 = vadd.f32 %v823_v58, %v762_v53  ;;  %v743_v2 = vpop.f32.mrf.mxu1  ;;  %v905_v3 = vpop.f32.mrf.mxu3  ;;  %v1060_v50 = vsel %vm248_vm0, %v3232_v54, -inf  ;;  %v1028_v4 = vsel %vm248_vm0, %v3232_v54, 0.0  ;;  %v520_v20 = vadd.f32 %v3207_v22, %v433_v9 }
 0x119   : > { %1061 = vmax.xlane.f32.xlu2 %v1060_v50  ;;  %1029 = vadd.xlane.f32.xlu0 %v1028_v4  ;;  %v763_v29 = vadd.f32 %v743_v2, %v681_v7  ;;  %v521_v22 = vadd.f32 %v3215_v26, %v436_v19 }
 0x11a   : > { %v927_v6 = vadd.f32 %v905_v3, %v845_v63  ;;  %v602_v58 = vadd.f32 %v3211_v24, %v520_v20 }
 0x11b   : > { %v993_v38 = vpop.f32.mrf.mxu0  ;;  %v603_v1 = vadd.f32 %v3219_v28, %v521_v22 }
 0x11c   : > { %v1009_v10 = vadd.f32 %v987_v39, %v927_v6  ;;  %v684_v2 = vadd.f32 %v3197_v17, %v602_v58 }
 0x11d   : > { %v685_v28 = vadd.f32 %v3205_v21, %v603_v1 }
 0x11e   : > { %v3240_v12 = vadd.f32 %v3229_v48, %v1009_v10  ;;  %v439_v10 = vadd.f32 %v3217_v27, %v3189_v62 }
 0x11f   : > { %v826_v30 = vpop.f32.mrf.mxu2 }
 0x120   : > { %4621 = vst [vmem:[#allocation9_spill] sm:$0xff] %v3240_v12  ;;  %v846_v33 = vadd.f32 %v826_v30, %v763_v29  ;;  %v746_v35 = vpop.f32.mrf.mxu1  ;;  %v908_v36 = vpop.f32.mrf.mxu3  ;;  %v1031_v37 = vsel %vm248_vm0, %v3240_v12, 0.0  ;;  %v1063_v55 = vsel %vm248_vm0, %v3240_v12, -inf  ;;  %v522_v30 = vadd.f32 %v3221_v32, %v439_v10 }
 0x121   : > { %1032 = vadd.xlane.f32.xlu0 %v1031_v37  ;;  %v764_v40 = vadd.f32 %v746_v35, %v682_v11 }
 0x122   : > { %v928_v5 = vadd.f32 %v908_v36, %v846_v33 }
 0x123   : > { %v996_v18 = vpop.f32.mrf.mxu0 }
 0x124   : > { %v1010_v39 = vadd.f32 %v990_v59, %v928_v5 }
 0x126   : > { %v3249_v16 = vadd.f32 %v3229_v48, %v1010_v39 }
 0x127   : > { %v829_v41 = vpop.f32.mrf.mxu2 }
 0x128   : > { %4622 = vst [vmem:[#allocation10_spill] sm:$0xff] %v3249_v16  ;;  %v847_v43 = vadd.f32 %v829_v41, %v764_v40  ;;  %v749_v44 = vpop.f32.mrf.mxu1  ;;  %v911_v45 = vpop.f32.mrf.mxu3  ;;  %v1034_v46 = vsel %vm248_vm0, %v3249_v16, 0.0  ;;  %v1066_v57 = vsel %vm248_vm0, %v3249_v16, -inf }
 0x129   : > { %1035 = vadd.xlane.f32.xlu1 %v1034_v46  ;;  %1064 = vmax.xlane.f32.xlu0 %v1063_v55  ;;  %v765_v51 = vadd.f32 %v749_v44, %v683_v47 }
 0x12a   : > { %v929_v15 = vadd.f32 %v911_v45, %v847_v43 }
 0x12b   : > { %v999_v50 = vpop.f32.mrf.mxu0 }
 0x12c   : > { %v1011_v49 = vadd.f32 %v993_v38, %v929_v15  ;;  %v604_v38 = vadd.f32 %v3223_v34, %v522_v30  ;;  %v1138_v15 = vld [vmem:[%s4474_s3] sm:$0xff]  ;;  %v1146_v30 = vld [vmem:[#allocation3 + $0x10] sm:$0xff] }
 0x12d   : > { %v3322_v47 = vperm.slane %v1138_v15, 1  ;;  %v3333_v58 = vperm.slane %v1138_v15, 2 }
 0x12e   : > { %v3261_v52 = vadd.f32 %v3229_v48, %v1011_v49  ;;  %v686_v11 = vadd.f32 %v3213_v25, %v604_v38  ;;  %v1145_v49 = vld [vmem:[#allocation3] sm:$0xff] }
 0x12f   : > { %v832_v53 = vpop.f32.mrf.mxu2  ;;  %4629 = vst [vmem:[#allocation17_spill] sm:$0xff] %v3322_v47 }
 0x130   : > { %4623 = vst [vmem:[#allocation11_spill] sm:$0xff] %v3261_v52  ;;  %v848_v59 = vadd.f32 %v832_v53, %v765_v51  ;;  %v752_v60 = vpop.f32.mrf.mxu1  ;;  %v914_v63 = vpop.f32.mrf.mxu3  ;;  %v1037_v61 = vsel %vm248_vm0, %v3261_v52, 0.0  ;;  %v1069_v27 = vsel %vm248_vm0, %v3261_v52, -inf  ;;  %v1170_v53 = vld [vmem:[#allocation3 + $0x1] sm:$0xff] }
 0x131   : > { %1038 = vadd.xlane.f32.xlu1 %v1037_v61  ;;  %v766_v4 = vadd.f32 %v752_v60, %v684_v2  ;;  %v1195_v60 = vld [vmem:[#allocation3 + $0x2] sm:$0xff]  ;;  %v3341_v61 = vperm.slane %v1138_v15, 3  ;;  %v3348_v2 = vperm.slane %v1138_v15, 4 }
 0x132   : > { %v930_v13 = vadd.f32 %v914_v63, %v848_v59  ;;  %v1179_v59 = vmul.f32 %v3322_v47, %v1170_v53  ;;  %v1204_v63 = vmul.f32 %v3333_v58, %v1195_v60  ;;  %v1296_v60 = vld [vmem:[#allocation3 + $0x16] sm:$0xff] }
 0x133   : > { %v1002_v37 = vpop.f32.mrf.mxu0  ;;  %4630 = vst [vmem:[#allocation18_spill] sm:$0xff] %v3348_v2 }
 0x134   : > { %v1012_v3 = vadd.f32 %v996_v18, %v930_v13  ;;  %v3320_v18 = vperm.slane %v1138_v15, 0  ;;  %v1220_v13 = vld [vmem:[#allocation3 + $0x3] sm:$0xff] }
 0x135   : > { %v1229_v22 = vmul.f32 %v3341_v61, %v1220_v13 }
 0x136   : > { %v3271_v24 = vadd.f32 %v3229_v48, %v1012_v3  ;;  %4628 = vst [vmem:[#allocation16_spill] sm:$0xff] %v3320_v18  ;;  %v1154_v51 = vmul.f32 %v3320_v18, %v1145_v49  ;;  %v1155_v38 = vmul.f32 %v3320_v18, %v1146_v30 }
 0x137   : > { %v835_v6 = vpop.f32.mrf.mxu2 }
 0x138   : > { %4624 = vst [vmem:[#allocation12_spill] sm:$0xff] %v3271_v24  ;;  %v849_v7 = vadd.f32 %v835_v6, %v766_v4  ;;  %v917_v8 = vpop.f32.mrf.mxu3  ;;  %v1040_v23 = vsel %vm248_vm0, %v3271_v24, 0.0  ;;  %v1072_v17 = vsel %vm248_vm0, %v3271_v24, -inf  ;;  %v755_v26 = vpop.f32.mrf.mxu1  ;;  %v1187_v19 = vadd.f32 %v1179_v59, %v1154_v51 }
 0x139   : > { %1067 = vmax.xlane.f32.xlu1 %v1066_v57  ;;  %1041 = vadd.xlane.f32.xlu2 %v1040_v23  ;;  %v767_v33 = vadd.f32 %v755_v26, %v685_v28  ;;  %v3351_v6 = vperm.slane %v1138_v15, 5  ;;  %v3354_v23 = vperm.slane %v1138_v15, 6  ;;  %v3362_v28 = vld [vmem:[%s4474_s3 + $0x8] sm:$0xff] }
 0x13a   : > { %v931_v29 = vadd.f32 %v917_v8, %v849_v7  ;;  %1073 = vmax.xlane.f32.xlu0 %v1072_v17  ;;  %v1212_v3 = vadd.f32 %v1204_v63, %v1187_v19  ;;  %v1270_v7 = vld [vmem:[#allocation3 + $0x5] sm:$0xff]  ;;  %v3403_v51 = vperm.slane %v3362_v28, 4  ;;  %v3416_v13 = vperm.slane %v3362_v28, 5 }
 0x13b   : > { %v1005_v25 = vpop.f32.mrf.mxu0  ;;  %v1279_v57 = vmul.f32 %v3351_v6, %v1270_v7  ;;  %4631 = vst [vmem:[#allocation19_spill] sm:$0xff] %v3354_v23  ;;  %v1295_v17 = vld [vmem:[#allocation3 + $0x6] sm:$0xff]  ;;  %v3429_v7 = vperm.slane %v3362_v28, 6 }
 0x13c   : > { %v1013_v31 = vadd.f32 %v999_v50, %v931_v29  ;;  %v1245_v50 = vld [vmem:[#allocation3 + $0x4] sm:$0xff]  ;;  %v1237_v4 = vadd.f32 %v1229_v22, %v1212_v3  ;;  %v1304_v10 = vmul.f32 %v3354_v23, %v1295_v17  ;;  %v3357_v29 = vperm.slane %v1138_v15, 7  ;;  %4637 = vst [vmem:[#allocation25_spill] sm:$0xff] %v3403_v51 }
 0x13d   : > { %v1254_v1 = vmul.f32 %v3348_v2, %v1245_v50  ;;  %4638 = vst [vmem:[#allocation26_spill] sm:$0xff] %v3416_v13  ;;  %v1305_v3 = vmul.f32 %v3354_v23, %v1296_v60  ;;  %v1147_v50 = vld [vmem:[#allocation3 + $0x20] sm:$0xff] }
 0x13e   : > { %v3285_v35 = vadd.f32 %v3229_v48, %v1013_v31  ;;  %4632 = vst [vmem:[#allocation20_spill] sm:$0xff] %v3357_v29  ;;  %v1171_v31 = vld [vmem:[#allocation3 + $0x11] sm:$0xff]  ;;  %v1172_v17 = vld [vmem:[#allocation3 + $0x21] sm:$0xff] }
 0x13f   : > { %v838_v36 = vpop.f32.mrf.mxu2  ;;  %v1262_v8 = vadd.f32 %v1254_v1, %v1237_v4  ;;  %v1480_v1 = vmul.f32 %v3416_v13, %v1296_v60  ;;  %4639 = vst [vmem:[#allocation27_spill] sm:$0xff] %v3429_v7  ;;  %v3461_v60 = vperm.slane %v3439_v0, 2 }
 0x140   : > { %4625 = vst [vmem:[#allocation13_spill] sm:$0xff] %v3285_v35  ;;  %v850_v56 = vadd.f32 %v838_v36, %v767_v33  ;;  %v920_v5 = vpop.f32.mrf.mxu3  ;;  %v1043_v62 = vsel %vm248_vm0, %v3285_v35, 0.0  ;;  %v758_v32 = vpop.f32.mrf.mxu1  ;;  %v1075_v41 = vsel %vm248_vm0, %v3285_v35, -inf  ;;  %v1330_v36 = vmul.f32 %v3357_v29, %v1146_v30 }
 0x141   : > { %1044 = vadd.xlane.f32.xlu1 %v1043_v62  ;;  %1070 = vmax.xlane.f32.xlu2 %v1069_v27  ;;  %v768_v39 = vadd.f32 %v758_v32, %v686_v11  ;;  %v1287_v26 = vadd.f32 %v1279_v57, %v1262_v8  ;;  %v1331_v57 = vmul.f32 %v3357_v29, %v1147_v50  ;;  %v3434_v30 = vperm.slane %v3362_v28, 7 }
 0x142   : > { %v932_v21 = vadd.f32 %v920_v5, %v850_v56  ;;  %v1180_v56 = vmul.f32 %v3322_v47, %v1171_v31  ;;  %v1196_v5 = vld [vmem:[#allocation3 + $0x12] sm:$0xff]  ;;  %4643 = vst [vmem:[#allocation31_spill] sm:$0xff] %v3461_v60 }
 0x143   : > { %v1312_v33 = vadd.f32 %v1304_v10, %v1287_v26  ;;  %v1205_v11 = vmul.f32 %v3333_v58, %v1196_v5  ;;  %v1506_v10 = vmul.f32 %v3429_v7, %v1147_v50  ;;  %4640 = vst [vmem:[#allocation28_spill] sm:$0xff] %v3434_v30 }
 0x144   : > { %v1014_v14 = vadd.f32 %v1002_v37, %v932_v21  ;;  %v3366_v37 = vperm.slane %v3362_v28, 0  ;;  %v3372_v21 = vperm.slane %v3362_v28, 1  ;;  %v1188_v32 = vadd.f32 %v1180_v56, %v1155_v38 }
 0x145   : > { %v1338_v62 = vadd.f32 %v1330_v36, %v1312_v33  ;;  %v1197_v36 = vld [vmem:[#allocation3 + $0x22] sm:$0xff]  ;;  %v1084_v38 = vlaneseq  ;;  %v1156_v56 = vmul.f32 %v3320_v18, %v1147_v50 }
 0x146   : > { %v3294_v40 = vadd.f32 %v3229_v48, %v1014_v14  ;;  %4633 = vst [vmem:[#allocation21_spill] sm:$0xff] %v3366_v37  ;;  %v1355_v27 = vmul.f32 %v3366_v37, %v1171_v31  ;;  %v1221_v14 = vld [vmem:[#allocation3 + $0x13] sm:$0xff]  ;;  %v1356_v33 = vmul.f32 %v3366_v37, %v1172_v17  ;;  %v1272_v50 = vld [vmem:[#allocation3 + $0x25] sm:$0xff] }
 0x147   : > { %v841_v34 = vpop.f32.mrf.mxu2  ;;  %4634 = vst [vmem:[#allocation22_spill] sm:$0xff] %v3372_v21 }
 0x148   : > { %4626 = vst [vmem:[#allocation14_spill] sm:$0xff] %v3294_v40  ;;  %v851_v42 = vadd.f32 %v841_v34, %v768_v39  ;;  %v923_v43 = vpop.f32.mrf.mxu3  ;;  %v1078_v44 = vsel %vm248_vm0, %v3294_v40, -inf  ;;  %v1046_v45 = vsel %vm248_vm0, %v3294_v40, 0.0  ;;  %v1363_v39 = vadd.f32 %v1355_v27, %v1338_v62 }
 0x149   : > { %1079 = vmax.xlane.f32.xlu1 %v1078_v44  ;;  %1076 = vmax.xlane.f32.xlu2 %v1075_v41  ;;  %v1380_v34 = vmul.f32 %v3372_v21, %v1196_v5  ;;  %v3379_v41 = vperm.slane %v3362_v28, 2  ;;  %v1246_v44 = vld [vmem:[#allocation3 + $0x14] sm:$0xff]  ;;  %v1181_v5 = vmul.f32 %v3322_v47, %v1172_v17  ;;  %v1531_v27 = vmul.f32 %v3434_v30, %v1172_v17 }
 0x14a   : > { %v933_v46 = vadd.f32 %v923_v43, %v851_v42  ;;  %1047 = vadd.xlane.f32.xlu0 %v1046_v45  ;;  %v1213_v42 = vadd.f32 %v1205_v11, %v1188_v32  ;;  %v1230_v43 = vmul.f32 %v3341_v61, %v1221_v14  ;;  %v1255_v15 = vmul.f32 %v3348_v2, %v1246_v44 }
 0x14b   : > { %4635 = vst [vmem:[#allocation23_spill] sm:$0xff] %v3379_v41  ;;  %v1388_v45 = vadd.f32 %v1380_v34, %v1363_v39  ;;  %v1381_v11 = vmul.f32 %v3372_v21, %v1197_v36  ;;  %v3449_v39 = vand.u32 127, %v1084_v38  ;;  %v1189_v34 = vadd.f32 %v1181_v5, %v1156_v56 }
 0x14c   : > { %v1015_v55 = vadd.f32 %v1005_v25, %v933_v46  ;;  %v1405_v25 = vmul.f32 %v3379_v41, %v1221_v14  ;;  %v3392_v46 = vperm.slane %v3362_v28, 3  ;;  %v3446_v28 = vperm.slane %v3439_v0, 0  ;;  %v1222_v14 = vld [vmem:[#allocation3 + $0x23] sm:$0xff] }
 0x14d   : > { %vm1086_vm6 = vcmp.eq.s32.totalorder %v3449_v39, 0  ;;  %v1281_v38 = vmul.f32 %v3351_v6, %v1272_v50 }
 0x14e   : > { %v3313_v9 = vadd.f32 %v3229_v48, %v1015_v55  ;;  %4636 = vst [vmem:[#allocation24_spill] sm:$0xff] %v3392_v46  ;;  %v1238_v55 = vadd.f32 %v1230_v43, %v1213_v42  ;;  %v1430_v49 = vmul.f32 %v3392_v46, %v1246_v44  ;;  %v1206_v42 = vmul.f32 %v3333_v58, %v1197_v36 }
 0x14f   : > { %4641 = vst [vmem:[#allocation29_spill] sm:$0xff] %v3446_v28  ;;  %v1556_v44 = vmul.f32 %v3446_v28, %v1197_v36 }
 0x150   : > { %4627 = vst [vmem:[#allocation15_spill] sm:$0xff] %v3313_v9  ;;  %v1049_v20 = vsel %vm248_vm0, %v3313_v9, 0.0  ;;  %v1081_v48 = vsel %vm248_vm0, %v3313_v9, -inf  ;;  %v1263_v53 = vadd.f32 %v1255_v15, %v1238_v55  ;;  %v1406_v55 = vmul.f32 %v3379_v41, %v1222_v14  ;;  %v1247_v15 = vld [vmem:[#allocation3 + $0x24] sm:$0xff] }
 0x151   : > { %1050 = vadd.xlane.f32.xlu2 %v1049_v20  ;;  %v1271_v20 = vld [vmem:[#allocation3 + $0x15] sm:$0xff]  ;;  %v1606_v17 = vmul.f32 %v3461_v60, %v1247_v15 }
 0x152   : > { %1082 = vmax.xlane.f32.xlu0 %v1081_v48  ;;  %v1413_v48 = vadd.f32 %v1405_v25, %v1388_v45  ;;  %v1280_v59 = vmul.f32 %v3351_v6, %v1271_v20  ;;  %v1455_v19 = vmul.f32 %v3403_v51, %v1271_v20  ;;  %v3454_v45 = vperm.slane %v3439_v0, 1 }
 0x153   : > { %v1214_v20 = vadd.f32 %v1206_v42, %v1189_v34 }
 0x154   : > { %v1438_v63 = vadd.f32 %v1430_v49, %v1413_v48  ;;  %v1288_v22 = vadd.f32 %v1280_v59, %v1263_v53  ;;  %4642 = vst [vmem:[#allocation30_spill] sm:$0xff] %v3454_v45  ;;  %v1231_v48 = vmul.f32 %v3341_v61, %v1222_v14  ;;  %v1581_v59 = vmul.f32 %v3454_v45, %v1222_v14 }
 0x156   : > { %v1463_v4 = vadd.f32 %v1455_v19, %v1438_v63  ;;  %v1313_v8 = vadd.f32 %v1305_v3, %v1288_v22  ;;  %v1431_v3 = vmul.f32 %v3392_v46, %v1247_v15 }
 0x158   : > { %v1488_v26 = vadd.f32 %v1480_v1, %v1463_v4  ;;  %v1339_v31 = vadd.f32 %v1331_v57, %v1313_v8  ;;  %v1239_v1 = vadd.f32 %v1231_v48, %v1214_v20  ;;  %v1256_v8 = vmul.f32 %v3348_v2, %v1247_v15 }
 0x159   : > { %v3482_v15 = vperm.slane %v3439_v0, 5  ;;  %v3485_v48 = vperm.slane %v3439_v0, 6 }
 0x15a   : > { %v1514_v62 = vadd.f32 %v1506_v10, %v1488_v26  ;;  %v1364_v32 = vadd.f32 %v1356_v33, %v1339_v31  ;;  %v3470_v26 = vperm.slane %v3439_v0, 3  ;;  %v1456_v31 = vmul.f32 %v3403_v51, %v1272_v50  ;;  %v1297_v33 = vld [vmem:[#allocation3 + $0x26] sm:$0xff] }
 0x15b   : > { %v1264_v36 = vadd.f32 %v1256_v8, %v1239_v1  ;;  %v1306_v34 = vmul.f32 %v3354_v23, %v1297_v33  ;;  %4646 = vst [vmem:[#allocation34_spill] sm:$0xff] %v3482_v15 }
 0x15c   : > { %v1539_v43 = vadd.f32 %v1531_v27, %v1514_v62  ;;  %v1389_v25 = vadd.f32 %v1381_v11, %v1364_v32  ;;  %4644 = vst [vmem:[#allocation32_spill] sm:$0xff] %v3470_v26  ;;  %v1631_v5 = vmul.f32 %v3470_v26, %v1272_v50  ;;  %v3476_v62 = vperm.slane %v3439_v0, 4 }
 0x15d   : > { %v1481_v11 = vmul.f32 %v3416_v13, %v1297_v33  ;;  %v1289_v14 = vadd.f32 %v1281_v38, %v1264_v36  ;;  %4647 = vst [vmem:[#allocation35_spill] sm:$0xff] %v3485_v48 }
 0x15e   : > { %v1564_v53 = vadd.f32 %v1556_v44, %v1539_v43  ;;  %v1414_v22 = vadd.f32 %v1406_v55, %v1389_v25  ;;  %4645 = vst [vmem:[#allocation33_spill] sm:$0xff] %v3476_v62  ;;  %v1656_v43 = vmul.f32 %v3476_v62, %v1297_v33 }
 0x15f   : > { %v1314_v20 = vadd.f32 %v1306_v34, %v1289_v14 }
 0x160   : > { %v1589_v57 = vadd.f32 %v1581_v59, %v1564_v53  ;;  %v1439_v10 = vadd.f32 %v1431_v3, %v1414_v22  ;;  %v3491_v59 = vld [vmem:[%s4474_s3 + $0x18] sm:$0xff] }
 0x162   : > { %v1614_v56 = vadd.f32 %v1606_v17, %v1589_v57  ;;  %v1464_v32 = vadd.f32 %v1456_v31, %v1439_v10  ;;  %v3501_v57 = vperm.slane %v3491_v59, 0 }
 0x164   : > { %v1639_v42 = vadd.f32 %v1631_v5, %v1614_v56  ;;  %v1489_v25 = vadd.f32 %v1481_v11, %v1464_v32  ;;  %4649 = vst [vmem:[#allocation37_spill] sm:$0xff] %v3501_v57  ;;  %v3506_v5 = vperm.slane %v3491_v59, 1 }
 0x166   : > { %4650 = vst [vmem:[#allocation38_spill] sm:$0xff] %v3506_v5 }
 0x18c   : > { %v1030_v49 = vpop.xlane.xlu0 %1029  ;;  %v1062_v19 = vpop.xlane.xlu2 %1061 }
 0x18d   : > { %v1052_v63 = vmul.f32 0.125, %v1030_v49 }
 0x18f   : > { %v1089_v4 = vsel %vm1086_vm6, %v1052_v63, %v1062_v19  ;;  %v1664_v63 = vadd.f32 %v1656_v43, %v1639_v42 }
 0x190   : > { %1130 = vst.msk [vmem:[#allocation3 + $0x33] sm:$0xff] %vm1097_vm3, %v1089_v4  ;;  %v3497_v4 = vperm.slane %v3439_v0, 7 }
 0x192   : > { %4648 = vst [vmem:[#allocation36_spill] sm:$0xff] %v3497_v4 }
 0x194   : > { %v1033_v27 = vpop.xlane.xlu0 %1032 }
 0x195   : > { %v1053_v31 = vmul.f32 0.125, %v1033_v27 }
 0x197   : > { %v1148_v44 = vld [vmem:[#allocation3 + $0x30] sm:$0xff] }
 0x198   : > { %v1173_v55 = vld [vmem:[#allocation3 + $0x31] sm:$0xff]  ;;  %v1507_v49 = vmul.f32 %v3429_v7, %v1148_v44  ;;  %v1157_v19 = vmul.f32 %v3320_v18, %v1148_v44  ;;  %v1332_v3 = vmul.f32 %v3357_v29, %v1148_v44  ;;  %v1681_v1 = vmul.f32 %v3482_v15, %v1148_v44 }
 0x199   : > { %v1182_v22 = vmul.f32 %v3322_v47, %v1173_v55  ;;  %v1198_v17 = vld [vmem:[#allocation3 + $0x32] sm:$0xff]  ;;  %v1532_v10 = vmul.f32 %v3434_v30, %v1173_v55  ;;  %v1706_v56 = vmul.f32 %v3485_v48, %v1173_v55  ;;  %v1357_v34 = vmul.f32 %v3366_v37, %v1173_v55 }
 0x19a   : > { %v1515_v50 = vadd.f32 %v1507_v49, %v1489_v25  ;;  %v1340_v36 = vadd.f32 %v1332_v3, %v1314_v20  ;;  %v1689_v38 = vadd.f32 %v1681_v1, %v1664_v63  ;;  %v1223_v0 = vld [vmem:[#allocation3 + $0x33] sm:$0xff]  ;;  %v1207_v14 = vmul.f32 %v3333_v58, %v1198_v17 }
 0x19b   : > { %v1190_v33 = vadd.f32 %v1182_v22, %v1157_v19  ;;  %v1731_v27 = vmul.f32 %v3497_v4, %v1198_v17  ;;  %v1248_v43 = vld [vmem:[#allocation3 + $0x34] sm:$0xff]  ;;  %v1557_v44 = vmul.f32 %v3446_v28, %v1198_v17  ;;  %v1756_v19 = vmul.f32 %v3501_v57, %v1223_v0 }
 0x19c   : > { %v1036_v53 = vpop.xlane.xlu1 %1035  ;;  %v1065_v8 = vpop.xlane.xlu0 %1064  ;;  %v1540_v32 = vadd.f32 %v1532_v10, %v1515_v50  ;;  %v1714_v42 = vadd.f32 %v1706_v56, %v1689_v38  ;;  %v1365_v49 = vadd.f32 %v1357_v34, %v1340_v36  ;;  %v3517_v22 = vperm.slane %v3491_v59, 2  ;;  %v1273_v50 = vld [vmem:[#allocation3 + $0x35] sm:$0xff] }
 0x19d   : > { %v1090_v11 = vsel %vm1086_vm6, %v1053_v31, %v1065_v8  ;;  %v1215_v20 = vadd.f32 %v1207_v14, %v1190_v33  ;;  %v1232_v55 = vmul.f32 %v3341_v61, %v1223_v0  ;;  %v1382_v1 = vmul.f32 %v3372_v21, %v1198_v17  ;;  %v1298_v34 = vld [vmem:[#allocation3 + $0x36] sm:$0xff] }
 0x19e   : > { %1131 = vst.msk [vmem:[#allocation3 + $0x43] sm:$0xff] %vm1097_vm3, %v1090_v11  ;;  %v1739_v63 = vadd.f32 %v1731_v27, %v1714_v42  ;;  %v1565_v3 = vadd.f32 %v1557_v44, %v1540_v32  ;;  %v1781_v10 = vmul.f32 %v3506_v5, %v1248_v43  ;;  %v1582_v31 = vmul.f32 %v3454_v45, %v1223_v0 }
 0x19f   : > { %4651 = vst [vmem:[#allocation39_spill] sm:$0xff] %v3517_v22  ;;  %v1240_v38 = vadd.f32 %v1232_v55, %v1215_v20  ;;  %v1390_v33 = vadd.f32 %v1382_v1, %v1365_v49  ;;  %v3524_v56 = vperm.slane %v3491_v59, 3  ;;  %v1806_v14 = vmul.f32 %v3517_v22, %v1273_v50 }
 0x1a0   : > { %v1764_v8 = vadd.f32 %v1756_v19, %v1739_v63  ;;  %v1590_v11 = vadd.f32 %v1582_v31, %v1565_v3  ;;  %v1257_v32 = vmul.f32 %v3348_v2, %v1248_v43  ;;  %v1407_v42 = vmul.f32 %v3379_v41, %v1223_v0 }
 0x1a1   : > { %4652 = vst [vmem:[#allocation40_spill] sm:$0xff] %v3524_v56  ;;  %v1607_v17 = vmul.f32 %v3461_v60, %v1248_v43  ;;  %v3531_v49 = vperm.slane %v3491_v59, 4  ;;  %v1831_v3 = vmul.f32 %v3524_v56, %v1298_v34  ;;  %v1054_v1 = vmul.f32 0.125, %v1036_v53 }
 0x1a2   : > { %v1789_v36 = vadd.f32 %v1781_v10, %v1764_v8  ;;  %v1265_v19 = vadd.f32 %v1257_v32, %v1240_v38  ;;  %v1415_v20 = vadd.f32 %v1407_v42, %v1390_v33  ;;  %v1282_v10 = vmul.f32 %v3351_v6, %v1273_v50 }
 0x1a3   : > { %4653 = vst [vmem:[#allocation41_spill] sm:$0xff] %v3531_v49  ;;  %v1615_v55 = vadd.f32 %v1607_v17, %v1590_v11  ;;  %v1432_v31 = vmul.f32 %v3392_v46, %v1248_v43  ;;  %v1632_v0 = vmul.f32 %v3470_v26, %v1273_v50  ;;  %v3544_v43 = vperm.slane %v3491_v59, 5 }
 0x1a4   : > { %v1039_v25 = vpop.xlane.xlu1 %1038  ;;  %v1814_v27 = vadd.f32 %v1806_v14, %v1789_v36  ;;  %v1290_v33 = vadd.f32 %v1282_v10, %v1265_v19  ;;  %v1307_v17 = vmul.f32 %v3354_v23, %v1298_v34 }
 0x1a5   : > { %v1324_v8 = vld [vmem:[#allocation3 + $0x40] sm:$0xff]  ;;  %v1440_v14 = vadd.f32 %v1432_v31, %v1415_v20  ;;  %v1640_v53 = vadd.f32 %v1632_v0, %v1615_v55  ;;  %4654 = vst [vmem:[#allocation42_spill] sm:$0xff] %v3544_v43  ;;  %v1657_v20 = vmul.f32 %v3476_v62, %v1298_v34 }
 0x1a6   : > { %v1839_v40 = vadd.f32 %v1831_v3, %v1814_v27  ;;  %v1857_v32 = vmul.f32 %v3531_v49, %v1324_v8  ;;  %v1457_v27 = vmul.f32 %v3403_v51, %v1273_v50  ;;  %v1333_v19 = vmul.f32 %v3357_v29, %v1324_v8 }
 0x1a8   : > { %v1865_v55 = vadd.f32 %v1857_v32, %v1839_v40  ;;  %v1465_v10 = vadd.f32 %v1457_v27, %v1440_v14  ;;  %v1142_v32 = vld [vmem:[%s4474_s3 + $0x20] sm:$0xff] }
 0x1ac   : > { %v1068_v44 = vpop.xlane.xlu1 %1067  ;;  %v1042_v63 = vpop.xlane.xlu2 %1041 }
 0x1ad   : > { %v1091_v36 = vsel %vm1086_vm6, %v1054_v1, %v1068_v44  ;;  %v1056_v38 = vmul.f32 0.125, %v1042_v63  ;;  %v1074_v11 = vpop.xlane.xlu0 %1073  ;;  %v1349_v44 = vld [vmem:[#allocation3 + $0x41] sm:$0xff]  ;;  %v1055_v63 = vmul.f32 0.125, %v1039_v25  ;;  %v1315_v1 = vadd.f32 %v1307_v17, %v1290_v33 }
 0x1ae   : > { %1132 = vst.msk [vmem:[#allocation3 + $0x53] sm:$0xff] %vm1097_vm3, %v1091_v36  ;;  %v1665_v36 = vadd.f32 %v1657_v20, %v1640_v53  ;;  %v3556_v25 = vperm.slane %v3491_v59, 6  ;;  %v1882_v50 = vmul.f32 %v3544_v43, %v1349_v44  ;;  %v1358_v27 = vmul.f32 %v3366_v37, %v1349_v44 }
 0x1af   : > { %v1093_v42 = vsel %vm1086_vm6, %v1056_v38, %v1074_v11  ;;  %v1682_v38 = vmul.f32 %v3482_v15, %v1324_v8  ;;  %v1482_v11 = vmul.f32 %v3416_v13, %v1298_v34  ;;  %v1341_v40 = vadd.f32 %v1333_v19, %v1315_v1 }
 0x1b0   : > { %1134 = vst.msk [vmem:[#allocation3 + $0x73] sm:$0xff] %vm1097_vm3, %v1093_v42  ;;  %v1374_v42 = vld [vmem:[#allocation3 + $0x42] sm:$0xff]  ;;  %v1890_v53 = vadd.f32 %v1882_v50, %v1865_v55  ;;  %v1707_v9 = vmul.f32 %v3485_v48, %v1349_v44 }
 0x1b1   : > { %4655 = vst [vmem:[#allocation43_spill] sm:$0xff] %v3556_v25  ;;  %v1490_v17 = vadd.f32 %v1482_v11, %v1465_v10  ;;  %v1690_v19 = vadd.f32 %v1682_v38, %v1665_v36  ;;  %v3579_v55 = vld [vmem:[#allocation3 + $0x43] sm:$0xff]  ;;  %v1366_v10 = vadd.f32 %v1358_v27, %v1341_v40  ;;  %v3581_v11 = vperm.slane %v1142_v32, 0 }
 0x1b2   : > { %v1383_v35 = vmul.f32 %v3372_v21, %v1374_v42 }
 0x1b3   : > { %4657 = vst [vmem:[#allocation45_spill] sm:$0xff] %v3581_v11  ;;  %v1715_v12 = vadd.f32 %v1707_v9, %v1690_v19  ;;  %v3609_v19 = vld [vmem:[%s4474_s3 + $0x28] sm:$0xff] }
 0x1b4   : > { %v1071_v3 = vpop.xlane.xlu2 %1070  ;;  %v1045_v31 = vpop.xlane.xlu1 %1044 }
 0x1b5   : > { %v1092_v0 = vsel %vm1086_vm6, %v1055_v63, %v1071_v3  ;;  %v3560_v33 = vld [vmem:[#allocation3 + $0x50] sm:$0xff]  ;;  %v1508_v63 = vmul.f32 %v3429_v7, %v1324_v8  ;;  %v3574_v3 = vperm.slane %v3491_v59, 7  ;;  %v1057_v50 = vmul.f32 0.125, %v1045_v31 }
 0x1b6   : > { %1133 = vst.msk [vmem:[#allocation3 + $0x63] sm:$0xff] %vm1097_vm3, %v1092_v0  ;;  %v3562_v14 = vld [vmem:[#allocation3 + $0x51] sm:$0xff]  ;;  %v1159_v20 = vmul.f32 %v3560_v33, %v3320_v18  ;;  %v1907_v0 = vmul.f32 %v3556_v25, %v1374_v42  ;;  %v3583_v8 = vperm.slane %v1142_v32, 1  ;;  %v3586_v59 = vperm.slane %v1142_v32, 2 }
 0x1b7   : > { %v3571_v34 = vld [vmem:[#allocation3 + $0x52] sm:$0xff]  ;;  %4656 = vst [vmem:[#allocation44_spill] sm:$0xff] %v3574_v3  ;;  %v1184_v1 = vmul.f32 %v3562_v14, %v3322_v47  ;;  %v1516_v52 = vadd.f32 %v1508_v63, %v1490_v17  ;;  %v1533_v17 = vmul.f32 %v3434_v30, %v1349_v44  ;;  %v1391_v63 = vadd.f32 %v1383_v35, %v1366_v10  ;;  %v1449_v44 = vld [vmem:[#allocation3 + $0x45] sm:$0xff] }
 0x1b8   : > { %4658 = vst [vmem:[#allocation46_spill] sm:$0xff] %v3583_v8  ;;  %v1915_v38 = vadd.f32 %v1907_v0, %v1890_v53  ;;  %v3589_v16 = vld [vmem:[#allocation3 + $0x53] sm:$0xff]  ;;  %v1209_v27 = vmul.f32 %v3571_v34, %v3333_v58  ;;  %v1932_v53 = vmul.f32 %v3574_v3, %v3579_v55  ;;  %v1408_v35 = vmul.f32 %v3379_v41, %v3579_v55 }
 0x1b9   : > { %v1192_v36 = vadd.f32 %v1184_v1, %v1159_v20  ;;  %4659 = vst [vmem:[#allocation47_spill] sm:$0xff] %v3586_v59  ;;  %v3598_v20 = vperm.slane %v1142_v32, 3  ;;  %v1424_v1 = vld [vmem:[#allocation3 + $0x44] sm:$0xff]  ;;  %v1541_v10 = vadd.f32 %v1533_v17, %v1516_v52  ;;  %v3629_v52 = vperm.slane %v3609_v19, 0 }
 0x1ba   : > { %v1957_v21 = vmul.f32 %v3581_v11, %v1424_v1  ;;  %v1416_v41 = vadd.f32 %v1408_v35, %v1391_v63  ;;  %v3632_v17 = vperm.slane %v3609_v19, 1  ;;  %v3644_v11 = vld [vmem:[#allocation3 + $0x55] sm:$0xff]  ;;  %v1608_v39 = vmul.f32 %v3461_v60, %v1424_v1 }
 0x1bb   : > { %4660 = vst [vmem:[#allocation48_spill] sm:$0xff] %v3598_v20  ;;  %v1217_v48 = vadd.f32 %v1209_v27, %v1192_v36  ;;  %v3616_v36 = vld [vmem:[#allocation3 + $0x54] sm:$0xff]  ;;  %v3618_v27 = vperm.slane %v1142_v32, 5 }
 0x1bc   : > { %v1077_v24 = vpop.xlane.xlu2 %1076  ;;  %v1080_v0 = vpop.xlane.xlu1 %1079  ;;  %4662 = vst [vmem:[#allocation50_spill] sm:$0xff] %v3616_v36 }
 0x1bd   : > { %v1094_v40 = vsel %vm1086_vm6, %v1057_v50, %v1077_v24  ;;  %v1048_v31 = vpop.xlane.xlu0 %1047  ;;  %v3601_v24 = vperm.slane %v1142_v32, 4  ;;  %v1732_v50 = vmul.f32 %v3497_v4, %v1374_v42  ;;  %4663 = vst [vmem:[#allocation51_spill] sm:$0xff] %v3618_v27  ;;  %v3642_v35 = vld [vmem:[#allocation3 + $0x61] sm:$0xff] }
 0x1be   : > { %1135 = vst.msk [vmem:[#allocation3 + $0x83] sm:$0xff] %vm1097_vm3, %v1094_v40  ;;  %v1058_v54 = vmul.f32 0.125, %v1048_v31  ;;  %v1234_v40 = vmul.f32 %v3589_v16, %v3341_v61  ;;  %v1940_v31 = vadd.f32 %v1932_v53, %v1915_v38  ;;  %v3625_v38 = vperm.slane %v1142_v32, 7 }
 0x1bf   : > { %4661 = vst [vmem:[#allocation49_spill] sm:$0xff] %v3601_v24  ;;  %v1740_v4 = vadd.f32 %v1732_v50, %v1715_v12  ;;  %v1558_v53 = vmul.f32 %v3446_v28, %v1374_v42  ;;  %v1259_v12 = vmul.f32 %v3348_v2, %v3616_v36  ;;  %v1433_v50 = vmul.f32 %v3392_v46, %v1424_v1 }
 0x1c0   : > { %v1095_v9 = vsel %vm1086_vm6, %v1058_v54, %v1080_v0  ;;  %v3620_v54 = vperm.slane %v1142_v32, 6  ;;  %v3622_v0 = vld [vmem:[#allocation3 + $0x46] sm:$0xff]  ;;  %v1242_v15 = vadd.f32 %v1234_v40, %v1217_v48  ;;  %4665 = vst [vmem:[#allocation53_spill] sm:$0xff] %v3625_v38  ;;  %v1965_v48 = vadd.f32 %v1957_v21, %v1940_v31 }
 0x1c1   : > { %1136 = vst.msk [vmem:[#allocation3 + $0x93] sm:$0xff] %vm1097_vm3, %v1095_v9  ;;  %v1757_v9 = vmul.f32 %v3501_v57, %v3579_v55  ;;  %v1982_v32 = vmul.f32 %v3583_v8, %v1449_v44  ;;  %v1566_v42 = vadd.f32 %v1558_v53, %v1541_v10  ;;  %v3640_v40 = vld [vmem:[#allocation3 + $0x60] sm:$0xff]  ;;  %v2007_v57 = vmul.f32 %v3586_v59, %v3622_v0 }
 0x1c2   : > { %4664 = vst [vmem:[#allocation52_spill] sm:$0xff] %v3620_v54  ;;  %v2033_v21 = vmul.f32 %v3598_v20, %v3560_v33  ;;  %v1583_v31 = vmul.f32 %v3454_v45, %v3579_v55  ;;  %v1782_v53 = vmul.f32 %v3506_v5, %v1424_v1  ;;  %v1458_v55 = vmul.f32 %v3403_v51, %v1449_v44 }
 0x1c3   : > { %4666 = vst [vmem:[#allocation54_spill] sm:$0xff] %v3629_v52  ;;  %v1267_v52 = vadd.f32 %v1259_v12, %v1242_v15  ;;  %v1990_v2 = vadd.f32 %v1982_v32, %v1965_v48  ;;  %v1185_v15 = vmul.f32 %v3322_v47, %v3642_v35  ;;  %v3666_v48 = vld [vmem:[#allocation3 + $0x56] sm:$0xff]  ;;  %v1633_v5 = vmul.f32 %v3470_v26, %v1449_v44 }
 0x1c4   : > { %4667 = vst [vmem:[#allocation55_spill] sm:$0xff] %v3632_v17  ;;  %v1051_v3 = vpop.xlane.xlu2 %1050  ;;  %v1765_v17 = vadd.f32 %v1757_v9, %v1740_v4  ;;  %v1160_v4 = vmul.f32 %v3320_v18, %v3640_v40  ;;  %v1284_v9 = vmul.f32 %v3351_v6, %v3644_v11  ;;  %v3676_v47 = vperm.slane %v3609_v19, 2 }
 0x1c5   : > { %v1059_v63 = vmul.f32 0.125, %v1051_v3  ;;  %4668 = vst [vmem:[#allocation56_spill] sm:$0xff] %v3640_v40  ;;  %v1083_v25 = vpop.xlane.xlu0 %1082  ;;  %v1441_v3 = vadd.f32 %v1433_v50, %v1416_v41  ;;  %v2015_v12 = vadd.f32 %v2007_v57, %v1990_v2  ;;  %v1483_v41 = vmul.f32 %v3416_v13, %v3622_v0  ;;  %v3673_v57 = vld [vmem:[#allocation3 + $0x62] sm:$0xff] }
 0x1c6   : > { %4669 = vst [vmem:[#allocation57_spill] sm:$0xff] %v3642_v35  ;;  %v1292_v32 = vadd.f32 %v1284_v9, %v1267_v52  ;;  %v1658_v2 = vmul.f32 %v3476_v62, %v3622_v0  ;;  %v1807_v1 = vmul.f32 %v3517_v22, %v1449_v44  ;;  %v1309_v52 = vmul.f32 %v3354_v23, %v3666_v48 }
 0x1c7   : > { %4670 = vst [vmem:[#allocation58_spill] sm:$0xff] %v3644_v11  ;;  %v1096_v10 = vsel %vm1086_vm6, %v1059_v63, %v1083_v25  ;;  %v1591_v25 = vadd.f32 %v1583_v31, %v1566_v42  ;;  %v2041_v50 = vadd.f32 %v2033_v21, %v2015_v12  ;;  %v2058_v63 = vmul.f32 %v3601_v24, %v3562_v14 }
 0x1c8   : > { %1137 = vst.msk [vmem:[#allocation3 + $0xa3] sm:$0xff] %vm1097_vm3, %v1096_v10  ;;  %v1790_v10 = vadd.f32 %v1782_v53, %v1765_v17  ;;  %v1466_v42 = vadd.f32 %v1458_v55, %v1441_v3  ;;  %v1193_v31 = vadd.f32 %v1185_v15, %v1160_v4  ;;  %v2083_v17 = vmul.f32 %v3618_v27, %v3571_v34  ;;  %v3693_v15 = vld [vmem:[#allocation3 + $0x63] sm:$0xff] }
 0x1c9   : > { %4671 = vst [vmem:[#allocation59_spill] sm:$0xff] %v3666_v48  ;;  %v2066_v21 = vadd.f32 %v2058_v63, %v2041_v50  ;;  %v3684_v53 = vperm.slane %v3609_v19, 3  ;;  %v3687_v9 = vperm.slane %v3609_v19, 4  ;;  %v1509_v62 = vmul.f32 %v3429_v7, %v3560_v33 }
 0x1ca   : > { %4672 = vst [vmem:[#allocation60_spill] sm:$0xff] %v3673_v57  ;;  %v1815_v12 = vadd.f32 %v1807_v1, %v1790_v10  ;;  %v1616_v44 = vadd.f32 %v1608_v39, %v1591_v25  ;;  %v1210_v3 = vmul.f32 %v3333_v58, %v3673_v57  ;;  %v1317_v4 = vadd.f32 %v1309_v52, %v1292_v32 }
 0x1cb   : > { %4673 = vst [vmem:[#allocation61_spill] sm:$0xff] %v3676_v47  ;;  %v2091_v55 = vadd.f32 %v2083_v17, %v2066_v21  ;;  %v3696_v50 = vperm.slane %v3609_v19, 5  ;;  %v1832_v63 = vmul.f32 %v3524_v56, %v3622_v0  ;;  %v1858_v10 = vmul.f32 %v3531_v49, %v3560_v33 }
 0x1cc   : > { %4674 = vst [vmem:[#allocation62_spill] sm:$0xff] %v3684_v53  ;;  %v1491_v1 = vadd.f32 %v1483_v41, %v1466_v42  ;;  %v1218_v26 = vadd.f32 %v1210_v3, %v1193_v31  ;;  %v1335_v39 = vmul.f32 %v3357_v29, %v3640_v40  ;;  %v3705_v25 = vperm.slane %v3609_v19, 6  ;;  %v3716_v31 = vld [vmem:[#allocation3 + $0x64] sm:$0xff] }
 0x1cd   : > { %4675 = vst [vmem:[#allocation63_spill] sm:$0xff] %v3687_v9  ;;  %v1534_v32 = vmul.f32 %v3434_v30, %v3562_v14  ;;  %v2108_v52 = vmul.f32 %v3620_v54, %v3589_v16  ;;  %v3712_v21 = vperm.slane %v3609_v19, 7  ;;  %v1840_v0 = vadd.f32 %v1832_v63, %v1815_v12  ;;  %v4683_v63 = vld [vmem:[#allocation54_spill] sm:$0xff] }
 0x1ce   : > { %4676 = vst [vmem:[#allocation64_spill] sm:$0xff] %v3693_v15  ;;  %v1641_v17 = vadd.f32 %v1633_v5, %v1616_v44  ;;  %v1517_v7 = vadd.f32 %v1509_v62, %v1491_v1  ;;  %v1235_v41 = vmul.f32 %v3341_v61, %v3693_v15  ;;  %v1343_v42 = vadd.f32 %v1335_v39, %v1317_v4  ;;  %v3728_v44 = vld [vmem:[#allocation3 + $0x65] sm:$0xff]  ;;  %v4684_v39 = vld [vmem:[#allocation43_spill] sm:$0xff] }
 0x1cf   : > { %4677 = vst [vmem:[#allocation65_spill] sm:$0xff] %v3696_v50  ;;  %v2116_v3 = vadd.f32 %v2108_v52, %v2091_v55  ;;  %v2133_v49 = vmul.f32 %v3625_v38, %v3616_v36  ;;  %v1866_v30 = vadd.f32 %v1858_v10, %v1840_v0  ;;  %v1883_v29 = vmul.f32 %v3544_v43, %v3562_v14  ;;  %v3730_v4 = vld [vmem:[#allocation3 + $0x66] sm:$0xff] }
 0x1d0   : > { %4678 = vst [vmem:[#allocation66_spill] sm:$0xff] %v3705_v25  ;;  %v1559_v19 = vmul.f32 %v3446_v28, %v3571_v34  ;;  %v1584_v62 = vmul.f32 %v3454_v45, %v3589_v16  ;;  %v1243_v5 = vadd.f32 %v1235_v41, %v1218_v26  ;;  %v1360_v12 = vmul.f32 %v3366_v37, %v3642_v35  ;;  %v4685_v45 = vld [vmem:[#allocation18_spill] sm:$0xff]  ;;  %v4686_v37 = vld [vmem:[#allocation55_spill] sm:$0xff] }
 0x1d1   : > { %4679 = vst [vmem:[#allocation67_spill] sm:$0xff] %v3712_v21  ;;  %v2141_v55 = vadd.f32 %v2133_v49, %v2116_v3  ;;  %v2158_v10 = vmul.f32 %v4683_v63, %v3644_v11  ;;  %v1891_v1 = vadd.f32 %v1883_v29, %v1866_v30  ;;  %v1908_v52 = vmul.f32 %v4684_v39, %v3571_v34  ;;  %v4687_v49 = vld [vmem:[#allocation44_spill] sm:$0xff] }
 0x1d2   : > { %4680 = vst [vmem:[#allocation68_spill] sm:$0xff] %v3716_v31  ;;  %v1666_v0 = vadd.f32 %v1658_v2, %v1641_v17  ;;  %v1542_v28 = vadd.f32 %v1534_v32, %v1517_v7  ;;  %v1260_v26 = vmul.f32 %v4685_v45, %v3716_v31  ;;  %v1368_v41 = vadd.f32 %v1360_v12, %v1343_v42  ;;  %v4688_v7 = vld [vmem:[#allocation22_spill] sm:$0xff]  ;;  %v4689_v12 = vld [vmem:[#allocation45_spill] sm:$0xff] }
 0x1d3   : > { %4681 = vst [vmem:[#allocation69_spill] sm:$0xff] %v3728_v44  ;;  %v2166_v43 = vadd.f32 %v2158_v10, %v2141_v55  ;;  %v2183_v60 = vmul.f32 %v4686_v37, %v3666_v48  ;;  %v1916_v56 = vadd.f32 %v1908_v52, %v1891_v1  ;;  %v1933_v3 = vmul.f32 %v4687_v49, %v3589_v16 }
 0x1d4   : > { %4682 = vst [vmem:[#allocation70_spill] sm:$0xff] %v3730_v4  ;;  %v1268_v22 = vadd.f32 %v1260_v26, %v1243_v5  ;;  %v1285_v29 = vmul.f32 %v3351_v6, %v3728_v44  ;;  %v1310_v30 = vmul.f32 %v3354_v23, %v3730_v4  ;;  %v1385_v2 = vmul.f32 %v4688_v7, %v3673_v57  ;;  %v4690_v5 = vld [vmem:[#allocation23_spill] sm:$0xff] }
 0x1d5   : > { %v2191_v32 = vadd.f32 %v2183_v60, %v2166_v43  ;;  %v2209_v17 = vmul.f32 %v3676_v47, %v3640_v40  ;;  %v1941_v42 = vadd.f32 %v1933_v3, %v1916_v56  ;;  %v1958_v55 = vmul.f32 %v4689_v12, %v3616_v36 }
 0x1d6   : > { %v1567_v10 = vadd.f32 %v1559_v19, %v1542_v28  ;;  %v1393_v1 = vadd.f32 %v1385_v2, %v1368_v41  ;;  %v1410_v52 = vmul.f32 %v4690_v5, %v3693_v15  ;;  %v1435_v26 = vmul.f32 %v3392_v46, %v3716_v31  ;;  %v3768_v41 = vld [vmem:[#allocation3 + $0x70] sm:$0xff]  ;;  %v3799_v5 = vld [vmem:[#allocation3 + $0xa0] sm:$0xff] }
 0x1d7   : > { %v2217_v49 = vadd.f32 %v2209_v17, %v2191_v32  ;;  %v2234_v39 = vmul.f32 %v3684_v53, %v3642_v35  ;;  %v1966_v60 = vadd.f32 %v1958_v55, %v1941_v42  ;;  %v1983_v43 = vmul.f32 %v3583_v8, %v3644_v11  ;;  %v3770_v2 = vld [vmem:[#allocation3 + $0x71] sm:$0xff]  ;;  %v3783_v8 = vld [vmem:[%s4474_s3 + $0x30] ss:$0 sm:$0xff]  ;;  %4695 = vst [vmem:[#allocation71_spill] sm:$0xff] %v3799_v5 }
 0x1d8   : > { %v1293_v56 = vadd.f32 %v1285_v29, %v1268_v22  ;;  %v1460_v3 = vmul.f32 %v3403_v51, %v3728_v44  ;;  %v3764_v28 = vmul.f32 %v3416_v13, %v3730_v4  ;;  %v2259_v19 = vmul.f32 %v3687_v9, %v3673_v57  ;;  %4692 = vst [vmem:[#allocation22_spill] sm:$0xff] %v3783_v8  ;;  %v4694_v51 = vld [vmem:[#allocation34_spill] sm:$0xff] }
 0x1d9   : > { %v2242_v32 = vadd.f32 %v2234_v39, %v2217_v49  ;;  %v2284_v17 = vmul.f32 %v3696_v50, %v3693_v15  ;;  %v1991_v42 = vadd.f32 %v1983_v43, %v1966_v60  ;;  %v2008_v22 = vmul.f32 %v3586_v59, %v3666_v48 }
 0x1da   : > { %4691 = vst [vmem:[#allocation18_spill] sm:$0xff] %v3764_v28  ;;  %v1418_v29 = vadd.f32 %v1410_v52, %v1393_v1  ;;  %v2309_v55 = vmul.f32 %v3705_v25, %v3716_v31  ;;  %v2334_v28 = vmul.f32 %v3712_v21, %v3728_v44  ;;  %v2034_v39 = vmul.f32 %v3598_v20, %v3640_v40  ;;  %v4693_v1 = vld [vmem:[#allocation17_spill] sm:$0xff] }
 0x1db   : > { %v2267_v49 = vadd.f32 %v2259_v19, %v2242_v32  ;;  %v2016_v60 = vadd.f32 %v2008_v22, %v1991_v42  ;;  %v1161_v43 = vmul.f32 %v3768_v41, %v3320_v18  ;;  %v1186_v52 = vmul.f32 %v3770_v2, %v4693_v1  ;;  %v3801_v19 = vld [vmem:[#allocation3 + $0xa1] sm:$0xff] }
 0x1dc   : > { %v3791_v59 = vadd.f32 %v1310_v30, %v1293_v56  ;;  %v2359_v12 = vmul.f32 %v3783_v8, %v3730_v4  ;;  %v3795_v13 = vadd.f32 %v1584_v62, %v1567_v10  ;;  %v1683_v46 = vmul.f32 %v4694_v51, %v3560_v33  ;;  %4696 = vst [vmem:[#allocation72_spill] sm:$0xff] %v3801_v19  ;;  %v3807_v56 = vld [vmem:[#allocation3 + $0xa2] sm:$0xff]  ;;  %v3813_v10 = vld [vmem:[#allocation3 + $0x72] sm:$0xff] }
 0x1dd   : > { %v2292_v32 = vadd.f32 %v2284_v17, %v2267_v49  ;;  %v2042_v42 = vadd.f32 %v2034_v39, %v2016_v60  ;;  %v2059_v22 = vmul.f32 %v3601_v24, %v3642_v35  ;;  %v2084_v30 = vmul.f32 %v3618_v27, %v3673_v57  ;;  %4697 = vst [vmem:[#allocation73_spill] sm:$0xff] %v3807_v56  ;;  %v4698_v17 = vld [vmem:[#allocation35_spill] sm:$0xff] }
 0x1de   : > { %v2109_v62 = vmul.f32 %v3620_v54, %v3693_v15  ;;  %v2134_v33 = vmul.f32 %v3625_v38, %v3716_v31  ;;  %v1691_v20 = vadd.f32 %v1683_v46, %v1666_v0  ;;  %v1708_v39 = vmul.f32 %v4698_v17, %v3562_v14  ;;  %v4701_v38 = vld [vmem:[#allocation36_spill] sm:$0xff] }
 0x1df   : > { %v1443_v49 = vadd.f32 %v1435_v26, %v1418_v29  ;;  %v2317_v60 = vadd.f32 %v2309_v55, %v2292_v32  ;;  %v2067_v24 = vadd.f32 %v2059_v22, %v2042_v42  ;;  %v1194_v1 = vadd.f32 %v1186_v52, %v1161_v43  ;;  %v3837_v43 = vld [vmem:[#allocation3 + $0x73] sm:$0xff] }
 0x1e0   : > { %v3819_v27 = vmul.f32 %v4694_v51, %v3799_v5  ;;  %v3823_v54 = vmul.f32 %v4698_v17, %v3801_v19  ;;  %v1716_v18 = vadd.f32 %v1708_v39, %v1691_v20  ;;  %v1733_v31 = vmul.f32 %v4701_v38, %v3571_v34  ;;  %v4703_v34 = vld [vmem:[#allocation37_spill] sm:$0xff]  ;;  %v4707_v5 = vld [vmem:[#allocation40_spill] sm:$0xff] }
 0x1e1   : > { %v3829_v46 = vmul.f32 %v4701_v38, %v3807_v56  ;;  %v2342_v14 = vadd.f32 %v2334_v28, %v2317_v60  ;;  %v2092_v0 = vadd.f32 %v2084_v30, %v2067_v24  ;;  %v1211_v26 = vmul.f32 %v3813_v10, %v3333_v58  ;;  %v3843_v24 = vld [vmem:[#allocation3 + $0x74] sm:$0xff] }
 0x1e2   : > { %4699 = vst [vmem:[#allocation74_spill] sm:$0xff] %v3819_v27  ;;  %v2159_v29 = vmul.f32 %v4683_v63, %v3728_v44  ;;  %v2184_v55 = vmul.f32 %v4686_v37, %v3730_v4  ;;  %v1741_v20 = vadd.f32 %v1733_v31, %v1716_v18  ;;  %v1758_v52 = vmul.f32 %v4703_v34, %v3589_v16  ;;  %v3849_v60 = vld [vmem:[#allocation3 + $0x75] sm:$0xff]  ;;  %v4709_v27 = vld [vmem:[#allocation20_spill] sm:$0xff] }
 0x1e3   : > { %4700 = vst [vmem:[#allocation75_spill] sm:$0xff] %v3823_v54  ;;  %v3841_v32 = vadd.f32 %v1460_v3, %v1443_v49  ;;  %v2367_v42 = vadd.f32 %v2359_v12, %v2342_v14  ;;  %v2117_v28 = vadd.f32 %v2109_v62, %v2092_v0  ;;  %v1219_v22 = vadd.f32 %v1211_v26, %v1194_v1  ;;  %v3851_v56 = vld [vmem:[#allocation3 + $0x76] sm:$0xff]  ;;  %v4720_v63 = vld [vmem:[#allocation44_spill] sm:$0xff] }
 0x1e4   : > { %4702 = vst [vmem:[#allocation76_spill] sm:$0xff] %v3829_v46  ;;  %v2210_v30 = vmul.f32 %v3676_v47, %v3768_v41  ;;  %v2235_v39 = vmul.f32 %v3684_v53, %v3770_v2  ;;  %v1766_v18 = vadd.f32 %v1758_v52, %v1741_v20  ;;  %v4705_v16 = vld [vmem:[#allocation38_spill] sm:$0xff]  ;;  %v2260_v1 = vmul.f32 %v3687_v9, %v3813_v10  ;;  %v4706_v26 = vld [vmem:[#allocation39_spill] sm:$0xff] }
 0x1e5   : > { %4704 = vst [vmem:[#allocation77_spill] sm:$0xff] %v3841_v32  ;;  %v1783_v31 = vmul.f32 %v4705_v16, %v3616_v36  ;;  %v2375_v12 = vsel %vm1097_vm3, %v2367_v42, 0.0  ;;  %v2142_v3 = vadd.f32 %v2134_v33, %v2117_v28  ;;  %v1236_v62 = vmul.f32 %v3837_v43, %v3341_v61  ;;  %v4710_v32 = vld [vmem:[#allocation41_spill] sm:$0xff]  ;;  %v4713_v9 = vld [vmem:[#allocation42_spill] sm:$0xff] }
 0x1e6   : > { %2376 = vadd.xlane.f32.xlu1 %v2375_v12  ;;  %v2285_v49 = vmul.f32 %v3696_v50, %v3837_v43  ;;  %v2310_v14 = vmul.f32 %v3705_v25, %v3843_v24  ;;  %v1808_v20 = vmul.f32 %v4706_v26, %v3644_v11  ;;  %v2335_v33 = vmul.f32 %v3712_v21, %v3849_v60 }
 0x1e7   : > { %v1791_v0 = vadd.f32 %v1783_v31, %v1766_v18  ;;  %v2167_v52 = vadd.f32 %v2159_v29, %v2142_v3  ;;  %v3870_v42 = vmul.f32 %v3783_v8, %v3851_v56  ;;  %v1244_v28 = vadd.f32 %v1236_v62, %v1219_v22  ;;  %v4708_v18 = vld [vmem:[#allocation31_spill] sm:$0xff]  ;;  %v4711_v8 = vld [vmem:[#allocation32_spill] sm:$0xff] }
 0x1e8   : > { %v1261_v12 = vmul.f32 %v3843_v24, %v4685_v45  ;;  %v1833_v46 = vmul.f32 %v4707_v5, %v3666_v48  ;;  %v1609_v31 = vmul.f32 %v4708_v18, %v3616_v36  ;;  %v1286_v29 = vmul.f32 %v3849_v60, %v3351_v6  ;;  %v4712_v36 = vld [vmem:[#allocation21_spill] sm:$0xff] }
 0x1e9   : > { %v1816_v19 = vadd.f32 %v1808_v20, %v1791_v0  ;;  %v2192_v54 = vadd.f32 %v2184_v55, %v2167_v52  ;;  %v1311_v3 = vmul.f32 %v3851_v56, %v3354_v23  ;;  %v1336_v22 = vmul.f32 %v3768_v41, %v4709_v27 }
 0x1ea   : > { %v1859_v0 = vmul.f32 %v4710_v32, %v3640_v40  ;;  %v1617_v20 = vadd.f32 %v1609_v31, %v3795_v13  ;;  %v1634_v21 = vmul.f32 %v4711_v8, %v3644_v11  ;;  %v1269_v55 = vadd.f32 %v1261_v12, %v1244_v28  ;;  %v4715_v31 = vld [vmem:[#allocation23_spill] sm:$0xff]  ;;  %v3904_v28 = vld [vmem:[#allocation3 + $0x80] sm:$0xff]  ;;  %v4719_v8 = vld [vmem:[#allocation25_spill] sm:$0xff] }
 0x1eb   : > { %v1841_v62 = vadd.f32 %v1833_v46, %v1816_v19  ;;  %v2218_v18 = vadd.f32 %v2210_v30, %v2192_v54  ;;  %v1344_v52 = vadd.f32 %v1336_v22, %v3791_v59  ;;  %v1361_v25 = vmul.f32 %v3770_v2, %v4712_v36  ;;  %v4714_v46 = vld [vmem:[#allocation33_spill] sm:$0xff]  ;;  %v4716_v30 = vld [vmem:[#allocation24_spill] sm:$0xff] }
 0x1ec   : > { %v1884_v53 = vmul.f32 %v4713_v9, %v3642_v35  ;;  %v1642_v19 = vadd.f32 %v1634_v21, %v1617_v20  ;;  %v1659_v47 = vmul.f32 %v4714_v46, %v3666_v48  ;;  %v1386_v13 = vmul.f32 %v3813_v10, %v4688_v7  ;;  %v3906_v12 = vld [vmem:[#allocation3 + $0x81] sm:$0xff]  ;;  %v4718_v21 = vld [vmem:[#allocation43_spill] sm:$0xff] }
 0x1ed   : > { %v1867_v50 = vadd.f32 %v1859_v0, %v1841_v62  ;;  %v2243_v37 = vadd.f32 %v2235_v39, %v2218_v18  ;;  %v1411_v54 = vmul.f32 %v3837_v43, %v4715_v31  ;;  %v3902_v59 = vmul.f32 %v3843_v24, %v4716_v30  ;;  %4717 = vst [vmem:[#allocation20_spill] sm:$0xff] %v3906_v12  ;;  %v3916_v11 = vld [vmem:[#allocation3 + $0x82] sm:$0xff] }
 0x1ee   : > { %v1909_v62 = vmul.f32 %v4718_v21, %v3673_v57  ;;  %v1667_v0 = vadd.f32 %v1659_v47, %v1642_v19  ;;  %v1684_v39 = vmul.f32 %v4694_v51, %v3640_v40  ;;  %v1294_v20 = vadd.f32 %v1286_v29, %v1269_v55  ;;  %v4721_v21 = vld [vmem:[#allocation26_spill] sm:$0xff]  ;;  %v3930_v29 = vld [vmem:[#allocation3 + $0x83] sm:$0xff] }
 0x1ef   : > { %v1892_v22 = vadd.f32 %v1884_v53, %v1867_v50  ;;  %v2268_v18 = vadd.f32 %v2260_v1, %v2243_v37  ;;  %v1369_v46 = vadd.f32 %v1361_v25, %v1344_v52  ;;  %v3914_v48 = vmul.f32 %v3849_v60, %v4719_v8  ;;  %v3932_v55 = vld [vmem:[#allocation3 + $0x84] sm:$0xff]  ;;  %v4725_v40 = vld [vmem:[#allocation46_spill] sm:$0xff] }
 0x1f0   : > { %v1934_v53 = vmul.f32 %v4720_v63, %v3693_v15  ;;  %v1692_v50 = vadd.f32 %v1684_v39, %v1667_v0  ;;  %v1709_v47 = vmul.f32 %v4698_v17, %v3642_v35  ;;  %v3924_v37 = vmul.f32 %v3851_v56, %v4721_v21 }
 0x1f1   : > { %v1917_v23 = vadd.f32 %v1909_v62, %v1892_v22  ;;  %v2293_v19 = vadd.f32 %v2285_v49, %v2268_v18  ;;  %v1337_v25 = vmul.f32 %v4709_v27, %v3904_v28  ;;  %v1362_v1 = vmul.f32 %v4712_v36, %v3906_v12  ;;  %v4723_v22 = vld [vmem:[#allocation68_spill] sm:$0xff]  ;;  %v4724_v62 = vld [vmem:[#allocation45_spill] sm:$0xff] }
 0x1f2   : > { %4722 = vst [vmem:[#allocation23_spill] sm:$0xff] %v3924_v37  ;;  %v1959_v0 = vmul.f32 %v4724_v62, %v4723_v22  ;;  %v1717_v39 = vadd.f32 %v1709_v47, %v1692_v50  ;;  %v1734_v49 = vmul.f32 %v4701_v38, %v3673_v57  ;;  %v1319_v37 = vadd.f32 %v1311_v3, %v1294_v20  ;;  %v1174_v62 = vld [vmem:[#allocation3 + $0x41] sm:$0xff] }
 0x1f3   : > { %v1942_v52 = vadd.f32 %v1934_v53, %v1917_v23  ;;  %v2318_v18 = vadd.f32 %v2310_v14, %v2293_v19  ;;  %v1394_v17 = vadd.f32 %v1386_v13, %v1369_v46  ;;  %v1387_v51 = vmul.f32 %v4688_v7, %v3916_v11  ;;  %v1149_v53 = vld [vmem:[#allocation3 + $0x40] sm:$0xff]  ;;  %v4726_v13 = vld [vmem:[#allocation47_spill] sm:$0xff] }
 0x1f4   : > { %v1984_v36 = vmul.f32 %v4725_v40, %v3728_v44  ;;  %v1742_v12 = vadd.f32 %v1734_v49, %v1717_v39  ;;  %v1759_v23 = vmul.f32 %v4703_v34, %v3693_v15  ;;  %v1412_v47 = vmul.f32 %v4715_v31, %v3930_v29  ;;  %v4727_v49 = vld [vmem:[#allocation16_spill] sm:$0xff]  ;;  %v4728_v34 = vld [vmem:[#allocation17_spill] sm:$0xff] }
 0x1f5   : > { %v1967_v35 = vadd.f32 %v1959_v0, %v1942_v52  ;;  %v2343_v50 = vadd.f32 %v2335_v33, %v2318_v18  ;;  %v3948_v14 = vmul.f32 %v4716_v30, %v3932_v55  ;;  %v1345_v3 = vadd.f32 %v1337_v25, %v1319_v37  ;;  %v1199_v0 = vld [vmem:[#allocation3 + $0x42] sm:$0xff] }
 0x1f6   : > { %v2009_v20 = vmul.f32 %v4726_v13, %v3730_v4  ;;  %v1767_v19 = vadd.f32 %v1759_v23, %v1742_v12  ;;  %v1784_v52 = vmul.f32 %v4705_v16, %v4723_v22  ;;  %v1419_v33 = vadd.f32 %v1411_v54, %v1394_v17  ;;  %v3957_v15 = vld [vmem:[#allocation3 + $0x85] sm:$0xff] }
 0x1f7   : > { %v1992_v46 = vadd.f32 %v1984_v36, %v1967_v35  ;;  %v2368_v39 = vadd.f32 %v3870_v42, %v2343_v50  ;;  %v1158_v18 = vmul.f32 %v4727_v49, %v1149_v53  ;;  %v1183_v38 = vmul.f32 %v4728_v34, %v1174_v62  ;;  %v4729_v37 = vld [vmem:[#allocation48_spill] sm:$0xff]  ;;  %v4730_v62 = vld [vmem:[#allocation49_spill] sm:$0xff] }
 0x1f8   : > { %v2035_v36 = vmul.f32 %v3768_v41, %v4729_v37  ;;  %v1792_v35 = vadd.f32 %v1784_v52, %v1767_v19  ;;  %v1809_v12 = vmul.f32 %v4706_v26, %v3728_v44  ;;  %v1224_v25 = vld [vmem:[#allocation3 + $0x43] sm:$0xff]  ;;  %v1370_v16 = vadd.f32 %v1362_v1, %v1345_v3  ;;  %v4731_v52 = vld [vmem:[#allocation51_spill] sm:$0xff] }
 0x1f9   : > { %v2017_v57 = vadd.f32 %v2009_v20, %v1992_v46  ;;  %v2378_v23 = vsel %vm1097_vm3, %v2368_v39, 0.0  ;;  %v1191_v42 = vadd.f32 %v1183_v38, %v1158_v18  ;;  %v1208_v17 = vmul.f32 %v3333_v58, %v1199_v0  ;;  %v3965_v54 = vld [vmem:[#allocation3 + $0x86] sm:$0xff] }
 0x1fa   : > { %2379 = vadd.xlane.f32.xlu2 %v2378_v23  ;;  %v2060_v53 = vmul.f32 %v3770_v2, %v4730_v62  ;;  %v1817_v50 = vadd.f32 %v1809_v12, %v1792_v35  ;;  %v1834_v46 = vmul.f32 %v4707_v5, %v3730_v4  ;;  %v1249_v20 = vld [vmem:[#allocation3 + $0x44] sm:$0xff]  ;;  %v1444_v19 = vadd.f32 %v3902_v59, %v1419_v33 }
 0x1fb   : > { %v2043_v34 = vadd.f32 %v2035_v36, %v2017_v57  ;;  %v1462_v1 = vmul.f32 %v4719_v8, %v3957_v15  ;;  %v1216_v38 = vadd.f32 %v1208_v17, %v1191_v42  ;;  %v1233_v58 = vmul.f32 %v3341_v61, %v1224_v25  ;;  %v1274_v49 = vld [vmem:[#allocation3 + $0x45] sm:$0xff]  ;;  %v1325_v17 = vld [vmem:[#allocation3 + $0x50] sm:$0xff] }
 0x1fc   : > { %v2085_v57 = vmul.f32 %v3813_v10, %v4731_v52  ;;  %v1842_v0 = vadd.f32 %v1834_v46, %v1817_v50  ;;  %v1860_v39 = vmul.f32 %v3768_v41, %v4710_v32  ;;  %v3981_v18 = vmul.f32 %v4721_v21, %v3965_v54  ;;  %v4733_v12 = vld [vmem:[#allocation52_spill] sm:$0xff]  ;;  %v4736_v46 = vld [vmem:[#allocation54_spill] sm:$0xff]  ;;  %v4739_v32 = vld [vmem:[#allocation55_spill] sm:$0xff] }
 0x1fd   : > { %v2068_v3 = vadd.f32 %v2060_v53, %v2043_v34  ;;  %v1395_v59 = vadd.f32 %v1387_v51, %v1370_v16  ;;  %v1241_v33 = vadd.f32 %v1233_v58, %v1216_v38  ;;  %v1258_v36 = vmul.f32 %v4685_v45, %v1249_v20  ;;  %v1299_v42 = vld [vmem:[#allocation3 + $0x46] sm:$0xff]  ;;  %v4737_v58 = vld [vmem:[#allocation43_spill] sm:$0xff] }
 0x1fe   : > { %4732 = vst [vmem:[#allocation24_spill] sm:$0xff] %v3981_v18  ;;  %v2110_v61 = vmul.f32 %v3837_v43, %v4733_v12  ;;  %v1868_v25 = vadd.f32 %v1860_v39, %v1842_v0  ;;  %v1885_v23 = vmul.f32 %v3770_v2, %v4713_v9  ;;  %v3989_v34 = vadd.f32 %v3914_v48, %v1444_v19  ;;  %v4735_v53 = vld [vmem:[#allocation53_spill] sm:$0xff]  ;;  %v4738_v39 = vld [vmem:[#allocation19_spill] sm:$0xff] }
 0x1ff   : > { %v2093_v35 = vadd.f32 %v2085_v57, %v2068_v3  ;;  %v2135_v50 = vmul.f32 %v3843_v24, %v4735_v53  ;;  %v1266_v51 = vadd.f32 %v1258_v36, %v1241_v33  ;;  %v1283_v16 = vmul.f32 %v3351_v6, %v1274_v49  ;;  %v1350_v49 = vld [vmem:[#allocation3 + $0x51] sm:$0xff]  ;;  %v4747_v26 = vld [vmem:[#allocation21_spill] sm:$0xff] }
 0x200   : > { %4734 = vst [vmem:[#allocation25_spill] sm:$0xff] %v3989_v34  ;;  %v2160_v20 = vmul.f32 %v3849_v60, %v4736_v46  ;;  %v1893_v38 = vadd.f32 %v1885_v23, %v1868_v25  ;;  %v1910_v3 = vmul.f32 %v3813_v10, %v4737_v58  ;;  %v1420_v57 = vadd.f32 %v1412_v47, %v1395_v59  ;;  %v4741_v25 = vld [vmem:[#allocation20_spill] sm:$0xff]  ;;  %v4742_v23 = vld [vmem:[#allocation62_spill] sm:$0xff]  ;;  %v4743_v59 = vld [vmem:[#allocation63_spill] sm:$0xff] }
 0x201   : > { %v2118_v45 = vadd.f32 %v2110_v61, %v2093_v35  ;;  %v1291_v0 = vadd.f32 %v1283_v16, %v1266_v51  ;;  %v1308_v9 = vmul.f32 %v4738_v39, %v1299_v42  ;;  %v1334_v48 = vmul.f32 %v4709_v27, %v1325_v17  ;;  %v4740_v35 = vld [vmem:[#allocation61_spill] sm:$0xff]  ;;  %v4746_v39 = vld [vmem:[#allocation66_spill] sm:$0xff] }
 0x202   : > { %v2185_v33 = vmul.f32 %v3851_v56, %v4739_v32  ;;  %v1918_v36 = vadd.f32 %v1910_v3, %v1893_v38  ;;  %v1935_v6 = vmul.f32 %v3837_v43, %v4720_v63  ;;  %v2211_v61 = vmul.f32 %v4740_v35, %v3904_v28  ;;  %v4744_v17 = vld [vmem:[#allocation65_spill] sm:$0xff]  ;;  %v1375_v3 = vld [vmem:[#allocation3 + $0x52] sm:$0xff] }
 0x203   : > { %v2143_v19 = vadd.f32 %v2135_v50, %v2118_v45  ;;  %v2236_v47 = vmul.f32 %v4742_v23, %v4741_v25  ;;  %v2261_v42 = vmul.f32 %v4743_v59, %v3916_v11  ;;  %v1316_v51 = vadd.f32 %v1308_v9, %v1291_v0  ;;  %v4745_v45 = vld [vmem:[#allocation45_spill] sm:$0xff]  ;;  %v4748_v9 = vld [vmem:[#allocation67_spill] sm:$0xff] }
 0x204   : > { %v2286_v50 = vmul.f32 %v4744_v17, %v3930_v29  ;;  %v1943_v16 = vadd.f32 %v1935_v6, %v1918_v36  ;;  %v1960_v38 = vmul.f32 %v3843_v24, %v4745_v45  ;;  %v2311_v63 = vmul.f32 %v4746_v39, %v3932_v55  ;;  %v1400_v36 = vld [vmem:[#allocation3 + $0x53] sm:$0xff] }
 0x205   : > { %v2168_v27 = vadd.f32 %v2160_v20, %v2143_v19  ;;  %v1445_v58 = vadd.f32 %v3948_v14, %v1420_v57  ;;  %v1342_v5 = vadd.f32 %v1334_v48, %v1316_v51  ;;  %v1359_v34 = vmul.f32 %v4747_v26, %v1350_v49  ;;  %v4749_v6 = vld [vmem:[#allocation22_spill] sm:$0xff] }
 0x206   : > { %v2336_v20 = vmul.f32 %v4748_v9, %v3957_v15  ;;  %v1968_v0 = vadd.f32 %v1960_v38, %v1943_v16  ;;  %v1985_v19 = vmul.f32 %v3849_v60, %v4725_v40  ;;  %v2361_v45 = vmul.f32 %v4749_v6, %v3965_v54 }
 0x207   : > { %v2193_v18 = vadd.f32 %v2185_v33, %v2168_v27  ;;  %v2010_v4 = vmul.f32 %v3851_v56, %v4726_v13  ;;  %v1367_v44 = vadd.f32 %v1359_v34, %v1342_v5  ;;  %v1384_v14 = vmul.f32 %v4688_v7, %v1375_v3  ;;  %v4040_v34 = vld [vmem:[#allocation3 + $0x90] sm:$0xff] }
 0x208   : > { %v1993_v26 = vadd.f32 %v1985_v19, %v1968_v0  ;;  %v2036_v48 = vmul.f32 %v4729_v37, %v3904_v28  ;;  %v2061_v33 = vmul.f32 %v4730_v62, %v4741_v25  ;;  %v4031_v49 = vadd.f32 %v1462_v1, %v1445_v58  ;;  %v4750_v58 = vld [vmem:[#allocation50_spill] sm:$0xff]  ;;  %v4751_v0 = vld [vmem:[#allocation77_spill] sm:$0xff] }
 0x209   : > { %v2219_v57 = vadd.f32 %v2211_v61, %v2193_v18  ;;  %v2086_v51 = vmul.f32 %v4731_v52, %v3916_v11  ;;  %v1392_v27 = vadd.f32 %v1384_v14, %v1367_v44  ;;  %v1409_v16 = vmul.f32 %v4715_v31, %v1400_v36  ;;  %v4042_v61 = vld [vmem:[#allocation3 + $0x91] sm:$0xff] }
 0x20a   : > { %v2018_v5 = vadd.f32 %v2010_v4, %v1993_v26  ;;  %v2111_v7 = vmul.f32 %v4733_v12, %v3930_v29  ;;  %v2136_v18 = vmul.f32 %v4735_v53, %v3932_v55  ;;  %v1434_v3 = vmul.f32 %v4716_v30, %v4750_v58  ;;  %v4752_v44 = vld [vmem:[#allocation18_spill] sm:$0xff]  ;;  %v4753_v31 = vld [vmem:[#allocation27_spill] sm:$0xff] }
 0x20b   : > { %v2244_v38 = vadd.f32 %v2236_v47, %v2219_v57  ;;  %v1417_v1 = vadd.f32 %v1409_v16, %v1392_v27  ;;  %v1493_v19 = vadd.f32 %v4752_v44, %v4751_v0  ;;  %v1511_v4 = vmul.f32 %v3768_v41, %v4753_v31  ;;  %v4054_v26 = vld [vmem:[#allocation3 + $0x92] sm:$0xff]  ;;  %v4755_v44 = vld [vmem:[#allocation28_spill] sm:$0xff] }
 0x20c   : > { %v2044_v36 = vadd.f32 %v2036_v48, %v2018_v5  ;;  %v2161_v14 = vmul.f32 %v4736_v46, %v3957_v15  ;;  %v2186_v57 = vmul.f32 %v4739_v32, %v3965_v54  ;;  %v4056_v27 = vld [vmem:[#allocation3 + $0x93] sm:$0xff]  ;;  %v1536_v53 = vmul.f32 %v3770_v2, %v4755_v44 }
 0x20d   : > { %v2269_v47 = vadd.f32 %v2261_v42, %v2244_v38  ;;  %v1442_v16 = vadd.f32 %v1434_v3, %v1417_v1  ;;  %v4754_v30 = vld [vmem:[#allocation58_spill] sm:$0xff]  ;;  %v1519_v0 = vadd.f32 %v1511_v4, %v1493_v19  ;;  %v2212_v38 = vmul.f32 %v4740_v35, %v4040_v34  ;;  %v4756_v3 = vld [vmem:[#allocation59_spill] sm:$0xff]  ;;  %v4757_v4 = vld [vmem:[#allocation29_spill] sm:$0xff] }
 0x20e   : > { %v1459_v58 = vmul.f32 %v4719_v8, %v4754_v30  ;;  %v2069_v48 = vadd.f32 %v2061_v33, %v2044_v36  ;;  %v2237_v5 = vmul.f32 %v4742_v23, %v4042_v61  ;;  %v4066_v32 = vld [vmem:[#allocation3 + $0x94] sm:$0xff]  ;;  %v1484_v8 = vmul.f32 %v4721_v21, %v4756_v3 }
 0x20f   : > { %v2294_v42 = vadd.f32 %v2286_v50, %v2269_v47  ;;  %v4068_v46 = vld [vmem:[#allocation3 + $0x95] sm:$0xff]  ;;  %v1544_v19 = vadd.f32 %v1536_v53, %v1519_v0  ;;  %v1561_v30 = vmul.f32 %v3813_v10, %v4757_v4  ;;  %v2262_v47 = vmul.f32 %v4743_v59, %v4054_v26 }
 0x210   : > { %v1467_v1 = vadd.f32 %v1459_v58, %v1442_v16  ;;  %v2094_v33 = vadd.f32 %v2086_v51, %v2069_v48  ;;  %v4078_v36 = vmul.f32 %v4744_v17, %v4056_v27  ;;  %v4080_v23 = vld [vmem:[#allocation3 + $0x96] sm:$0xff]  ;;  %v4758_v16 = vld [vmem:[#allocation56_spill] sm:$0xff]  ;;  %v4088_v51 = vmul.f32 %v4746_v39, %v4066_v32  ;;  %v4760_v17 = vld [vmem:[#allocation57_spill] sm:$0xff] }
 0x211   : > { %v2319_v50 = vadd.f32 %v2311_v63, %v2294_v42  ;;  %v1510_v58 = vmul.f32 %v4753_v31, %v4758_v16  ;;  %v1569_v21 = vadd.f32 %v1561_v30, %v1544_v19  ;;  %v4759_v53 = vld [vmem:[#allocation30_spill] sm:$0xff]  ;;  %v4092_v42 = vmul.f32 %v4748_v9, %v4068_v46  ;;  %v4761_v16 = vld [vmem:[#allocation31_spill] sm:$0xff]  ;;  %v4763_v9 = vld [vmem:[#allocation64_spill] sm:$0xff] }
 0x212   : > { %v1492_v35 = vadd.f32 %v1484_v8, %v1467_v1  ;;  %v1586_v0 = vmul.f32 %v3837_v43, %v4759_v53  ;;  %v2119_v63 = vadd.f32 %v2111_v7, %v2094_v33  ;;  %v1535_v1 = vmul.f32 %v4755_v44, %v4760_v17  ;;  %v4762_v7 = vld [vmem:[#allocation60_spill] sm:$0xff]  ;;  %v4774_v52 = vld [vmem:[#allocation23_spill] sm:$0xff] }
 0x213   : > { %v2344_v3 = vadd.f32 %v2336_v20, %v2319_v50  ;;  %v1611_v19 = vmul.f32 %v3843_v24, %v4761_v16  ;;  %v4100_v20 = vmul.f32 %v4749_v6, %v4080_v23  ;;  %v1560_v50 = vmul.f32 %v4757_v4, %v4762_v7  ;;  %v4764_v39 = vld [vmem:[#allocation32_spill] sm:$0xff] }
 0x214   : > { %v1518_v48 = vadd.f32 %v1510_v58, %v1492_v35  ;;  %v1594_v8 = vadd.f32 %v1586_v0, %v1569_v21  ;;  %v2144_v59 = vadd.f32 %v2136_v18, %v2119_v63  ;;  %v1585_v35 = vmul.f32 %v4759_v53, %v4763_v9  ;;  %v4765_v18 = vld [vmem:[#allocation69_spill] sm:$0xff]  ;;  %v4766_v63 = vld [vmem:[#allocation70_spill] sm:$0xff] }
 0x215   : > { %v2369_v30 = vadd.f32 %v2361_v45, %v2344_v3  ;;  %v1636_v17 = vmul.f32 %v3849_v60, %v4764_v39  ;;  %v1610_v45 = vmul.f32 %v4761_v16, %v4723_v22  ;;  %v1635_v6 = vmul.f32 %v4764_v39, %v4765_v18  ;;  %v4770_v22 = vld [vmem:[#allocation24_spill] sm:$0xff] }
 0x216   : > { %v1543_v33 = vadd.f32 %v1535_v1, %v1518_v48  ;;  %v1619_v58 = vadd.f32 %v1611_v19, %v1594_v8  ;;  %v2169_v0 = vadd.f32 %v2161_v14, %v2144_v59  ;;  %v4767_v48 = vld [vmem:[#allocation33_spill] sm:$0xff]  ;;  %v4768_v19 = vld [vmem:[#allocation34_spill] sm:$0xff]  ;;  %v4769_v59 = vld [vmem:[#allocation35_spill] sm:$0xff]  ;;  %v1495_v12 = vadd.f32 %v4770_v22, %v4031_v49 }
 0x217   : > { %v2381_v21 = vsel %vm1097_vm3, %v2369_v30, 0.0  ;;  %v1660_v1 = vmul.f32 %v4767_v48, %v4766_v63  ;;  %v1661_v9 = vmul.f32 %v3851_v56, %v4767_v48  ;;  %v1685_v30 = vmul.f32 %v3768_v41, %v4768_v19  ;;  %v4772_v41 = vld [vmem:[#allocation37_spill] sm:$0xff] }
 0x218   : > { %2382 = vadd.xlane.f32.xlu0 %v2381_v21  ;;  %v1568_v3 = vadd.f32 %v1560_v50, %v1543_v33  ;;  %v1644_v7 = vadd.f32 %v1636_v17, %v1619_v58  ;;  %v2194_v8 = vadd.f32 %v2186_v57, %v2169_v0  ;;  %v1710_v14 = vmul.f32 %v3770_v2, %v4769_v59  ;;  %v1503_v58 = vld [vmem:[#allocation3 + $0x80] sm:$0xff] }
 0x219   : > { %v1686_v50 = vmul.f32 %v4768_v19, %v3904_v28  ;;  %v1513_v33 = vmul.f32 %v4040_v34, %v4753_v31  ;;  %v4771_v57 = vld [vmem:[#allocation36_spill] sm:$0xff]  ;;  %v1760_v63 = vmul.f32 %v3837_v43, %v4772_v41  ;;  %v1711_v2 = vmul.f32 %v4769_v59, %v4741_v25 }
 0x21a   : > { %v1593_v18 = vadd.f32 %v1585_v35, %v1568_v3  ;;  %v1669_v21 = vadd.f32 %v1661_v9, %v1644_v7  ;;  %v2220_v17 = vadd.f32 %v2212_v38, %v2194_v8  ;;  %v1735_v0 = vmul.f32 %v3813_v10, %v4771_v57  ;;  %v1528_v9 = vld [vmem:[#allocation3 + $0x81] sm:$0xff] }
 0x21b   : > { %v1521_v3 = vadd.f32 %v1513_v33, %v1495_v12  ;;  %v1538_v7 = vmul.f32 %v4042_v61, %v4755_v44  ;;  %v1736_v38 = vmul.f32 %v4771_v57, %v3916_v11  ;;  %v4773_v8 = vld [vmem:[#allocation25_spill] sm:$0xff]  ;;  %v1512_v62 = vmul.f32 %v4753_v31, %v1503_v58  ;;  %v4775_v58 = vld [vmem:[#allocation38_spill] sm:$0xff] }
 0x21c   : > { %v1618_v49 = vadd.f32 %v1610_v45, %v1593_v18  ;;  %v1694_v35 = vadd.f32 %v1686_v50, %v1669_v21  ;;  %v2245_v22 = vadd.f32 %v2237_v5, %v2220_v17  ;;  %v1494_v10 = vadd.f32 %v4774_v52, %v4773_v8  ;;  %v1553_v12 = vld [vmem:[#allocation3 + $0x82] sm:$0xff] }
 0x21d   : > { %v1546_v13 = vadd.f32 %v1538_v7, %v1521_v3  ;;  %v1563_v45 = vmul.f32 %v4054_v26, %v4757_v4  ;;  %v1761_v21 = vmul.f32 %v4772_v41, %v3930_v29  ;;  %v1537_v50 = vmul.f32 %v4755_v44, %v1528_v9  ;;  %v1578_v31 = vld [vmem:[#allocation3 + $0x83] sm:$0xff] }
 0x21e   : > { %v1643_v43 = vadd.f32 %v1635_v6, %v1618_v49  ;;  %v1719_v37 = vadd.f32 %v1711_v2, %v1694_v35  ;;  %v2270_v18 = vadd.f32 %v2262_v47, %v2245_v22  ;;  %v1520_v5 = vadd.f32 %v1512_v62, %v1494_v10  ;;  %v4777_v10 = vld [vmem:[#allocation40_spill] sm:$0xff] }
 0x21f   : > { %v1571_v40 = vadd.f32 %v1563_v45, %v1546_v13  ;;  %v1588_v52 = vmul.f32 %v4056_v27, %v4759_v53  ;;  %v1786_v2 = vmul.f32 %v4775_v58, %v3932_v55  ;;  %v1562_v47 = vmul.f32 %v4757_v4, %v1553_v12 }
 0x220   : > { %v1668_v33 = vadd.f32 %v1660_v1, %v1643_v43  ;;  %v1744_v17 = vadd.f32 %v1736_v38, %v1719_v37  ;;  %v2295_v6 = vadd.f32 %v4078_v36, %v2270_v18  ;;  %v1545_v49 = vadd.f32 %v1537_v50, %v1520_v5  ;;  %v1603_v37 = vld [vmem:[#allocation3 + $0x84] sm:$0xff]  ;;  %v4776_v1 = vld [vmem:[#allocation39_spill] sm:$0xff] }
 0x221   : > { %v1596_v62 = vadd.f32 %v1588_v52, %v1571_v40  ;;  %v1613_v44 = vmul.f32 %v4066_v32, %v4761_v16  ;;  %v1811_v7 = vmul.f32 %v4776_v1, %v3957_v15  ;;  %v1587_v36 = vmul.f32 %v4759_v53, %v1578_v31 }
 0x222   : > { %v1693_v35 = vadd.f32 %v1685_v30, %v1668_v33  ;;  %v1769_v3 = vadd.f32 %v1761_v21, %v1744_v17  ;;  %v2320_v13 = vadd.f32 %v4088_v51, %v2295_v6  ;;  %v1570_v9 = vadd.f32 %v1562_v47, %v1545_v49  ;;  %v1628_v30 = vld [vmem:[#allocation3 + $0x85] sm:$0xff] }
 0x223   : > { %v1621_v8 = vadd.f32 %v1613_v44, %v1596_v62  ;;  %v1638_v4 = vmul.f32 %v4068_v46, %v4764_v39  ;;  %v1836_v43 = vmul.f32 %v4777_v10, %v3965_v54  ;;  %v1612_v51 = vmul.f32 %v4761_v16, %v1603_v37  ;;  %v4169_v17 = vld [vmem:[#allocation3 + $0xa3] sm:$0xff]  ;;  %v4780_v62 = vld [vmem:[#allocation74_spill] sm:$0xff] }
 0x224   : > { %v1718_v22 = vadd.f32 %v1710_v14, %v1693_v35  ;;  %v1794_v38 = vadd.f32 %v1786_v2, %v1769_v3  ;;  %v2345_v40 = vadd.f32 %v4092_v42, %v2320_v13  ;;  %v1595_v45 = vadd.f32 %v1587_v36, %v1570_v9  ;;  %v1653_v14 = vld [vmem:[#allocation3 + $0x86] sm:$0xff]  ;;  %v4779_v3 = vld [vmem:[#allocation42_spill] sm:$0xff] }
 0x225   : > { %v1646_v21 = vadd.f32 %v1638_v4, %v1621_v8  ;;  %v1663_v53 = vmul.f32 %v4080_v23, %v4767_v48  ;;  %v1785_v50 = vmul.f32 %v3843_v24, %v4775_v58  ;;  %v1637_v42 = vmul.f32 %v4764_v39, %v1628_v30  ;;  %v4778_v16 = vld [vmem:[#allocation41_spill] sm:$0xff]  ;;  %v4782_v8 = vld [vmem:[#allocation75_spill] sm:$0xff] }
 0x226   : > { %v1743_v12 = vadd.f32 %v1735_v0, %v1718_v22  ;;  %v1819_v18 = vadd.f32 %v1811_v7, %v1794_v38  ;;  %v2370_v5 = vadd.f32 %v4100_v20, %v2345_v40  ;;  %v1620_v33 = vadd.f32 %v1612_v51, %v1595_v45  ;;  %v4177_v24 = vld [vmem:[#allocation3 + $0xa4] sm:$0xff]  ;;  %v4781_v22 = vld [vmem:[#allocation43_spill] sm:$0xff] }
 0x227   : > { %v1862_v0 = vmul.f32 %v4040_v34, %v4778_v16  ;;  %v1671_v6 = vadd.f32 %v1663_v53, %v1646_v21  ;;  %v1810_v49 = vmul.f32 %v3849_v60, %v4776_v1  ;;  %v1662_v47 = vmul.f32 %v4767_v48, %v1653_v14  ;;  %v1804_v7 = vld [vmem:[#allocation3 + $0xa5] sm:$0xff] }
 0x228   : > { %v1768_v52 = vadd.f32 %v1760_v63, %v1743_v12  ;;  %v1844_v31 = vadd.f32 %v1836_v43, %v1819_v18  ;;  %v2384_v2 = vsel %vm1097_vm3, %v2370_v5, 0.0  ;;  %v1645_v20 = vadd.f32 %v1637_v42, %v1620_v33  ;;  %v1829_v45 = vld [vmem:[#allocation3 + $0xa6] sm:$0xff] }
 0x229   : > { %2385 = vadd.xlane.f32.xlu1 %v2384_v2  ;;  %v1887_v63 = vmul.f32 %v4042_v61, %v4779_v3  ;;  %v1696_v44 = vadd.f32 %v4780_v62, %v1671_v6  ;;  %v1763_v37 = vmul.f32 %v4772_v41, %v4169_v17  ;;  %v1835_v13 = vmul.f32 %v3851_v56, %v4777_v10  ;;  %v4783_v12 = vld [vmem:[#allocation44_spill] sm:$0xff]  ;;  %v4210_v2 = vld [vmem:[#allocation3 + $0xb0] sm:$0xff] }
 0x22a   : > { %v1793_v39 = vadd.f32 %v1785_v50, %v1768_v52  ;;  %v1870_v35 = vadd.f32 %v1862_v0, %v1844_v31  ;;  %v1670_v60 = vadd.f32 %v1662_v47, %v1645_v20  ;;  %v1687_v48 = vmul.f32 %v4040_v34, %v4768_v19  ;;  %v4784_v21 = vld [vmem:[#allocation76_spill] sm:$0xff] }
 0x22b   : > { %v1912_v38 = vmul.f32 %v4054_v26, %v4781_v22  ;;  %v1721_v4 = vadd.f32 %v4782_v8, %v1696_v44  ;;  %v1788_v30 = vmul.f32 %v4775_v58, %v4177_v24  ;;  %v1861_v40 = vmul.f32 %v4778_v16, %v3904_v28  ;;  %v4214_v47 = vld [vmem:[#allocation3 + $0xa0] sm:$0xff]  ;;  %v4787_v44 = vld [vmem:[#allocation47_spill] sm:$0xff] }
 0x22c   : > { %v1818_v9 = vadd.f32 %v1810_v49, %v1793_v39  ;;  %v1895_v36 = vadd.f32 %v1887_v63, %v1870_v35  ;;  %v1695_v43 = vadd.f32 %v1687_v48, %v1670_v60  ;;  %v1712_v56 = vmul.f32 %v4042_v61, %v4769_v59  ;;  %v4785_v59 = vld [vmem:[#allocation45_spill] sm:$0xff]  ;;  %v4786_v39 = vld [vmem:[#allocation46_spill] sm:$0xff] }
 0x22d   : > { %v1937_v18 = vmul.f32 %v4056_v27, %v4783_v12  ;;  %v1746_v53 = vadd.f32 %v4784_v21, %v1721_v4  ;;  %v1813_v14 = vmul.f32 %v4776_v1, %v1804_v7  ;;  %v1886_v5 = vmul.f32 %v4779_v3, %v4741_v25  ;;  %v4789_v21 = vld [vmem:[#allocation49_spill] sm:$0xff] }
 0x22e   : > { %v1843_v19 = vadd.f32 %v1835_v13, %v1818_v9  ;;  %v1920_v51 = vadd.f32 %v1912_v38, %v1895_v36  ;;  %v1720_v50 = vadd.f32 %v1712_v56, %v1695_v43  ;;  %v1737_v28 = vmul.f32 %v4054_v26, %v4771_v57  ;;  %v4230_v38 = vld [vmem:[#allocation3 + $0xa1] sm:$0xff]  ;;  %v4234_v43 = vld [vmem:[#allocation3 + $0xb2] sm:$0xff] }
 0x22f   : > { %v1962_v52 = vmul.f32 %v4066_v32, %v4785_v59  ;;  %v1771_v31 = vadd.f32 %v1763_v37, %v1746_v53  ;;  %v1838_v0 = vmul.f32 %v4777_v10, %v1829_v45  ;;  %v1911_v6 = vmul.f32 %v4781_v22, %v3916_v11  ;;  %v4222_v37 = vld [vmem:[#allocation3 + $0xb1] sm:$0xff] }
 0x230   : > { %v1869_v33 = vadd.f32 %v1861_v40, %v1843_v19  ;;  %v1945_v42 = vadd.f32 %v1937_v18, %v1920_v51  ;;  %v1745_v49 = vadd.f32 %v1737_v28, %v1720_v50  ;;  %v1762_v25 = vmul.f32 %v4056_v27, %v4772_v41  ;;  %v4240_v19 = vld [vmem:[#allocation3 + $0xa2] sm:$0xff] }
 0x231   : > { %v1987_v35 = vmul.f32 %v4068_v46, %v4786_v39  ;;  %v1796_v63 = vadd.f32 %v1788_v30, %v1771_v31  ;;  %v1936_v62 = vmul.f32 %v4783_v12, %v3930_v29  ;;  %v2012_v11 = vmul.f32 %v4080_v23, %v4787_v44  ;;  %v4788_v29 = vld [vmem:[#allocation48_spill] sm:$0xff] }
 0x232   : > { %v1894_v20 = vadd.f32 %v1886_v5, %v1869_v33  ;;  %v1970_v57 = vadd.f32 %v1962_v52, %v1945_v42  ;;  %v1770_v13 = vadd.f32 %v1762_v25, %v1745_v49  ;;  %v1787_v41 = vmul.f32 %v4066_v32, %v4775_v58  ;;  %v4250_v28 = vld [vmem:[#allocation3 + $0xa3] sm:$0xff] }
 0x233   : > { %v1821_v7 = vadd.f32 %v1813_v14, %v1796_v63  ;;  %v1864_v9 = vmul.f32 %v4210_v2, %v4778_v16  ;;  %v1961_v36 = vmul.f32 %v4785_v59, %v3932_v55  ;;  %v2038_v8 = vmul.f32 %v4214_v47, %v4788_v29  ;;  %v4246_v14 = vld [vmem:[#allocation3 + $0xb3] sm:$0xff]  ;;  %v4258_v49 = vld [vmem:[#allocation3 + $0xa4] sm:$0xff] }
 0x234   : > { %v1919_v60 = vadd.f32 %v1911_v6, %v1894_v20  ;;  %v1995_v48 = vadd.f32 %v1987_v35, %v1970_v57  ;;  %v1795_v4 = vadd.f32 %v1787_v41, %v1770_v13  ;;  %v1889_v56 = vmul.f32 %v4222_v37, %v4779_v3  ;;  %v4791_v63 = vld [vmem:[#allocation52_spill] sm:$0xff]  ;;  %v4792_v13 = vld [vmem:[#allocation71_spill] sm:$0xff] }
 0x235   : > { %v1846_v58 = vadd.f32 %v1838_v0, %v1821_v7  ;;  %v1986_v45 = vmul.f32 %v4786_v39, %v3957_v15  ;;  %v1812_v55 = vmul.f32 %v4068_v46, %v4776_v1  ;;  %v2063_v53 = vmul.f32 %v4230_v38, %v4789_v21  ;;  %v4790_v1 = vld [vmem:[#allocation51_spill] sm:$0xff] }
 0x236   : > { %v1944_v30 = vadd.f32 %v1936_v62, %v1919_v60  ;;  %v2020_v40 = vadd.f32 %v2012_v11, %v1995_v48  ;;  %v2011_v50 = vmul.f32 %v4787_v44, %v3965_v54  ;;  %v1914_v15 = vmul.f32 %v4234_v43, %v4781_v22  ;;  %v4256_v0 = vld [vmem:[#allocation3 + $0xb4] sm:$0xff]  ;;  %v4272_v60 = vld [vmem:[#allocation3 + $0xa5] sm:$0xff] }
 0x237   : > { %v1872_v5 = vadd.f32 %v1864_v9, %v1846_v58  ;;  %v1820_v33 = vadd.f32 %v1812_v55, %v1795_v4  ;;  %v2088_v31 = vmul.f32 %v4240_v19, %v4790_v1  ;;  %v1939_v25 = vmul.f32 %v4246_v14, %v4783_v12  ;;  %v4268_v11 = vld [vmem:[#allocation3 + $0xb5] sm:$0xff]  ;;  %v4795_v58 = vld [vmem:[#allocation73_spill] sm:$0xff] }
 0x238   : > { %v1969_v51 = vadd.f32 %v1961_v36, %v1944_v30  ;;  %v2046_v18 = vadd.f32 %v2038_v8, %v2020_v40  ;;  %v1837_v54 = vmul.f32 %v4080_v23, %v4777_v10  ;;  %v2037_v57 = vmul.f32 %v4040_v34, %v4788_v29  ;;  %v4793_v8 = vld [vmem:[#allocation53_spill] sm:$0xff]  ;;  %v4280_v30 = vld [vmem:[#allocation3 + $0xb6] sm:$0xff]  ;;  %v4794_v40 = vld [vmem:[#allocation72_spill] sm:$0xff] }
 0x239   : > { %v1897_v6 = vadd.f32 %v1889_v56, %v1872_v5  ;;  %v2113_v62 = vmul.f32 %v4250_v28, %v4791_v63  ;;  %v1863_v41 = vmul.f32 %v4778_v16, %v4792_v13  ;;  %v1964_v7 = vmul.f32 %v4256_v0, %v4785_v59  ;;  %v4796_v5 = vld [vmem:[#allocation54_spill] sm:$0xff] }
 0x23a   : > { %v1994_v42 = vadd.f32 %v1986_v45, %v1969_v51  ;;  %v2071_v52 = vadd.f32 %v2063_v53, %v2046_v18  ;;  %v1845_v10 = vadd.f32 %v1837_v54, %v1820_v33  ;;  %v2062_v34 = vmul.f32 %v4042_v61, %v4789_v21  ;;  %v4286_v45 = vld [vmem:[#allocation3 + $0xa6] sm:$0xff] }
 0x23b   : > { %v1922_v48 = vadd.f32 %v1914_v15, %v1897_v6  ;;  %v2138_v4 = vmul.f32 %v4258_v49, %v4793_v8  ;;  %v1888_v16 = vmul.f32 %v4779_v3, %v4794_v40  ;;  %v1913_v56 = vmul.f32 %v4781_v22, %v4795_v58  ;;  %v4294_v15 = vld [vmem:[#allocation3 + $0xc0] sm:$0xff]  ;;  %v4797_v6 = vld [vmem:[#allocation55_spill] sm:$0xff] }
 0x23c   : > { %v2019_v20 = vadd.f32 %v2011_v50, %v1994_v42  ;;  %v2096_v35 = vadd.f32 %v2088_v31, %v2071_v52  ;;  %v1989_v51 = vmul.f32 %v4268_v11, %v4786_v39  ;;  %v2087_v61 = vmul.f32 %v4054_v26, %v4790_v1  ;;  %v4798_v26 = vld [vmem:[#allocation61_spill] sm:$0xff] }
 0x23d   : > { %v1947_v55 = vadd.f32 %v1939_v25, %v1922_v48  ;;  %v2163_v50 = vmul.f32 %v4272_v60, %v4796_v5  ;;  %v2112_v3 = vmul.f32 %v4056_v27, %v4791_v63  ;;  %v2014_v33 = vmul.f32 %v4280_v30, %v4787_v44 }
 0x23e   : > { %v2045_v9 = vadd.f32 %v2037_v57, %v2019_v20  ;;  %v2121_v36 = vadd.f32 %v2113_v62, %v2096_v35  ;;  %v1871_v42 = vadd.f32 %v1863_v41, %v1845_v10  ;;  %v2188_v25 = vmul.f32 %v4286_v45, %v4797_v6  ;;  %v4304_v20 = vld [vmem:[#allocation3 + $0xc1] sm:$0xff] }
 0x23f   : > { %v1972_v22 = vadd.f32 %v1964_v7, %v1947_v55  ;;  %v2214_v54 = vmul.f32 %v4798_v26, %v4210_v2  ;;  %v1938_v57 = vmul.f32 %v4783_v12, %v4169_v17  ;;  %v2040_v27 = vmul.f32 %v4788_v29, %v4294_v15  ;;  %v4799_v7 = vld [vmem:[#allocation62_spill] sm:$0xff]  ;;  %v4324_v55 = vld [vmem:[#allocation3 + $0xc3] sm:$0xff] }
 0x240   : > { %v2070_v18 = vadd.f32 %v2062_v34, %v2045_v9  ;;  %v2146_v53 = vadd.f32 %v2138_v4, %v2121_v36  ;;  %v1896_v62 = vadd.f32 %v1888_v16, %v1871_v42  ;;  %v2137_v41 = vmul.f32 %v4066_v32, %v4793_v8  ;;  %v4314_v9 = vld [vmem:[#allocation3 + $0xc2] sm:$0xff]  ;;  %v4800_v32 = vld [vmem:[#allocation63_spill] sm:$0xff] }
 0x241   : > { %v1997_v35 = vadd.f32 %v1989_v51, %v1972_v22  ;;  %v2239_v10 = vmul.f32 %v4799_v7, %v4222_v37  ;;  %v2162_v34 = vmul.f32 %v4068_v46, %v4796_v5  ;;  %v2065_v17 = vmul.f32 %v4789_v21, %v4304_v20  ;;  %v4334_v22 = vld [vmem:[#allocation3 + $0xc4] sm:$0xff] }
 0x242   : > { %v2095_v52 = vadd.f32 %v2087_v61, %v2070_v18  ;;  %v2171_v31 = vadd.f32 %v2163_v50, %v2146_v53  ;;  %v1921_v12 = vadd.f32 %v1913_v56, %v1896_v62  ;;  %v2187_v40 = vmul.f32 %v4080_v23, %v4797_v6  ;;  %v4801_v23 = vld [vmem:[#allocation65_spill] sm:$0xff] }
 0x243   : > { %v2022_v36 = vadd.f32 %v2014_v33, %v1997_v35  ;;  %v2264_v58 = vmul.f32 %v4800_v32, %v4234_v43  ;;  %v2090_v18 = vmul.f32 %v4790_v1, %v4314_v9  ;;  %v1963_v61 = vmul.f32 %v4785_v59, %v4177_v24  ;;  %v4802_v59 = vld [vmem:[#allocation66_spill] sm:$0xff] }
 0x244   : > { %v2120_v13 = vadd.f32 %v2112_v3, %v2095_v52  ;;  %v2196_v48 = vadd.f32 %v2188_v25, %v2171_v31  ;;  %v1946_v46 = vadd.f32 %v1938_v57, %v1921_v12  ;;  %v2213_v56 = vmul.f32 %v4798_v26, %v4214_v47  ;;  %v4342_v47 = vld [vmem:[#allocation3 + $0xc5] sm:$0xff] }
 0x245   : > { %v2048_v51 = vadd.f32 %v2040_v27, %v2022_v36  ;;  %v2289_v3 = vmul.f32 %v4801_v23, %v4246_v14  ;;  %v2115_v42 = vmul.f32 %v4791_v63, %v4324_v55  ;;  %v1988_v31 = vmul.f32 %v4272_v60, %v4786_v39  ;;  %v4354_v36 = vld [vmem:[#allocation3 + $0xc6] sm:$0xff] }
 0x246   : > { %v2145_v4 = vadd.f32 %v2137_v41, %v2120_v13  ;;  %v2222_v16 = vadd.f32 %v2214_v54, %v2196_v48  ;;  %v1971_v52 = vadd.f32 %v1963_v61, %v1946_v46  ;;  %v2314_v54 = vmul.f32 %v4802_v59, %v4256_v0 }
 0x247   : > { %v2073_v33 = vadd.f32 %v2065_v17, %v2048_v51  ;;  %v2013_v57 = vmul.f32 %v4286_v45, %v4787_v44  ;;  %v2140_v27 = vmul.f32 %v4793_v8, %v4334_v22  ;;  %v2039_v13 = vmul.f32 %v4210_v2, %v4788_v29 }
 0x248   : > { %v2170_v53 = vadd.f32 %v2162_v34, %v2145_v4  ;;  %v2247_v50 = vadd.f32 %v2239_v10, %v2222_v16  ;;  %v1996_v62 = vadd.f32 %v1988_v31, %v1971_v52  ;;  %v2238_v39 = vmul.f32 %v4799_v7, %v4230_v38  ;;  %v4803_v10 = vld [vmem:[#allocation67_spill] sm:$0xff]  ;;  %v4365_v38 = vld [vmem:[%s4474_s3 + $0x30] ss:$0 sm:$0xff] }
 0x249   : > { %v2098_v35 = vadd.f32 %v2090_v18, %v2073_v33  ;;  %v2339_v34 = vmul.f32 %v4803_v10, %v4268_v11  ;;  %v2165_v44 = vmul.f32 %v4796_v5, %v4342_v47  ;;  %v2064_v4 = vmul.f32 %v4222_v37, %v4789_v21 }
 0x24a   : > { %v2195_v25 = vadd.f32 %v2187_v40, %v2170_v53  ;;  %v2272_v24 = vadd.f32 %v2264_v58, %v2247_v50  ;;  %v2021_v12 = vadd.f32 %v2013_v57, %v1996_v62  ;;  %v2263_v2 = vmul.f32 %v4800_v32, %v4240_v19  ;;  %v2207_v58 = vld [vmem:[#allocation3 + $0xd0] sm:$0xff] }
 0x24b   : > { %v2123_v17 = vadd.f32 %v2115_v42, %v2098_v35  ;;  %v2364_v16 = vmul.f32 %v4365_v38, %v4280_v30  ;;  %v2190_v18 = vmul.f32 %v4797_v6, %v4354_v36  ;;  %v2089_v37 = vmul.f32 %v4234_v43, %v4790_v1  ;;  %v2232_v53 = vld [vmem:[#allocation3 + $0xd1] sm:$0xff] }
 0x24c   : > { %v2221_v41 = vadd.f32 %v2213_v56, %v2195_v25  ;;  %v2297_v48 = vadd.f32 %v2289_v3, %v2272_v24  ;;  %v2047_v46 = vadd.f32 %v2039_v13, %v2021_v12  ;;  %v2288_v19 = vmul.f32 %v4801_v23, %v4250_v28  ;;  %v2257_v1 = vld [vmem:[#allocation3 + $0xd2] sm:$0xff] }
 0x24d   : > { %v2148_v51 = vadd.f32 %v2140_v27, %v2123_v17  ;;  %v2216_v50 = vmul.f32 %v4798_v26, %v2207_v58  ;;  %v2114_v33 = vmul.f32 %v4246_v14, %v4791_v63  ;;  %v2313_v52 = vmul.f32 %v4802_v59, %v4258_v49  ;;  %v2282_v14 = vld [vmem:[#allocation3 + $0xd3] sm:$0xff] }
 0x24e   : > { %v2246_v40 = vadd.f32 %v2238_v39, %v2221_v41  ;;  %v2322_v29 = vadd.f32 %v2314_v54, %v2297_v48  ;;  %v2072_v3 = vadd.f32 %v2064_v4, %v2047_v46  ;;  %v2241_v28 = vmul.f32 %v4799_v7, %v2232_v53  ;;  %v2332_v39 = vld [vmem:[#allocation3 + $0xd5] sm:$0xff] }
 0x24f   : > { %v2173_v56 = vadd.f32 %v2165_v44, %v2148_v51  ;;  %v2139_v24 = vmul.f32 %v4256_v0, %v4793_v8  ;;  %v2338_v57 = vmul.f32 %v4803_v10, %v4272_v60  ;;  %v2266_v49 = vmul.f32 %v4800_v32, %v2257_v1  ;;  %v2307_v8 = vld [vmem:[#allocation3 + $0xd4] sm:$0xff] }
 0x250   : > { %v2271_v21 = vadd.f32 %v2263_v2, %v2246_v40  ;;  %v2347_v61 = vadd.f32 %v2339_v34, %v2322_v29  ;;  %v2097_v25 = vadd.f32 %v2089_v37, %v2072_v3  ;;  %v2164_v62 = vmul.f32 %v4268_v11, %v4796_v5  ;;  %v2357_v11 = vld [vmem:[#allocation3 + $0xd6] sm:$0xff] }
 0x251   : > { %v2198_v31 = vadd.f32 %v2190_v18, %v2173_v56  ;;  %v2363_v0 = vmul.f32 %v4365_v38, %v4286_v45  ;;  %v2291_v60 = vmul.f32 %v4801_v23, %v2282_v14  ;;  %v2189_v34 = vmul.f32 %v4280_v30, %v4797_v6 }
 0x252   : > { %v2296_v42 = vadd.f32 %v2288_v19, %v2271_v21  ;;  %v2372_v43 = vadd.f32 %v2364_v16, %v2347_v61  ;;  %v2122_v27 = vadd.f32 %v2114_v33, %v2097_v25  ;;  %v4397_v44 = vstv %s4375_s28 }
 0x253   : > { %v2224_v63 = vadd.f32 %v2216_v50, %v2198_v31  ;;  %v2316_v4 = vmul.f32 %v4802_v59, %v2307_v8  ;;  %v2215_v45 = vmul.f32 %v4798_v26, %v4294_v15  ;;  %v2341_v2 = vmul.f32 %v4803_v10, %v2332_v39 }
 0x254   : > { %v2321_v54 = vadd.f32 %v2313_v52, %v2296_v42  ;;  %v2390_v35 = vsel %vm1097_vm3, %v2372_v43, 0.0  ;;  %v2147_v48 = vadd.f32 %v2139_v24, %v2122_v27  ;;  %v2240_v30 = vmul.f32 %v4799_v7, %v4304_v20 }
 0x255   : > { %2391 = vadd.xlane.f32.xlu0 %v2390_v35  ;;  %v2249_v41 = vadd.f32 %v2241_v28, %v2224_v63  ;;  %v2366_v51 = vmul.f32 %v4365_v38, %v2357_v11  ;;  %v2265_v15 = vmul.f32 %v4800_v32, %v4314_v9  ;;  %v2290_v19 = vmul.f32 %v4801_v23, %v4324_v55 }
 0x256   : > { %v2346_v13 = vadd.f32 %v2338_v57, %v2321_v54  ;;  %v2172_v5 = vadd.f32 %v2164_v62, %v2147_v48  ;;  %v2315_v20 = vmul.f32 %v4802_v59, %v4334_v22  ;;  %v2340_v50 = vmul.f32 %v4803_v10, %v4342_v47  ;;  %v4804_v57 = vld [vmem:[#allocation8_spill] sm:$0xff] }
 0x257   : > { %v2274_v12 = vadd.f32 %v2266_v49, %v2249_v41  ;;  %v2365_v55 = vmul.f32 %v4365_v38, %v4354_v36 }
 0x258   : > { %v2371_v17 = vadd.f32 %v2363_v0, %v2346_v13  ;;  %v2197_v58 = vadd.f32 %v2189_v34, %v2172_v5 }
 0x259   : > { %v2377_v29 = vpop.xlane.xlu1 %2376  ;;  %v2299_v16 = vadd.f32 %v2291_v60, %v2274_v12 }
 0x25a   : > { %v2387_v40 = vsel %vm1097_vm3, %v2371_v17, 0.0  ;;  %v2401_v6 = vadd.f32 %v4397_v44, %v2377_v29  ;;  %v2223_v46 = vadd.f32 %v2215_v45, %v2197_v58  ;;  %v4805_v17 = vld [vmem:[#allocation9_spill] sm:$0xff] }
 0x25b   : > { %2388 = vadd.xlane.f32.xlu2 %v2387_v40  ;;  %v2324_v18 = vadd.f32 %v2316_v4, %v2299_v16 }
 0x25c   : > { %v2726_v26 = vmul.f32 -1.442695, %v2401_v6  ;;  %v2248_v21 = vadd.f32 %v2240_v30, %v2223_v46 }
 0x25d   : > { %v2349_v37 = vadd.f32 %v2341_v2, %v2324_v18 }
 0x25e   : > { %2785 = vpow2.f32 %v2726_v26  ;;  %v2273_v53 = vadd.f32 %v2265_v15, %v2248_v21 }
 0x25f   : > { %v2374_v61 = vadd.f32 %v2366_v51, %v2349_v37 }
 0x260   : > { %v2298_v56 = vadd.f32 %v2290_v19, %v2273_v53  ;;  %v4806_v19 = vld [vmem:[#allocation10_spill] sm:$0xff] }
 0x261   : > { %v2396_v7 = vsel %vm1097_vm3, %v2374_v61, 0.0 }
 0x262   : > { %v2323_v32 = vadd.f32 %v2315_v20, %v2298_v56 }
 0x263   : > { %2397 = vadd.xlane.f32.xlu2 %v2396_v7 }
 0x264   : > { %v2786_v9 = vpop.eup %2785  ;;  %v2348_v3 = vadd.f32 %v2340_v50, %v2323_v32 }
 0x265   : > { %v2433_v23 = vadd.f32 1.0, %v2786_v9 }
 0x266   : > { %v2373_v33 = vadd.f32 %v2365_v55, %v2348_v3 }
 0x267   : > { %2787 = vrcp.f32 %v2433_v23  ;;  %v2452_v1 = vand.u32 2147483648, %v2433_v23  ;;  %v2450_v36 = vand.u32 2147483647, %v2433_v23  ;;  %vm2446_vm8 = vweird.f32 %v2433_v23 }
 0x268   : > { %v2393_v42 = vsel %vm1097_vm3, %v2373_v33, 0.0  ;;  %v4807_v33 = vld [vmem:[#allocation11_spill] sm:$0xff] }
 0x269   : > { %2394 = vadd.xlane.f32.xlu1 %v2393_v42  ;;  %v2453_v28 = vor.u32 1.1754944e-38, %v2452_v1  ;;  %vm2451_vm10 = vcmp.eq.f32.partialorder %v2450_v36, 8.507059e+37 }
 0x26d   : > { %v2788_v22 = vpop.eup %2787  ;;  %v2380_v59 = vpop.xlane.xlu2 %2379 }
 0x26e   : > { %v2442_v52 = vmul.f32 %v2788_v22, %v2433_v23  ;;  %v2402_v47 = vadd.f32 %v4397_v44, %v2380_v59  ;;  %vm2447_vm7 = vweird.f32 %v2788_v22 }
 0x26f   : > { %vm2448_vm9 = vmor %vm2446_vm8, %vm2447_vm7 }
 0x270   : > { %v2443_v10 = vsub.f32 1.0, %v2442_v52  ;;  %v2727_v43 = vmul.f32 -1.442695, %v2402_v47 }
 0x272   : > { %v2444_v31 = vmul.f32 %v2788_v22, %v2443_v10  ;;  %2789 = vpow2.f32 %v2727_v43 }
 0x274   : > { %v2445_v38 = vadd.f32 %v2788_v22, %v2444_v31 }
 0x276   : > { %v2449_v25 = vsel %vm2448_vm9, %v2788_v22, %v2445_v38 }
 0x277   : > { %v2454_v24 = vsel %vm2451_vm10, %v2453_v28, %v2449_v25 }
 0x278   : > { %v2790_v54 = vpop.eup %2789  ;;  %v2561_v35 = vmul.f32 %v2454_v24, %v4804_v57 }
 0x279   : > { %v2434_v14 = vadd.f32 1.0, %v2790_v54 }
 0x27a   : > { %2569 = vst.msk [vmem:[%s4426_s8] sm:$0xff] %vm248_vm0, %v2561_v35 }
 0x27b   : > { %2791 = vrcp.f32 %v2434_v14  ;;  %v2467_v62 = vand.u32 2147483648, %v2434_v14  ;;  %v2465_v0 = vand.u32 2147483647, %v2434_v14  ;;  %vm2461_vm12 = vweird.f32 %v2434_v14 }
 0x27d   : > { %v2468_v41 = vor.u32 1.1754944e-38, %v2467_v62  ;;  %vm2466_vm14 = vcmp.eq.f32.partialorder %v2465_v0, 8.507059e+37 }
 0x281   : > { %v2792_v63 = vpop.eup %2791 }
 0x282   : > { %v2457_v49 = vmul.f32 %v2792_v63, %v2434_v14  ;;  %vm2462_vm11 = vweird.f32 %v2792_v63 }
 0x283   : > { %vm2463_vm13 = vmor %vm2461_vm12, %vm2462_vm11 }
 0x284   : > { %v2458_v27 = vsub.f32 1.0, %v2457_v49 }
 0x286   : > { %v2459_v13 = vmul.f32 %v2792_v63, %v2458_v27 }
 0x288   : > { %v2460_v8 = vadd.f32 %v2792_v63, %v2459_v13 }
 0x28a   : > { %v2464_v60 = vsel %vm2463_vm13, %v2792_v63, %v2460_v8 }
 0x28b   : > { %v2383_v39 = vpop.xlane.xlu0 %2382  ;;  %v2469_v48 = vsel %vm2466_vm14, %v2468_v41, %v2464_v60 }
 0x28c   : > { %v2403_v34 = vadd.f32 %v4397_v44, %v2383_v39  ;;  %v2562_v12 = vmul.f32 %v2469_v48, %v4805_v17 }
 0x28e   : > { %v2728_v4 = vmul.f32 -1.442695, %v2403_v34  ;;  %2570 = vst.msk [vmem:[%s4426_s8 + $0x8] sm:$0xff] %vm248_vm0, %v2562_v12 }
 0x290   : > { %2793 = vpow2.f32 %v2728_v4 }
 0x296   : > { %v2794_v11 = vpop.eup %2793 }
 0x297   : > { %v2435_v5 = vadd.f32 1.0, %v2794_v11 }
 0x299   : > { %2795 = vrcp.f32 %v2435_v5  ;;  %v2482_v30 = vand.u32 2147483648, %v2435_v5  ;;  %v2480_v51 = vand.u32 2147483647, %v2435_v5  ;;  %vm2476_vm1 = vweird.f32 %v2435_v5 }
 0x29b   : > { %v2483_v46 = vor.u32 1.1754944e-38, %v2482_v30  ;;  %vm2481_vm3 = vcmp.eq.f32.partialorder %v2480_v51, 8.507059e+37  ;;  %v4809_v51 = vld [vmem:[#allocation12_spill] sm:$0xff] }
 0x29c   : > { %v2386_v45 = vpop.xlane.xlu1 %2385 }
 0x29d   : > { %v2404_v40 = vadd.f32 %v4397_v44, %v2386_v45  ;;  %v4808_v45 = vld [vmem:[#allocation13_spill] sm:$0xff] }
 0x29f   : > { %v2796_v2 = vpop.eup %2795  ;;  %v2729_v16 = vmul.f32 -1.442695, %v2404_v40 }
 0x2a0   : > { %v2472_v29 = vmul.f32 %v2796_v2, %v2435_v5  ;;  %vm2477_vm15 = vweird.f32 %v2796_v2 }
 0x2a1   : > { %2797 = vpow2.f32 %v2729_v16  ;;  %vm2478_vm2 = vmor %vm2476_vm1, %vm2477_vm15 }
 0x2a2   : > { %v2473_v58 = vsub.f32 1.0, %v2472_v29 }
 0x2a4   : > { %v2474_v6 = vmul.f32 %v2796_v2, %v2473_v58 }
 0x2a6   : > { %v2475_v18 = vadd.f32 %v2796_v2, %v2474_v6 }
 0x2a7   : > { %v2798_v15 = vpop.eup %2797 }
 0x2a8   : > { %v2479_v26 = vsel %vm2478_vm2, %v2796_v2, %v2475_v18  ;;  %v2436_v21 = vadd.f32 1.0, %v2798_v15 }
 0x2a9   : > { %v2484_v37 = vsel %vm2481_vm3, %v2483_v46, %v2479_v26 }
 0x2aa   : > { %v2563_v61 = vmul.f32 %v2484_v37, %v4806_v19  ;;  %2799 = vrcp.f32 %v2436_v21  ;;  %v2497_v56 = vand.u32 2147483648, %v2436_v21  ;;  %v2495_v9 = vand.u32 2147483647, %v2436_v21 }
 0x2ab   : > { %vm2491_vm5 = vweird.f32 %v2436_v21 }
 0x2ac   : > { %2571 = vst.msk [vmem:[%s4426_s8 + $0x10] sm:$0xff] %vm248_vm0, %v2563_v61  ;;  %v2498_v55 = vor.u32 1.1754944e-38, %v2497_v56  ;;  %vm2496_vm7 = vcmp.eq.f32.partialorder %v2495_v9, 8.507059e+37  ;;  %v4810_v9 = vld [vmem:[#allocation15_spill] sm:$0xff] }
 0x2b0   : > { %v2800_v53 = vpop.eup %2799 }
 0x2b1   : > { %v2487_v20 = vmul.f32 %v2800_v53, %v2436_v21  ;;  %vm2492_vm4 = vweird.f32 %v2800_v53 }
 0x2b2   : > { %vm2493_vm6 = vmor %vm2491_vm5, %vm2492_vm4 }
 0x2b3   : > { %v2488_v7 = vsub.f32 1.0, %v2487_v20 }
 0x2b5   : > { %v2489_v50 = vmul.f32 %v2800_v53, %v2488_v7 }
 0x2b7   : > { %v2490_v32 = vadd.f32 %v2800_v53, %v2489_v50 }
 0x2b9   : > { %v2494_v23 = vsel %vm2493_vm6, %v2800_v53, %v2490_v32 }
 0x2ba   : > { %v2499_v3 = vsel %vm2496_vm7, %v2498_v55, %v2494_v23 }
 0x2bb   : > { %v2564_v42 = vmul.f32 %v2499_v3, %v4807_v33 }
 0x2bd   : > { %2572 = vst.msk [vmem:[%s4426_s8 + $0x18] sm:$0xff] %vm248_vm0, %v2564_v42 }
 0x2c8   : > { %v2392_v22 = vpop.xlane.xlu0 %2391 }
 0x2c9   : > { %v2406_v59 = vadd.f32 %v4397_v44, %v2392_v22 }
 0x2cb   : > { %v2731_v52 = vmul.f32 -1.442695, %v2406_v59 }
 0x2cd   : > { %2801 = vpow2.f32 %v2731_v52  ;;  %v4811_v52 = vld [vmem:[#allocation14_spill] sm:$0xff] }
 0x2ce   : > { %v2389_v47 = vpop.xlane.xlu2 %2388 }
 0x2cf   : > { %v2405_v10 = vadd.f32 %v4397_v44, %v2389_v47 }
 0x2d1   : > { %v2730_v43 = vmul.f32 -1.442695, %v2405_v10 }
 0x2d3   : > { %2803 = vpow2.f32 %v2730_v43  ;;  %v2802_v1 = vpop.eup %2801 }
 0x2d4   : > { %v2438_v31 = vadd.f32 1.0, %v2802_v1 }
 0x2d6   : > { %v2398_v36 = vpop.xlane.xlu2 %2397  ;;  %2805 = vrcp.f32 %v2438_v31  ;;  %v2525_v27 = vand.u32 2147483647, %v2438_v31  ;;  %v2527_v62 = vand.u32 2147483648, %v2438_v31  ;;  %vm2521_vm9 = vweird.f32 %v2438_v31 }
 0x2d7   : > { %v2408_v28 = vadd.f32 %v4397_v44, %v2398_v36 }
 0x2d8   : > { %vm2526_vm11 = vcmp.eq.f32.partialorder %v2525_v27, 8.507059e+37  ;;  %v2528_v17 = vor.u32 1.1754944e-38, %v2527_v62 }
 0x2d9   : > { %v2804_v38 = vpop.eup %2803  ;;  %v2733_v24 = vmul.f32 -1.442695, %v2408_v28 }
 0x2da   : > { %v2437_v25 = vadd.f32 1.0, %v2804_v38 }
 0x2dc   : > { %2807 = vrcp.f32 %v2437_v25  ;;  %v2806_v54 = vpop.eup %2805  ;;  %v2395_v35 = vpop.xlane.xlu1 %2394  ;;  %v2512_v34 = vand.u32 2147483648, %v2437_v25  ;;  %v2510_v12 = vand.u32 2147483647, %v2437_v25  ;;  %vm2506_vm13 = vweird.f32 %v2437_v25 }
 0x2dd   : > { %2809 = vpow2.f32 %v2733_v24  ;;  %v2517_v57 = vmul.f32 %v2806_v54, %v2438_v31  ;;  %v2407_v14 = vadd.f32 %v4397_v44, %v2395_v35  ;;  %vm2522_vm8 = vweird.f32 %v2806_v54 }
 0x2de   : > { %vm2523_vm10 = vmor %vm2521_vm9, %vm2522_vm8  ;;  %v2513_v29 = vor.u32 1.1754944e-38, %v2512_v34  ;;  %vm2511_vm15 = vcmp.eq.f32.partialorder %v2510_v12, 8.507059e+37 }
 0x2df   : > { %v2518_v63 = vsub.f32 1.0, %v2517_v57  ;;  %v2732_v13 = vmul.f32 -1.442695, %v2407_v14 }
 0x2e1   : > { %v2519_v41 = vmul.f32 %v2806_v54, %v2518_v63  ;;  %2811 = vpow2.f32 %v2732_v13 }
 0x2e2   : > { %v2808_v49 = vpop.eup %2807 }
 0x2e3   : > { %v2810_v0 = vpop.eup %2809  ;;  %v2502_v8 = vmul.f32 %v2808_v49, %v2437_v25  ;;  %v2520_v48 = vadd.f32 %v2806_v54, %v2519_v41  ;;  %vm2507_vm12 = vweird.f32 %v2808_v49 }
 0x2e4   : > { %v2440_v60 = vadd.f32 1.0, %v2810_v0  ;;  %vm2508_vm14 = vmor %vm2506_vm13, %vm2507_vm12 }
 0x2e5   : > { %v2503_v39 = vsub.f32 1.0, %v2502_v8  ;;  %v2524_v4 = vsel %vm2523_vm10, %v2806_v54, %v2520_v48 }
 0x2e6   : > { %2813 = vrcp.f32 %v2440_v60  ;;  %v2529_v11 = vsel %vm2526_vm11, %v2528_v17, %v2524_v4  ;;  %v2557_v26 = vand.u32 2147483648, %v2440_v60  ;;  %v2555_v21 = vand.u32 2147483647, %v2440_v60 }
 0x2e7   : > { %v2504_v44 = vmul.f32 %v2808_v49, %v2503_v39  ;;  %v2566_v40 = vmul.f32 %v2529_v11, %v4808_v45  ;;  %v2812_v2 = vpop.eup %2811  ;;  %vm2551_vm2 = vweird.f32 %v2440_v60 }
 0x2e8   : > { %v2439_v58 = vadd.f32 1.0, %v2812_v2  ;;  %v2558_v53 = vor.u32 1.1754944e-38, %v2557_v26  ;;  %vm2556_vm4 = vcmp.eq.f32.partialorder %v2555_v21, 8.507059e+37 }
 0x2e9   : > { %v2505_v5 = vadd.f32 %v2808_v49, %v2504_v44  ;;  %2574 = vst.msk [vmem:[%s4426_s8 + $0x28] sm:$0xff] %vm248_vm0, %v2566_v40 }
 0x2ea   : > { %2815 = vrcp.f32 %v2439_v58  ;;  %v2542_v55 = vand.u32 2147483648, %v2439_v58  ;;  %v2540_v3 = vand.u32 2147483647, %v2439_v58  ;;  %vm2536_vm6 = vweird.f32 %v2439_v58 }
 0x2eb   : > { %v2509_v16 = vsel %vm2508_vm14, %v2808_v49, %v2505_v5 }
 0x2ec   : > { %v2814_v30 = vpop.eup %2813  ;;  %v2514_v6 = vsel %vm2511_vm15, %v2513_v29, %v2509_v16  ;;  %v2543_v42 = vor.u32 1.1754944e-38, %v2542_v55  ;;  %vm2541_vm8 = vcmp.eq.f32.partialorder %v2540_v3, 8.507059e+37 }
 0x2ed   : > { %v2565_v18 = vmul.f32 %v2514_v6, %v4809_v51  ;;  %v2547_v46 = vmul.f32 %v2814_v30, %v2440_v60  ;;  %vm2552_vm1 = vweird.f32 %v2814_v30 }
 0x2ee   : > { %vm2553_vm3 = vmor %vm2551_vm2, %vm2552_vm1 }
 0x2ef   : > { %2573 = vst.msk [vmem:[%s4426_s8 + $0x20] sm:$0xff] %vm248_vm0, %v2565_v18  ;;  %v2548_v15 = vsub.f32 1.0, %v2547_v46 }
 0x2f0   : > { %v2816_v19 = vpop.eup %2815 }
 0x2f1   : > { %v2549_v37 = vmul.f32 %v2814_v30, %v2548_v15  ;;  %v2532_v20 = vmul.f32 %v2816_v19, %v2439_v58  ;;  %vm2537_vm5 = vweird.f32 %v2816_v19 }
 0x2f2   : > { %vm2538_vm7 = vmor %vm2536_vm6, %vm2537_vm5 }
 0x2f3   : > { %v2550_v61 = vadd.f32 %v2814_v30, %v2549_v37  ;;  %v2533_v50 = vsub.f32 1.0, %v2532_v20 }
 0x2f5   : > { %v2554_v7 = vsel %vm2553_vm3, %v2814_v30, %v2550_v61  ;;  %v2534_v23 = vmul.f32 %v2816_v19, %v2533_v50 }
 0x2f6   : > { %v2559_v56 = vsel %vm2556_vm4, %v2558_v53, %v2554_v7 }
 0x2f7   : > { %v2568_v32 = vmul.f32 %v2559_v56, %v4810_v9  ;;  %v2535_v33 = vadd.f32 %v2816_v19, %v2534_v23 }
 0x2f9   : > { %2576 = vst.msk [vmem:[%s4426_s8 + $0x38] sm:$0xff] %vm248_vm0, %v2568_v32  ;;  %v2539_v22 = vsel %vm2538_vm7, %v2816_v19, %v2535_v33 }
 0x2fa   : > { %v2544_v59 = vsel %vm2541_vm8, %v2543_v42, %v2539_v22 }
 0x2fb   : > { %v2567_v47 = vmul.f32 %v2544_v59, %v4811_v52 }
 0x2fd   : > { %2575 = vst.msk [vmem:[%s4426_s8 + $0x30] sm:$0xff] %vm248_vm0, %v2567_v47 }
 0x2fe PF: > { %p16_p7 = scmp.ge.s32.totalorder %s2942_s24, 6   ;;  %s4812_s20 = smov %s2874_s21 }
 0x2ff   : > { %s4813_s21 = smov %s2878_s22  ;;  %s4814_s22 = smov %s2952_s27 }
 0x300   : > { %s4815_s23 = smov %s2942_s24  ;;  %18 = sbr.rel (!%p16_p7) target bundleno = 5 (0x5), region = 90 }
 0x305   :  { %2598 = vsyncpa [#allocation6], 1 }
 0x306   :  { %2600 = vsyncpa [#allocation6 + $0x1], 1 }

</bundles_post_ra>
